<compile_context>
chip_gen: v6e
topology: v6e:2x2x1
jax: 0.10.0
libtpu: 0.0.40
codegen_flags: <defaults>
</compile_context>

<pallas_src>
import numpy as np
import jax
import jax.numpy as jnp
from jax import lax
from jax.experimental import pallas as pl
from jax.experimental.pallas import tpu as pltpu


def _make_kernel(Ho, Wo, Cin, Cout, stride):
    """Fused per-image kernel. Grid iterates over the batch."""
    s = stride
    K2 = 9 * Cout + Cin  # conv2 taps + residual-path taps (identity path has Cin == Cout)

    def tap(x3, kh, kw, c):
        # conv-1 tap on the (Ho, Wo) output grid: x3 is the 1-padded input (H+2, W+2, c).
        if s == 1:
            return x3[kh:kh + Ho, kw:kw + Wo, :]
        # TODO(synk): for stride>1 use strided slices (pl.ds(..., stride=s)) instead of the
        # reshape-decimation below (path not exercised by the stride=1 test config).
        t = x3[kh:kh + s * Ho, kw:kw + s * Wo, :]
        t = t.reshape(Ho, s, Wo, s, c)
        return t[:, 0, :, 0, :]

    def kernel(xp_ref, w1_ref, b1_ref, wct_ref, bc_ref, o_ref):
        xq = xp_ref[0].astype(jnp.float32)                       # (H+2, W+2, Cin)

        # ---- conv1 (BN scale folded into w1) + bias + ReLU: one im2col matmul ----
        taps1 = [tap(xq, kh, kw, Cin) for kh in range(3) for kw in range(3)]
        slab1 = jnp.concatenate(taps1, axis=-1)                  # (Ho, Wo, 9*Cin)
        slab1 = slab1.reshape(Ho * Wo, 9 * Cin).astype(jnp.bfloat16)
        acc1 = jnp.dot(slab1, w1_ref[...],                       # (Ho*Wo, Cout) f32
                       preferred_element_type=jnp.float32)
        y1 = jnp.maximum(acc1 + b1_ref[...], 0.0)

        # ---- zero-pad y1 by 1 on H/W at value level (no VMEM scratch round trip) ----
        y1 = y1.reshape(Ho, Wo, Cout)
        zr = jnp.zeros((1, Wo, Cout), jnp.float32)
        y1p = jnp.concatenate([zr, y1, zr], axis=0)              # (Ho+2, Wo, Cout)
        zc = jnp.zeros((Ho + 2, 1, Cout), jnp.float32)
        y1p = jnp.concatenate([zc, y1p, zc], axis=1)             # (Ho+2, Wo+2, Cout)

        # ---- conv2 + residual (projection or identity) fused into ONE transposed matmul ----
        taps2 = [y1p[kh:kh + Ho, kw:kw + Wo, :] for kh in range(3) for kw in range(3)]
        taps2.append(tap(xq, 1, 1, Cin))                         # residual-path input taps
        slab2 = jnp.concatenate(taps2, axis=-1)                  # (Ho, Wo, 9*Cout + Cin)
        slab2 = slab2.reshape(Ho * Wo, K2).astype(jnp.bfloat16)

        # (Cout, K2) x (Ho*Wo, K2) contracted on K2 -> (Cout, Ho*Wo): pixels in the lane dim,
        # so bias-add / ReLU / store below are lane-dense (full 128-lane vregs, unmasked vst).
        acc2t = lax.dot_general(
            wct_ref[...], slab2,
            dimension_numbers=(((1,), (1,)), ((), ())),
            preferred_element_type=jnp.float32)                  # (Cout, Ho*Wo)

        o_ref[0] = jnp.maximum(acc2t + bc_ref[...], 0.0).astype(o_ref.dtype)

    return kernel


def standard_unit_forward(x_nchw, params, stride):
    """PyTorch-layout (NCHW) in / NCHW out.  BN is inference-mode, folded in the wrapper."""
    N, Cin, H, W = x_nchw.shape
    Cout = params["w1"].shape[-1]
    s = stride
    # TODO(synk): odd spatial sizes with stride>1 (PyTorch floor conv sizing) are not handled.
    assert H % s == 0 and W % s == 0, "spatial dims must be divisible by the stride"
    Ho, Wo = H // s, W // s
    use_projection = (Cin != Cout) or (s != 1)

    # activations -> NHWC, pad=1 for the 3x3 convs, ship as bf16 (halves the activation DMA)
    x_nhwc = jnp.transpose(x_nchw, (0, 2, 3, 1))
    xp = jnp.pad(x_nhwc, ((0, 0), (1, 1), (1, 1), (0, 0))).astype(jnp.bfloat16)

    # fold BN scales into the conv weights (f32 math), quantize weights to bf16 for the MXU
    w1f = (params["w1"] * params["s1"].reshape(1, 1, 1, Cout)).reshape(9 * Cin, Cout)
    w1f = w1f.astype(jnp.bfloat16)
    b1 = params["b1"].reshape(1, Cout).astype(jnp.float32)

    w2f = (params["w2"] * params["s2"].reshape(1, 1, 1, Cout)).reshape(9 * Cout, Cout)
    if use_projection:
        wpf = params["wp"] * params["sp"].reshape(1, Cout)       # (Cin, Cout)
        bp = params["bp"].reshape(Cout)
    else:
        wpf = jnp.eye(Cout, dtype=jnp.float32)                   # identity residual (Cin == Cout)
        bp = jnp.zeros((Cout,), jnp.float32)
    # combined (conv2 + residual) weight, pre-transposed to (Cout, 9*Cout + Cin)
    wcombT = jnp.concatenate([w2f, wpf], axis=0).T.astype(jnp.bfloat16)
    bcomb = (params["b2"].reshape(Cout) + bp).reshape(Cout, 1).astype(jnp.float32)

    kernel = _make_kernel(Ho, Wo, Cin, Cout, s)
    Hp, Wp = H + 2, W + 2

    out = pl.pallas_call(
        kernel,
        out_shape=jax.ShapeDtypeStruct((N, Cout, Ho * Wo), jnp.float32),
        grid=(N,),
        in_specs=[
            pl.BlockSpec((1, Hp, Wp, Cin), lambda n: (n, 0, 0, 0)),
            pl.BlockSpec((9 * Cin, Cout), lambda n: (0, 0)),
            pl.BlockSpec((1, Cout), lambda n: (0, 0)),
            pl.BlockSpec((Cout, 9 * Cout + Cin), lambda n: (0, 0)),
            pl.BlockSpec((Cout, 1), lambda n: (0, 0)),
        ],
        # lane-dense output block: last dim Ho*Wo = 256 (multiple of 128), NCHW-flattened layout
        out_specs=pl.BlockSpec((1, Cout, Ho * Wo), lambda n: (n, 0, 0)),
        compiler_params=pltpu.CompilerParams(dimension_semantics=("parallel",)),
    )(xp, w1f, b1, wcombT, bcomb)

    return out.reshape(N, Cout, Ho, Wo)                          # NCHW, like PyTorch


def init_params(key, Cin, Cout, use_projection):
    """Deterministic synthetic weights; BN (gamma,beta,mean,var) folded to scale/bias."""
    ks = jax.random.split(key, 16)
    eps = 1e-5

    def conv_w(k, kh, kw, cin, cout):
        fan_in = kh * kw * cin
        return jax.random.normal(k, (kh, kw, cin, cout), jnp.float32) / np.sqrt(float(fan_in))

    def bn_fold(k0, k1, k2, k3, c):
        gamma = 1.0 + 0.1 * jax.random.normal(k0, (c,), jnp.float32)
        beta = 0.1 * jax.random.normal(k1, (c,), jnp.float32)
        mean = 0.1 * jax.random.normal(k2, (c,), jnp.float32)
        var = jnp.abs(jax.random.normal(k3, (c,), jnp.float32)) + 0.5
        scale = gamma / jnp.sqrt(var + eps)
        bias = beta - mean * scale
        return scale, bias

    p = {}
    p["w1"] = conv_w(ks[0], 3, 3, Cin, Cout)
    p["s1"], p["b1"] = bn_fold(ks[1], ks[2], ks[3], ks[4], Cout)
    p["w2"] = conv_w(ks[5], 3, 3, Cout, Cout)
    p["s2"], p["b2"] = bn_fold(ks[6], ks[7], ks[8], ks[9], Cout)
    if use_projection:
        p["wp"] = conv_w(ks[10], 1, 1, Cin, Cout).reshape(Cin, Cout)
        p["sp"], p["bp"] = bn_fold(ks[11], ks[12], ks[13], ks[14], Cout)
    return p


def reference(x_nchw, params, stride):
    """Pure-JAX reference of the PyTorch forward, using the SAME BN folding and bf16 operand
    quantization as the kernel (MXU products of bf16 operands are exact in f32), so only
    f32 accumulation-order differences remain."""
    N, Cin, H, W = x_nchw.shape
    Cout = params["w1"].shape[-1]
    s = stride
    use_projection = (Cin != Cout) or (s != 1)
    q = lambda a: a.astype(jnp.bfloat16).astype(jnp.float32)

    x = jnp.transpose(x_nchw, (0, 2, 3, 1))                      # NHWC
    xq = q(x)

    def conv(a, w, strd, pad):
        return lax.conv_general_dilated(
            a, w, window_strides=(strd, strd), padding=pad,
            dimension_numbers=("NHWC", "HWIO", "NHWC"),
            precision=lax.Precision.HIGHEST)

    w1q = q(params["w1"] * params["s1"].reshape(1, 1, 1, Cout))
    y1 = jnp.maximum(conv(xq, w1q, s, [(1, 1), (1, 1)]) + params["b1"].reshape(1, 1, 1, Cout), 0.0)
    y1q = q(y1)
    w2q = q(params["w2"] * params["s2"].reshape(1, 1, 1, Cout))
    y2 = conv(y1q, w2q, 1, [(1, 1), (1, 1)]) + params["b2"].reshape(1, 1, 1, Cout)
    if use_projection:
        wpq = q(params["wp"] * params["sp"].reshape(1, Cout)).reshape(1, 1, Cin, Cout)
        res = conv(xq, wpq, s, [(0, 0), (0, 0)]) + params["bp"].reshape(1, 1, 1, Cout)
    else:
        res = xq  # kernel adds the bf16-rounded input on the identity path
    out = jnp.maximum(y2 + res, 0.0)
    return jnp.transpose(out, (0, 3, 1, 2))                      # NCHW


if __name__ == "__main__":
    # Small config consistent with the module: in_channels=4, out_channels=8, stride=1
    # -> use_projection=True (channels differ), like the first unit of a new ResNet stage.
    N, Cin, H, W = 2, 4, 16, 16
    Cout, stride = 8, 1
    use_projection = (Cin != Cout) or (stride != 1)

    key = jax.random.PRNGKey(0)
    kx, kp = jax.random.split(key)
    x_nchw = jax.random.normal(kx, (N, Cin, H, W), jnp.float32)  # PyTorch-style NCHW input

    params = init_params(kp, Cin, Cout, use_projection)

    out = jax.block_until_ready(standard_unit_forward(x_nchw, params, stride))
    ref = jax.block_until_ready(reference(x_nchw, params, stride))

    assert out.shape == (N, Cout, H // stride, W // stride)
    np.testing.assert_allclose(np.asarray(out), np.asarray(ref), rtol=1e-3, atol=1e-3)

    print("KERNEL_OK")
</pallas_src>

<mosaic_0001>
module attributes {stable_mosaic.version = 11 : i64} {
  func.func @kernel(%arg0: i32, %arg1: memref<1x18x18x4xbf16, #tpu.memory_space<vmem>>, %arg2: memref<36x8xbf16, #tpu.memory_space<vmem>>, %arg3: memref<1x8xf32, #tpu.memory_space<vmem>>, %arg4: memref<8x76xbf16, #tpu.memory_space<vmem>>, %arg5: memref<8x1xf32, #tpu.memory_space<vmem>>, %arg6: memref<1x8x256xf32, #tpu.memory_space<vmem>>) attributes {dimension_semantics = [#tpu.dimension_semantics<parallel>], iteration_bounds = array<i64: 2>, scalar_prefetch = 0 : i64, scratch_operands = 0 : i64, tpu.core_type = #tpu.core_type<tc>, window_params = [{transform_indices = @transform_0, window_bounds = array<i64: 1, 18, 18, 4>}, {pipeline_mode = #tpu.pipeline_mode<synchronous>, transform_indices = @transform_1, window_bounds = array<i64: 36, 8>}, {pipeline_mode = #tpu.pipeline_mode<synchronous>, transform_indices = @transform_2, window_bounds = array<i64: 1, 8>}, {pipeline_mode = #tpu.pipeline_mode<synchronous>, transform_indices = @transform_3, window_bounds = array<i64: 8, 76>}, {pipeline_mode = #tpu.pipeline_mode<synchronous>, transform_indices = @transform_4, window_bounds = array<i64: 8, 1>}, {transform_indices = @transform_5, window_bounds = array<i64: 1, 8, 256>}]} {
    %c0 = arith.constant 0 : index
    %c0_0 = arith.constant 0 : index
    %c0_1 = arith.constant 0 : index
    %c0_2 = arith.constant 0 : index
    %0 = vector.load %arg1[%c0, %c0_0, %c0_1, %c0_2] : memref<1x18x18x4xbf16, #tpu.memory_space<vmem>>, vector<1x18x18x4xbf16>
    %1 = vector.shape_cast %0 : vector<1x18x18x4xbf16> to vector<18x18x4xbf16>
    %2 = arith.extf %1 : vector<18x18x4xbf16> to vector<18x18x4xf32>
    %3 = vector.extract_strided_slice %2 {offsets = [0, 0, 0], sizes = [16, 16, 4], strides = [1, 1, 1]} : vector<18x18x4xf32> to vector<16x16x4xf32>
    %4 = vector.extract_strided_slice %2 {offsets = [0, 1, 0], sizes = [16, 16, 4], strides = [1, 1, 1]} : vector<18x18x4xf32> to vector<16x16x4xf32>
    %5 = vector.extract_strided_slice %2 {offsets = [0, 2, 0], sizes = [16, 16, 4], strides = [1, 1, 1]} : vector<18x18x4xf32> to vector<16x16x4xf32>
    %6 = vector.extract_strided_slice %2 {offsets = [1, 0, 0], sizes = [16, 16, 4], strides = [1, 1, 1]} : vector<18x18x4xf32> to vector<16x16x4xf32>
    %7 = vector.extract_strided_slice %2 {offsets = [1, 1, 0], sizes = [16, 16, 4], strides = [1, 1, 1]} : vector<18x18x4xf32> to vector<16x16x4xf32>
    %8 = vector.extract_strided_slice %2 {offsets = [1, 2, 0], sizes = [16, 16, 4], strides = [1, 1, 1]} : vector<18x18x4xf32> to vector<16x16x4xf32>
    %9 = vector.extract_strided_slice %2 {offsets = [2, 0, 0], sizes = [16, 16, 4], strides = [1, 1, 1]} : vector<18x18x4xf32> to vector<16x16x4xf32>
    %10 = vector.extract_strided_slice %2 {offsets = [2, 1, 0], sizes = [16, 16, 4], strides = [1, 1, 1]} : vector<18x18x4xf32> to vector<16x16x4xf32>
    %11 = vector.extract_strided_slice %2 {offsets = [2, 2, 0], sizes = [16, 16, 4], strides = [1, 1, 1]} : vector<18x18x4xf32> to vector<16x16x4xf32>
    %12 = tpu.concatenate %3, %4, %5, %6, %7, %8, %9, %10, %11 in 2 : vector<16x16x4xf32>, vector<16x16x4xf32>, vector<16x16x4xf32>, vector<16x16x4xf32>, vector<16x16x4xf32>, vector<16x16x4xf32>, vector<16x16x4xf32>, vector<16x16x4xf32>, vector<16x16x4xf32> -> vector<16x16x36xf32>
    %13 = vector.shape_cast %12 : vector<16x16x36xf32> to vector<256x36xf32>
    %14 = arith.truncf %13 : vector<256x36xf32> to vector<256x36xbf16>
    %c0_3 = arith.constant 0 : index
    %c0_4 = arith.constant 0 : index
    %15 = vector.load %arg2[%c0_3, %c0_4] : memref<36x8xbf16, #tpu.memory_space<vmem>>, vector<36x8xbf16>
    %cst = arith.constant dense<0.000000e+00> : vector<256x8xf32>
    %16 = tpu.matmul %14, %15, %cst {dimension_numbers = #tpu.dot_dimension_numbers<[1], [0], [0], [1], [0, 0, 1, 1], [], []>} : vector<256x36xbf16>, vector<36x8xbf16>, vector<256x8xf32> -> vector<256x8xf32>
    %c0_5 = arith.constant 0 : index
    %c0_6 = arith.constant 0 : index
    %17 = vector.load %arg3[%c0_5, %c0_6] : memref<1x8xf32, #tpu.memory_space<vmem>>, vector<1x8xf32>
    %18 = vector.broadcast %17 : vector<1x8xf32> to vector<256x8xf32>
    %19 = arith.addf %16, %18 : vector<256x8xf32>
    %cst_7 = arith.constant 0.000000e+00 : f32
    %20 = vector.broadcast %cst_7 : f32 to vector<256x8xf32>
    %21 = arith.maximumf %19, %20 : vector<256x8xf32>
    %22 = vector.shape_cast %21 : vector<256x8xf32> to vector<16x16x8xf32>
    %cst_8 = arith.constant 0.000000e+00 : f32
    %23 = vector.broadcast %cst_8 : f32 to vector<1x16x8xf32>
    %24 = tpu.concatenate %23, %22, %23 in 0 : vector<1x16x8xf32>, vector<16x16x8xf32>, vector<1x16x8xf32> -> vector<18x16x8xf32>
    %cst_9 = arith.constant 0.000000e+00 : f32
    %25 = vector.broadcast %cst_9 : f32 to vector<18x1x8xf32>
    %26 = tpu.concatenate %25, %24, %25 in 1 : vector<18x1x8xf32>, vector<18x16x8xf32>, vector<18x1x8xf32> -> vector<18x18x8xf32>
    %27 = vector.extract_strided_slice %26 {offsets = [0, 0, 0], sizes = [16, 16, 8], strides = [1, 1, 1]} : vector<18x18x8xf32> to vector<16x16x8xf32>
    %28 = vector.extract_strided_slice %26 {offsets = [0, 1, 0], sizes = [16, 16, 8], strides = [1, 1, 1]} : vector<18x18x8xf32> to vector<16x16x8xf32>
    %29 = vector.extract_strided_slice %26 {offsets = [0, 2, 0], sizes = [16, 16, 8], strides = [1, 1, 1]} : vector<18x18x8xf32> to vector<16x16x8xf32>
    %30 = vector.extract_strided_slice %26 {offsets = [1, 0, 0], sizes = [16, 16, 8], strides = [1, 1, 1]} : vector<18x18x8xf32> to vector<16x16x8xf32>
    %31 = vector.extract_strided_slice %26 {offsets = [1, 1, 0], sizes = [16, 16, 8], strides = [1, 1, 1]} : vector<18x18x8xf32> to vector<16x16x8xf32>
    %32 = vector.extract_strided_slice %26 {offsets = [1, 2, 0], sizes = [16, 16, 8], strides = [1, 1, 1]} : vector<18x18x8xf32> to vector<16x16x8xf32>
    %33 = vector.extract_strided_slice %26 {offsets = [2, 0, 0], sizes = [16, 16, 8], strides = [1, 1, 1]} : vector<18x18x8xf32> to vector<16x16x8xf32>
    %34 = vector.extract_strided_slice %26 {offsets = [2, 1, 0], sizes = [16, 16, 8], strides = [1, 1, 1]} : vector<18x18x8xf32> to vector<16x16x8xf32>
    %35 = vector.extract_strided_slice %26 {offsets = [2, 2, 0], sizes = [16, 16, 8], strides = [1, 1, 1]} : vector<18x18x8xf32> to vector<16x16x8xf32>
    %36 = vector.extract_strided_slice %2 {offsets = [1, 1, 0], sizes = [16, 16, 4], strides = [1, 1, 1]} : vector<18x18x4xf32> to vector<16x16x4xf32>
    %37 = tpu.concatenate %27, %28, %29, %30, %31, %32, %33, %34, %35, %36 in 2 : vector<16x16x8xf32>, vector<16x16x8xf32>, vector<16x16x8xf32>, vector<16x16x8xf32>, vector<16x16x8xf32>, vector<16x16x8xf32>, vector<16x16x8xf32>, vector<16x16x8xf32>, vector<16x16x8xf32>, vector<16x16x4xf32> -> vector<16x16x76xf32>
    %38 = vector.shape_cast %37 : vector<16x16x76xf32> to vector<256x76xf32>
    %39 = arith.truncf %38 : vector<256x76xf32> to vector<256x76xbf16>
    %c0_10 = arith.constant 0 : index
    %c0_11 = arith.constant 0 : index
    %40 = vector.load %arg4[%c0_10, %c0_11] : memref<8x76xbf16, #tpu.memory_space<vmem>>, vector<8x76xbf16>
    %cst_12 = arith.constant dense<0.000000e+00> : vector<8x256xf32>
    %41 = tpu.matmul %40, %39, %cst_12 {dimension_numbers = #tpu.dot_dimension_numbers<[1], [1], [0], [0], [0, 0, 1, 0], [], []>} : vector<8x76xbf16>, vector<256x76xbf16>, vector<8x256xf32> -> vector<8x256xf32>
    %c0_13 = arith.constant 0 : index
    %c0_14 = arith.constant 0 : index
    %42 = vector.load %arg5[%c0_13, %c0_14] : memref<8x1xf32, #tpu.memory_space<vmem>>, vector<8x1xf32>
    %43 = vector.broadcast %42 : vector<8x1xf32> to vector<8x256xf32>
    %44 = arith.addf %41, %43 : vector<8x256xf32>
    %cst_15 = arith.constant 0.000000e+00 : f32
    %45 = vector.broadcast %cst_15 : f32 to vector<8x256xf32>
    %46 = arith.maximumf %44, %45 : vector<8x256xf32>
    %c0_16 = arith.constant 0 : index
    %c0_17 = arith.constant 0 : index
    %c0_18 = arith.constant 0 : index
    %47 = vector.load %arg6[%c0_16, %c0_17, %c0_18] : memref<1x8x256xf32, #tpu.memory_space<vmem>>, vector<1x8x256xf32>
    %48 = vector.shape_cast %47 : vector<1x8x256xf32> to vector<8x256xf32>
    %49 = vector.shape_cast %46 : vector<8x256xf32> to vector<1x8x256xf32>
    tpu.vector_store %arg6[%c0_16, %c0_17, %c0_18], %49 {strides = array<i32>} : memref<1x8x256xf32, #tpu.memory_space<vmem>>, vector<1x8x256xf32>,
    return
  }
  func.func @transform_0(%arg0: i32) -> (i32, i32, i32, i32) {
    %c0_i32 = arith.constant 0 : i32
    %c0_i32_0 = arith.constant 0 : i32
    %c0_i32_1 = arith.constant 0 : i32
    %c0_i32_2 = arith.constant 0 : i32
    return %arg0, %c0_i32, %c0_i32_0, %c0_i32_1 : i32, i32, i32, i32
  }
  func.func @transform_1(%arg0: i32) -> (i32, i32) {
    %c0_i32 = arith.constant 0 : i32
    %c0_i32_0 = arith.constant 0 : i32
    %c0_i32_1 = arith.constant 0 : i32
    return %c0_i32, %c0_i32_0 : i32, i32
  }
  func.func @transform_2(%arg0: i32) -> (i32, i32) {
    %c0_i32 = arith.constant 0 : i32
    %c0_i32_0 = arith.constant 0 : i32
    %c0_i32_1 = arith.constant 0 : i32
    return %c0_i32, %c0_i32_0 : i32, i32
  }
  func.func @transform_3(%arg0: i32) -> (i32, i32) {
    %c0_i32 = arith.constant 0 : i32
    %c0_i32_0 = arith.constant 0 : i32
    %c0_i32_1 = arith.constant 0 : i32
    return %c0_i32, %c0_i32_0 : i32, i32
  }
  func.func @transform_4(%arg0: i32) -> (i32, i32) {
    %c0_i32 = arith.constant 0 : i32
    %c0_i32_0 = arith.constant 0 : i32
    %c0_i32_1 = arith.constant 0 : i32
    return %c0_i32, %c0_i32_0 : i32, i32
  }
  func.func @transform_5(%arg0: i32) -> (i32, i32, i32) {
    %c0_i32 = arith.constant 0 : i32
    %c0_i32_0 = arith.constant 0 : i32
    %c0_i32_1 = arith.constant 0 : i32
    return %arg0, %c0_i32, %c0_i32_0 : i32, i32, i32
  }
}

</mosaic_0001>

<bundles_post_ra>
// kernel: tpu_custom_call.1
= control target key start
LH: loop header
LB: loop body
LE: loop exit
PB: predicated region body
PF: predicated region fallthrough
CT: control target
= control target key end

     0   :  { %10 = vsyncpa [#allocation3], 0  ;;  %s8704_s0 = inlined_call_operand.vmem [shape: bf16[2,18,18,4], index: 0, kind: input, shape index: {}]   ;;  %s8705_s1 = inlined_call_operand.vmem [shape: bf16[36,8], index: 1, kind: input, shape index: {}]   ;;  %s8706_s2 = inlined_call_operand.vmem [shape: f32[1,8], index: 2, kind: input, shape index: {}]   ;;  %s8707_s3 = inlined_call_operand.vmem [shape: bf16[8,76], index: 3, kind: input, shape index: {}]   ;;  %s8708_s4 = inlined_call_operand.vmem [shape: f32[8,1], index: 4, kind: input, shape index: {}]   ;;  %s8709_s5 = inlined_call_operand.hbm [shape: f32[2,8,256], index: 5, kind: output, shape index: {}]  }
   0x1   :  { %12 = vsyncpa [#allocation3 + $0x1], 0  ;;  %s5299_s18 = smov 0   ;;  %s5301_s19 = smov 0  }
   0x2   :  { %s5303_s20 = smov 0   ;;  %s5305_s21 = smov 0  }
   0x3 LB: > { %s5320_s22 = sadd.s32 4294967295, %s5251_s21   ;;  %s3611_s23 = sadd.s32 4294967294, %s5251_s21   ;;  %s5251_s21 = sphi %s5305_s21, %s9359_s21   ;;  %s5247_s20 = sphi %s5303_s20, %s9358_s20   ;;  %s5243_s19 = sphi %s5301_s19, %s9357_s19   ;;  %s5239_s18 = sphi %s5299_s18, %s9356_s18  }
   0x4   : > { %s5324_s24 = sadd.s32 1, %s5251_s21   ;;  %s135_s25 = sadd.s32 1, %s5247_s20 }
   0x5   : > { %s132_s26 = ssub.s32 %s5251_s21, %s5324_s24  ;;  %p145_p0 = scmp.ne.s32.totalorder %s5247_s20, %s5243_s19 }
   0x6   : > { %p133_p1 = scmp.eq.s32.totalorder %s132_s26, 0  ;;  %p146_p2 = scmp.eq.s32.totalorder %s5320_s22, 1 }
   0x7   : > { %p151_p3 = scmp.ne.s32.totalorder %s5243_s19, %s5239_s18  ;;  %p152_p4 = scmp.eq.s32.totalorder %s3611_s23, 1 }
   0x8   : > { %s5335_s27 = scalar_select %p133_p1, %s5247_s20, %s135_s25  }
   0x9   : > { %p5337_p5 = por %p146_p2, %p145_p0  ;;  %p5341_p6 = por %p152_p4, %p151_p3 }
   0xa   : > { %p3614_p7 = scmp.ge.s32.totalorder %s5251_s21, 1  ;;  %p190_p8 = scmp.lt.s32.totalorder %s5251_s21, 3 }
   0xc   : > { %p191_p9 = pnand %p3614_p7, %p190_p8 }
   0xe   : > { %194 = sbr.rel (%p191_p9) target bundleno = 1199 (0x4af), region = 40 }
  0x13   : > { %p218_p10 = scmp.lt.s32.totalorder %s5320_s22, 1  ;;  %vm380_vm0 = vcmask 1046528   ;;  %s5253_s10 = smov 4   ;;  %vm557_vm1 = vcmask 1045504   ;;  %vm1692_vm2 = vcmask 1041408   ;;  %vm1336_vm3 = vcmask 31744  }
  0x14   : > { %s5254_s11 = smov 8   ;;  %s5255_s12 = smov 12   ;;  %vm1369_vm4 = vcmask 64512   ;;  %vm1922_vm5 = vcmask 1040384   ;;  %vm1402_vm6 = vcmask 97280   ;;  %vm1435_vm7 = vcmask 130048  }
  0x15   : > { %s219_s30 = scalar_select %p218_p10, %s5320_s22, 1  ;;  %vm1468_vm8 = vcmask 162816   ;;  %vm1501_vm9 = vcmask 195584   ;;  %vm1534_vm10 = vcmask 228352   ;;  %vm1567_vm11 = vcmask 261120  }
  0x16   : > { %s5256_s13 = smov 16   ;;  %s5257_s14 = smov 20   ;;  %vm1643_vm12 = vcmask 293888   ;;  %vm3252_vm13 = vcmask 326656   ;;  %vm3285_vm14 = vcmask 392192   ;;  %vm3318_vm15 = vcmask 457728  }
  0x17   : > { %s3772_s6 = smul.u32 216, %s219_s30  ;;  %s5258_s15 = smov 24  }
  0x18   : > { %s5259_s16 = smov 28   ;;  %s5260_s7 = smov 32  }
  0x19   : > { %s5352_s9 = scalar_lea.vmem %s8704_s0, %s3772_s6  ;;  %s5262_s8 = smov 48  }
  0x1a   : > { %v3680_v0 = vld [vmem:[%s5352_s9 + $0x18] sm:$0xff]   ;;  %v5356_v1 = vld [vmem:[%s5352_s9 + $0x20] sm:$0x1]  ;;  %v5367_v7 = vld [vmem:[%s5352_s9 + $0x8] sm:$0x1]  ;;  %s5266_s17 = smov 40  }
  0x1b   : > { %v3645_v2 = vld [vmem:[%s5352_s9] sm:$0xff]   ;;  %v5359_v3 = vunpack.c.l.bf16 %v3680_v0  ;;  %v5361_v4 = vunpack.c.h.bf16 %v3680_v0  ;;  %v8716_v5 = vunpack.c.l.bf16 %v5356_v1  ;;  %v5371_v9 = vld [vmem:[%s5352_s9 + $0x2c] sm:$0x1]  ;;  %v8719_v11 = vunpack.c.l.bf16 %v5367_v7  ;;  %v5392_v23 = vld [vmem:[%s5352_s9 + $0x14] sm:$0x1]  ;;  %s215_s25 = sand.u32 1, %s5243_s19  }
  0x1c   : > { %v5364_v6 = vunpack.c.l.bf16 %v3645_v2  ;;  %v233_v8 = vld [vmem:[%s5352_s9 + $0x24] sm:$0xff]   ;;  %v5373_v10 = vunpack.c.h.bf16 %v3645_v2  ;;  %v227_v14 = vld [vmem:[%s5352_s9 + $0xc] sm:$0xff]   ;;  %v8718_v21 = vunpack.c.l.bf16 %v5371_v9  ;;  %v239_v28 = vld [vmem:[%s5352_s9 + $0x3c] sm:$0xff]   ;;  %v8720_v37 = vunpack.c.l.bf16 %v5392_v23  ;;  %s3615_s26 = sshll.u32 %s215_s25, 4  ;;  %s3643_s30 = sshll.u32 %s5320_s22, 8 }
  0x1d   : > { %v5376_v12 = vunpack.c.l.bf16 %v233_v8  ;;  %v5378_v13 = vunpack.c.h.bf16 %v233_v8  ;;  %v391_v15 = vrot.slane %v5359_v3, 1  ;;  %v392_v16 = vrot.slane %v5361_v4, 1  ;;  %v5407_v33 = vld [vmem:[%s5352_s9 + $0x44] sm:$0x1]  ;;  %v3681_v38 = vld [vmem:[%s5352_s9 + $0x30] sm:$0xff]   ;;  %v3682_v58 = vld [vmem:[%s5352_s9 + $0x48] sm:$0xff]  }
  0x1e   : > { %v394_v17 = vrot.slane %v8716_v5, 1  ;;  %v381_v18 = vrot.slane %v5364_v6, 1  ;;  %v382_v19 = vrot.slane %v5373_v10, 1  ;;  %v384_v20 = vrot.slane %v8719_v11, 1  ;;  %v5423_v43 = vld [vmem:[%s5352_s9 + $0x38] sm:$0x1] }
  0x1f   : > { %v396_v22 = vrot.slane %v5376_v12, 1  ;;  %v393_v24 = vsel %vm380_vm0, %v391_v15, %v392_v16  ;;  %v397_v26 = vrot.slane %v5378_v13, 1  ;;  %v5397_v27 = vunpack.c.l.bf16 %v227_v14  ;;  %v245_v52 = vld [vmem:[%s5352_s9 + $0x54] sm:$0xff]   ;;  %v5445_v57 = vld [vmem:[%s5352_s9 + $0x5c] sm:$0x1]  ;;  %s217_s6 = scalar_lea.vmem [#allocation2], %s3615_s26 }
  0x20   : > { %v395_v25 = vsel %vm380_vm0, %v392_v16, %v394_v17  ;;  %v383_v30 = vsel %vm380_vm0, %v381_v18, %v382_v19  ;;  %v385_v31 = vsel %vm380_vm0, %v382_v19, %v384_v20  ;;  %v399_v32 = vrot.slane %v8718_v21, 1  ;;  %v251_v19 = vld [vmem:[%s5352_s9 + $0x6c] sm:$0xff]   ;;  %v5574_v5 = vld [vmem:[%s5352_s9 + $0x98] sm:$0x1]  ;;  %s5268_s22 = smov [#allocation2]  }
  0x21   : > { %8933 = vst [vmem:[#allocation5_spill] sm:$0xff] %v5397_v27  ;;  %v5400_v29 = vpack.i.bf16 %v395_v25, %v393_v24  ;;  %v3827_v34 = vpack.i.bf16 %v385_v31, %v383_v30  ;;  %v398_v35 = vsel %vm380_vm0, %v396_v22, %v397_v26  ;;  %v5410_v36 = vunpack.c.h.bf16 %v227_v14  ;;  %v5463_v14 = vld [vmem:[%s5352_s9 + $0x50] sm:$0x1]  ;;  %v269_v21 = vld [vmem:[%s5352_s9 + $0xb4] sm:$0xff]  }
  0x22   : > { %v400_v39 = vsel %vm380_vm0, %v397_v26, %v399_v32  ;;  %v386_v40 = vrot.slane %v5397_v27, 1  ;;  %v5418_v41 = vunpack.c.l.bf16 %v239_v28  ;;  %v5420_v42 = vunpack.c.h.bf16 %v239_v28  ;;  %v5480_v26 = vld [vmem:[%s5352_s9 + $0x74] sm:$0x1]  ;;  %v3683_v28 = vld [vmem:[%s5352_s9 + $0x60] sm:$0xff]  }
  0x23   : > { %8934 = vst [vmem:[#allocation6_spill] sm:$0xff] %v5400_v29  ;;  %8935 = vst [vmem:[#allocation7_spill] sm:$0xff] %v5410_v36  ;;  %3838 = vrot.lane.b32.xlu1 %v5400_v29, %s5253_s10  ;;  %3828 = vrot.lane.b32.xlu0 %v3827_v34, %s5253_s10  ;;  %v5426_v44 = vpack.i.bf16 %v400_v39, %v398_v35  ;;  %v387_v45 = vrot.slane %v5410_v36, 1  ;;  %v389_v46 = vrot.slane %v8720_v37, 1  ;;  %v8715_v47 = vunpack.c.l.bf16 %v5407_v33 }
  0x24   : > { %8936 = vst [vmem:[#allocation8_spill] sm:$0xff] %v5418_v41  ;;  %8937 = vst [vmem:[#allocation9_spill] sm:$0xff] %v5420_v42  ;;  %v406_v48 = vrot.slane %v5418_v41, 1  ;;  %v407_v49 = vrot.slane %v5420_v42, 1  ;;  %v5434_v50 = vunpack.c.l.bf16 %v3681_v38  ;;  %v5436_v51 = vunpack.c.h.bf16 %v3681_v38 }
  0x25   : > { %8938 = vst [vmem:[#allocation10_spill] sm:$0xff] %v5426_v44  ;;  %v388_v53 = vsel %vm380_vm0, %v386_v40, %v387_v45  ;;  %v390_v54 = vsel %vm380_vm0, %v387_v45, %v389_v46  ;;  %v409_v55 = vrot.slane %v8715_v47, 1  ;;  %v8714_v56 = vunpack.c.l.bf16 %v5423_v43  ;;  %v5498_v45 = vld [vmem:[%s5352_s9 + $0x68] sm:$0x1] }
  0x26   : > { %8939 = vst [vmem:[#allocation11_spill] sm:$0xff] %v5434_v50  ;;  %8940 = vst [vmem:[#allocation12_spill] sm:$0xff] %v5436_v51  ;;  %v5450_v59 = vpack.i.bf16 %v390_v54, %v388_v53  ;;  %v408_v60 = vsel %vm380_vm0, %v406_v48, %v407_v49  ;;  %v401_v61 = vrot.slane %v5434_v50, 1  ;;  %v402_v62 = vrot.slane %v5436_v51, 1  ;;  %v257_v53 = vld [vmem:[%s5352_s9 + $0x84] sm:$0xff]  }
  0x27   : > { %3843 = vrot.lane.b32.xlu1 %v5426_v44, %s5253_s10  ;;  %v410_v63 = vsel %vm380_vm0, %v407_v49, %v409_v55  ;;  %v404_v0 = vrot.slane %v8714_v56, 1  ;;  %v5458_v2 = vunpack.c.l.bf16 %v245_v52  ;;  %v5460_v8 = vunpack.c.h.bf16 %v245_v52  ;;  %v5615_v44 = vld [vmem:[%s5352_s9 + $0xb0] sm:$0x1] }
  0x28   : > { %8941 = vst [vmem:[#allocation13_spill] sm:$0xff] %v5450_v59  ;;  %3833 = vrot.lane.b32.xlu0 %v5450_v59, %s5253_s10  ;;  %v5467_v15 = vpack.i.bf16 %v410_v63, %v408_v60  ;;  %v403_v16 = vsel %vm380_vm0, %v401_v61, %v402_v62  ;;  %v8713_v17 = vunpack.c.l.bf16 %v5445_v57  ;;  %v5471_v18 = vunpack.c.l.bf16 %v3682_v58 }
  0x29   : > { %8942 = vst [vmem:[#allocation14_spill] sm:$0xff] %v5458_v2  ;;  %8943 = vst [vmem:[#allocation15_spill] sm:$0xff] %v5460_v8  ;;  %v405_v20 = vsel %vm380_vm0, %v402_v62, %v404_v0  ;;  %v416_v22 = vrot.slane %v5458_v2, 1  ;;  %v417_v24 = vrot.slane %v5460_v8, 1  ;;  %v5477_v25 = vunpack.c.h.bf16 %v3682_v58 }
  0x2a   : > { %8944 = vst [vmem:[#allocation16_spill] sm:$0xff] %v5467_v15  ;;  %8945 = vst [vmem:[#allocation17_spill] sm:$0xff] %v5471_v18  ;;  %v5485_v30 = vpack.i.bf16 %v405_v20, %v403_v16  ;;  %v419_v31 = vrot.slane %v8713_v17, 1  ;;  %v8712_v32 = vunpack.c.l.bf16 %v5463_v14  ;;  %v411_v34 = vrot.slane %v5471_v18, 1  ;;  %v5521_v16 = vld [vmem:[%s5352_s9 + $0x8c] sm:$0x1] }
  0x2b   : > { %8946 = vst [vmem:[#allocation18_spill] sm:$0xff] %v5477_v25  ;;  %3853 = vrot.lane.b32.xlu1 %v5467_v15, %s5253_s10  ;;  %v418_v35 = vsel %vm380_vm0, %v416_v22, %v417_v24  ;;  %v412_v38 = vrot.slane %v5477_v25, 1  ;;  %v5493_v39 = vunpack.c.l.bf16 %v251_v19  ;;  %v5495_v40 = vunpack.c.h.bf16 %v251_v19  ;;  %v3684_v19 = vld [vmem:[%s5352_s9 + $0x78] sm:$0xff]  }
  0x2c   : > { %8947 = vst [vmem:[#allocation19_spill] sm:$0xff] %v5485_v30  ;;  %3848 = vrot.lane.b32.xlu0 %v5485_v30, %s5253_s10  ;;  %v420_v46 = vsel %vm380_vm0, %v417_v24, %v419_v31  ;;  %v414_v48 = vrot.slane %v8712_v32, 1  ;;  %v8711_v49 = vunpack.c.l.bf16 %v5480_v26  ;;  %v5506_v52 = vunpack.c.l.bf16 %v3683_v28  ;;  %v5556_v32 = vld [vmem:[%s5352_s9 + $0xa4] sm:$0x1] }
  0x2d   : > { %8948 = vst [vmem:[#allocation20_spill] sm:$0xff] %v5493_v39  ;;  %8949 = vst [vmem:[#allocation21_spill] sm:$0xff] %v5495_v40  ;;  %v5509_v54 = vpack.i.bf16 %v420_v46, %v418_v35  ;;  %v413_v55 = vsel %vm380_vm0, %v411_v34, %v412_v38  ;;  %v426_v58 = vrot.slane %v5493_v39, 1  ;;  %v427_v60 = vrot.slane %v5495_v40, 1  ;;  %v5539_v46 = vld [vmem:[%s5352_s9 + $0x80] sm:$0x1] }
  0x2e   : > { %8950 = vst [vmem:[#allocation22_spill] sm:$0xff] %v5506_v52  ;;  %v415_v61 = vsel %vm380_vm0, %v412_v38, %v414_v48  ;;  %v429_v62 = vrot.slane %v8711_v49, 1  ;;  %v5517_v63 = vunpack.c.h.bf16 %v3683_v28  ;;  %v8710_v0 = vunpack.c.l.bf16 %v5498_v45 }
  0x2f   : > { %8951 = vst [vmem:[#allocation23_spill] sm:$0xff] %v5509_v54  ;;  %3863 = vrot.lane.b32.xlu1 %v5509_v54, %s5253_s10  ;;  %v5526_v20 = vpack.i.bf16 %v415_v61, %v413_v55  ;;  %v428_v22 = vsel %vm380_vm0, %v426_v58, %v427_v60  ;;  %v421_v24 = vrot.slane %v5506_v52, 1  ;;  %v5530_v31 = vunpack.c.l.bf16 %v257_v53  ;;  %v263_v61 = vld [vmem:[%s5352_s9 + $0x9c] sm:$0xff]  }
  0x30   : > { %8952 = vst [vmem:[#allocation24_spill] sm:$0xff] %v5517_v63  ;;  %v430_v28 = vsel %vm380_vm0, %v427_v60, %v429_v62  ;;  %v422_v34 = vrot.slane %v5517_v63, 1  ;;  %v424_v35 = vrot.slane %v8710_v0, 1  ;;  %v5536_v38 = vunpack.c.h.bf16 %v257_v53 }
  0x31   : > { %8953 = vst [vmem:[#allocation25_spill] sm:$0xff] %v5526_v20  ;;  %8954 = vst [vmem:[#allocation26_spill] sm:$0xff] %v5530_v31  ;;  %3858 = vrot.lane.b32.xlu0 %v5526_v20, %s5253_s10  ;;  %v5543_v48 = vpack.i.bf16 %v430_v28, %v428_v22  ;;  %v8717_v55 = vunpack.c.l.bf16 %v5521_v16  ;;  %v436_v58 = vrot.slane %v5530_v31, 1  ;;  %v5547_v60 = vunpack.c.l.bf16 %v3684_v19  ;;  %v3685_v22 = vld [vmem:[%s5352_s9 + $0x90] sm:$0xff]  }
  0x32   : > { %8955 = vst [vmem:[#allocation27_spill] sm:$0xff] %v5536_v38  ;;  %v423_v62 = vsel %vm380_vm0, %v421_v24, %v422_v34  ;;  %v425_v53 = vsel %vm380_vm0, %v422_v34, %v424_v35  ;;  %v437_v0 = vrot.slane %v5536_v38, 1  ;;  %v5553_v49 = vunpack.c.h.bf16 %v3684_v19 }
  0x33   : > { %8956 = vst [vmem:[#allocation28_spill] sm:$0xff] %v5543_v48  ;;  %8957 = vst [vmem:[#allocation29_spill] sm:$0xff] %v5547_v60  ;;  %3873 = vrot.lane.b32.xlu1 %v5543_v48, %s5253_s10  ;;  %v5561_v28 = vpack.i.bf16 %v425_v53, %v423_v62  ;;  %v439_v17 = vrot.slane %v8717_v55, 1  ;;  %v8725_v24 = vunpack.c.l.bf16 %v5539_v46  ;;  %v431_v34 = vrot.slane %v5547_v60, 1 }
  0x34   : > { %8958 = vst [vmem:[#allocation30_spill] sm:$0xff] %v5553_v49  ;;  %v438_v35 = vsel %vm380_vm0, %v436_v58, %v437_v0  ;;  %v432_v19 = vrot.slane %v5553_v49, 1  ;;  %v5569_v56 = vunpack.c.l.bf16 %v263_v61  ;;  %v5571_v47 = vunpack.c.h.bf16 %v263_v61 }
  0x35   : > { %8959 = vst [vmem:[#allocation31_spill] sm:$0xff] %v5561_v28  ;;  %3868 = vrot.lane.b32.xlu0 %v5561_v28, %s5253_s10  ;;  %v440_v62 = vsel %vm380_vm0, %v437_v0, %v439_v17  ;;  %v434_v53 = vrot.slane %v8725_v24, 1  ;;  %v8730_v58 = vunpack.c.l.bf16 %v5556_v32  ;;  %v5582_v55 = vunpack.c.l.bf16 %v3685_v22  ;;  %v5597_v28 = vld [vmem:[%s5352_s9 + $0xbc] sm:$0x1] }
  0x36   : > { %8960 = vst [vmem:[#allocation32_spill] sm:$0xff] %v5569_v56  ;;  %8961 = vst [vmem:[#allocation33_spill] sm:$0xff] %v5571_v47  ;;  %v5585_v61 = vpack.i.bf16 %v440_v62, %v438_v35  ;;  %v433_v11 = vsel %vm380_vm0, %v431_v34, %v432_v19  ;;  %v446_v37 = vrot.slane %v5569_v56, 1  ;;  %v447_v48 = vrot.slane %v5571_v47, 1  ;;  %v3686_v35 = vld [vmem:[%s5352_s9 + $0xa8] sm:$0xff]  }
  0x37   : > { %8962 = vst [vmem:[#allocation34_spill] sm:$0xff] %v5582_v55  ;;  %v435_v54 = vsel %vm380_vm0, %v432_v19, %v434_v53  ;;  %v449_v17 = vrot.slane %v8730_v58, 1  ;;  %v5593_v0 = vunpack.c.h.bf16 %v3685_v22  ;;  %v8737_v24 = vunpack.c.l.bf16 %v5574_v5 }
  0x38   : > { %8963 = vst [vmem:[#allocation35_spill] sm:$0xff] %v5585_v61  ;;  %3883 = vrot.lane.b32.xlu1 %v5585_v61, %s5253_s10  ;;  %v5602_v34 = vpack.i.bf16 %v435_v54, %v433_v11  ;;  %v448_v62 = vsel %vm380_vm0, %v446_v37, %v447_v48  ;;  %v441_v15 = vrot.slane %v5582_v55, 1  ;;  %v5606_v19 = vunpack.c.l.bf16 %v269_v21 }
  0x39   : > { %8964 = vst [vmem:[#allocation36_spill] sm:$0xff] %v5593_v0  ;;  %v450_v53 = vsel %vm380_vm0, %v447_v48, %v449_v17  ;;  %v442_v22 = vrot.slane %v5593_v0, 1  ;;  %v444_v58 = vrot.slane %v8737_v24, 1  ;;  %v5612_v20 = vunpack.c.h.bf16 %v269_v21 }
  0x3a   : > { %8965 = vst [vmem:[#allocation37_spill] sm:$0xff] %v5602_v34  ;;  %8966 = vst [vmem:[#allocation38_spill] sm:$0xff] %v5606_v19  ;;  %3878 = vrot.lane.b32.xlu0 %v5602_v34, %s5253_s10  ;;  %v5619_v11 = vpack.i.bf16 %v450_v53, %v448_v62  ;;  %v8742_v37 = vunpack.c.l.bf16 %v5597_v28  ;;  %v456_v54 = vrot.slane %v5606_v19, 1  ;;  %v5623_v61 = vunpack.c.l.bf16 %v3686_v35 }
  0x3b   : > { %8967 = vst [vmem:[#allocation39_spill] sm:$0xff] %v5612_v20  ;;  %v443_v48 = vsel %vm380_vm0, %v441_v15, %v442_v22  ;;  %v445_v17 = vsel %vm380_vm0, %v442_v22, %v444_v58  ;;  %v457_v21 = vrot.slane %v5612_v20, 1  ;;  %v5628_v24 = vunpack.c.h.bf16 %v3686_v35 }
  0x3c   : > { %8968 = vst [vmem:[#allocation40_spill] sm:$0xff] %v5619_v11  ;;  %8969 = vst [vmem:[#allocation41_spill] sm:$0xff] %v5623_v61  ;;  %3893 = vrot.lane.b32.xlu1 %v5619_v11, %s5253_s10  ;;  %v5632_v34 = vpack.i.bf16 %v445_v17, %v443_v48  ;;  %v459_v62 = vrot.slane %v8742_v37, 1  ;;  %v8755_v53 = vunpack.c.l.bf16 %v5615_v44  ;;  %v451_v30 = vrot.slane %v5623_v61, 1 }
  0x3d   : > { %8970 = vst [vmem:[#allocation42_spill] sm:$0xff] %v5628_v24  ;;  %v458_v15 = vsel %vm380_vm0, %v456_v54, %v457_v21  ;;  %v452_v58 = vrot.slane %v5628_v24, 1  ;;  %v563_v22 = vrot.slane %v5397_v27, 2  ;;  %v564_v35 = vrot.slane %v5410_v36, 2 }
  0x3e   : > { %8971 = vst [vmem:[#allocation43_spill] sm:$0xff] %v5632_v34  ;;  %3888 = vrot.lane.b32.xlu0 %v5632_v34, %s5253_s10  ;;  %v460_v48 = vsel %vm380_vm0, %v457_v21, %v459_v62  ;;  %v454_v17 = vrot.slane %v8755_v53, 1  ;;  %v8972_v37 = vunpack.c.l.bf16 %v5392_v23  ;;  %v558_v59 = vrot.slane %v5364_v6, 2 }
  0x3f   : > { %v5650_v54 = vpack.i.bf16 %v460_v48, %v458_v15  ;;  %v453_v29 = vsel %vm380_vm0, %v451_v30, %v452_v58  ;;  %v565_v27 = vsel %vm557_vm1, %v563_v22, %v564_v35  ;;  %v559_v36 = vrot.slane %v5373_v10, 2 }
  0x40   : > { %v566_v11 = vrot.slane %v8972_v37, 2  ;;  %v455_v34 = vsel %vm380_vm0, %v452_v58, %v454_v17  ;;  %v8974_v62 = vunpack.c.l.bf16 %v5367_v7  ;;  %v573_v23 = vrot.slane %v5376_v12, 2 }
  0x41   : > { %8973 = vst [vmem:[#allocation44_spill] sm:$0xff] %v5650_v54  ;;  %3903 = vrot.lane.b32.xlu1 %v5650_v54, %s5253_s10  ;;  %v5662_v37 = vpack.i.bf16 %v455_v34, %v453_v29  ;;  %v560_v30 = vsel %vm557_vm1, %v558_v59, %v559_v36  ;;  %v574_v22 = vrot.slane %v5378_v13, 2  ;;  %v568_v7 = vrot.slane %v5359_v3, 2 }
  0x42   : > { %v567_v21 = vsel %vm557_vm1, %v564_v35, %v566_v11  ;;  %v561_v53 = vrot.slane %v8974_v62, 2  ;;  %v8976_v11 = vunpack.c.l.bf16 %v5371_v9  ;;  %v569_v48 = vrot.slane %v5361_v4, 2 }
  0x43   : > { %8975 = vst [vmem:[#allocation45_spill] sm:$0xff] %v5662_v37  ;;  %v5664_v15 = vpack.i.bf16 %v567_v21, %v565_v27  ;;  %3898 = vrot.lane.b32.xlu0 %v5662_v37, %s5253_s10  ;;  %v575_v27 = vsel %vm557_vm1, %v573_v23, %v574_v22  ;;  %v8977_v34 = vunpack.c.l.bf16 %v5356_v1  ;;  %v583_v17 = vrot.slane %v5418_v41, 2  ;;  %s5264_s10 = smov 64  }
  0x44   : > { %v562_v58 = vsel %vm557_vm1, %v559_v36, %v561_v53  ;;  %v576_v35 = vrot.slane %v8976_v11, 2  ;;  %v570_v9 = vsel %vm557_vm1, %v568_v7, %v569_v48  ;;  %v584_v53 = vrot.slane %v5420_v42, 2 }
  0x45   : > { %v3907_v29 = vpack.i.bf16 %v562_v58, %v560_v30  ;;  %v571_v59 = vrot.slane %v8977_v34, 2  ;;  %v8978_v21 = vunpack.c.l.bf16 %v5407_v33  ;;  %3913 = vrot.lane.b32.xlu1 %v5664_v15, %s5254_s11  ;;  %v578_v23 = vrot.slane %v5434_v50, 2 }
  0x46   : > { %v577_v36 = vsel %vm557_vm1, %v574_v22, %v576_v35  ;;  %v579_v58 = vrot.slane %v5436_v51, 2  ;;  %v585_v22 = vsel %vm557_vm1, %v583_v17, %v584_v53  ;;  %v8979_v35 = vunpack.c.l.bf16 %v5423_v43 }
  0x47   : > { %v586_v62 = vrot.slane %v8978_v21, 2  ;;  %v5686_v30 = vpack.i.bf16 %v577_v36, %v575_v27  ;;  %v572_v1 = vsel %vm557_vm1, %v569_v48, %v571_v59  ;;  %3908 = vrot.lane.b32.xlu0 %v3907_v29, %s5254_s11  ;;  %v593_v34 = vrot.slane %v5458_v2, 2 }
  0x48   : > { %v581_v33 = vrot.slane %v8979_v35, 2  ;;  %v5696_v7 = vpack.i.bf16 %v572_v1, %v570_v9  ;;  %v580_v27 = vsel %vm557_vm1, %v578_v23, %v579_v58  ;;  %v594_v48 = vrot.slane %v5460_v8, 2 }
  0x49   : > { %v587_v11 = vsel %vm557_vm1, %v584_v53, %v586_v62  ;;  %v8980_v36 = vunpack.c.l.bf16 %v5445_v57  ;;  %v588_v53 = vrot.slane %v5471_v18, 2  ;;  %v589_v43 = vrot.slane %v5477_v25, 2  ;;  %3923 = vrot.lane.b32.xlu1 %v5686_v30, %s5254_s11 }
  0x4a   : > { %v582_v59 = vsel %vm557_vm1, %v579_v58, %v581_v33  ;;  %v5708_v29 = vpack.i.bf16 %v587_v11, %v585_v22  ;;  %v8981_v9 = vunpack.c.l.bf16 %v5463_v14  ;;  %v603_v62 = vrot.slane %v5493_v39, 2 }
  0x4b   : > { %v596_v17 = vrot.slane %v8980_v36, 2  ;;  %v595_v1 = vsel %vm557_vm1, %v593_v34, %v594_v48  ;;  %v604_v57 = vrot.slane %v5495_v40, 2  ;;  %v8982_v58 = vunpack.c.l.bf16 %v5480_v26  ;;  %3918 = vrot.lane.b32.xlu0 %v5696_v7, %s5254_s11 }
  0x4c   : > { %v591_v21 = vrot.slane %v8981_v9, 2  ;;  %v5720_v33 = vpack.i.bf16 %v582_v59, %v580_v27  ;;  %v598_v22 = vrot.slane %v5506_v52, 2  ;;  %v599_v14 = vrot.slane %v5517_v63, 2 }
  0x4d   : > { %v597_v23 = vsel %vm557_vm1, %v594_v48, %v596_v17  ;;  %v606_v35 = vrot.slane %v8982_v58, 2  ;;  %v590_v11 = vsel %vm557_vm1, %v588_v53, %v589_v43  ;;  %v8983_v48 = vunpack.c.l.bf16 %v5498_v45  ;;  %3933 = vrot.lane.b32.xlu1 %v5708_v29, %s5254_s11 }
  0x4e   : > { %v592_v34 = vsel %vm557_vm1, %v589_v43, %v591_v21  ;;  %v5730_v26 = vpack.i.bf16 %v597_v23, %v595_v1  ;;  %v605_v17 = vsel %vm557_vm1, %v603_v62, %v604_v57  ;;  %v613_v59 = vrot.slane %v5530_v31, 2 }
  0x4f   : > { %v601_v36 = vrot.slane %v8983_v48, 2  ;;  %v607_v27 = vsel %vm557_vm1, %v604_v57, %v606_v35  ;;  %v614_v9 = vrot.slane %v5536_v38, 2  ;;  %v8984_v53 = vunpack.c.l.bf16 %v5521_v16  ;;  %3928 = vrot.lane.b32.xlu0 %v5720_v33, %s5254_s11 }
  0x50   : > { %v5740_v45 = vpack.i.bf16 %v592_v34, %v590_v11  ;;  %v600_v43 = vsel %vm557_vm1, %v598_v22, %v599_v14  ;;  %v608_v62 = vrot.slane %v5547_v60, 2  ;;  %v609_v1 = vrot.slane %v5553_v49, 2 }
  0x51   : > { %v616_v58 = vrot.slane %v8984_v53, 2  ;;  %v602_v21 = vsel %vm557_vm1, %v599_v14, %v601_v36  ;;  %v8985_v23 = vunpack.c.l.bf16 %v5539_v46  ;;  %3943 = vrot.lane.b32.xlu1 %v5730_v26, %s5254_s11  ;;  %v5750_v16 = vpack.i.bf16 %v607_v27, %v605_v17 }
  0x52   : > { %v623_v35 = vrot.slane %v5569_v56, 2  ;;  %v624_v11 = vrot.slane %v5571_v47, 2  ;;  %v615_v22 = vsel %vm557_vm1, %v613_v59, %v614_v9  ;;  %v8986_v34 = vunpack.c.l.bf16 %v5556_v32 }
  0x53   : > { %v611_v57 = vrot.slane %v8985_v23, 2  ;;  %v617_v14 = vsel %vm557_vm1, %v614_v9, %v616_v58  ;;  %3938 = vrot.lane.b32.xlu0 %v5740_v45, %s5254_s11  ;;  %v5760_v46 = vpack.i.bf16 %v602_v21, %v600_v43  ;;  %v618_v36 = vrot.slane %v5582_v55, 2 }
  0x54   : > { %v626_v48 = vrot.slane %v8986_v34, 2  ;;  %v619_v17 = vrot.slane %v5593_v0, 2  ;;  %v610_v27 = vsel %vm557_vm1, %v608_v62, %v609_v1  ;;  %v8987_v59 = vunpack.c.l.bf16 %v5574_v5 }
  0x55   : > { %v612_v53 = vsel %vm557_vm1, %v609_v1, %v611_v57  ;;  %3953 = vrot.lane.b32.xlu1 %v5750_v16, %s5254_s11  ;;  %v5770_v32 = vpack.i.bf16 %v617_v14, %v615_v22  ;;  %v625_v9 = vsel %vm557_vm1, %v623_v35, %v624_v11  ;;  %v633_v43 = vrot.slane %v5606_v19, 2 }
  0x56   : > { %v621_v23 = vrot.slane %v8987_v59, 2  ;;  %v627_v58 = vsel %vm557_vm1, %v624_v11, %v626_v48  ;;  %v634_v21 = vrot.slane %v5612_v20, 2  ;;  %v8988_v62 = vunpack.c.l.bf16 %v5597_v28  ;;  %v3687_v59 = vld [vmem:[%s5352_s9 + $0xc0] sm:$0xff]  }
  0x57   : > { %3948 = vrot.lane.b32.xlu0 %v5760_v46, %s5254_s11  ;;  %v5780_v5 = vpack.i.bf16 %v612_v53, %v610_v27  ;;  %v620_v1 = vsel %vm557_vm1, %v618_v36, %v619_v17  ;;  %v628_v35 = vrot.slane %v5623_v61, 2  ;;  %v629_v11 = vrot.slane %v5628_v24, 2 }
  0x58   : > { %v636_v34 = vrot.slane %v8988_v62, 2  ;;  %v622_v57 = vsel %vm557_vm1, %v619_v17, %v621_v23  ;;  %v8989_v22 = vunpack.c.l.bf16 %v5615_v44  ;;  %v5790_v28 = vpack.i.bf16 %v627_v58, %v625_v9  ;;  %v274_v58 = vld [vmem:[%s5352_s9 + $0xc8] sm:$0x1] }
  0x59   : > { %3963 = vrot.lane.b32.xlu1 %v5770_v32, %s5254_s11  ;;  %v635_v48 = vsel %vm557_vm1, %v633_v43, %v634_v21  ;;  %v5796_v36 = vpack.i.bf16 %v622_v57, %v620_v1  ;;  %v630_v17 = vsel %vm557_vm1, %v628_v35, %v629_v11  ;;  %v5811_v9 = vpack.i.bf16 %v5361_v4, %v5359_v3  ;;  %v8990_v43 = vld [vmem:[#allocation5_spill] sm:$0xff] }
  0x5a   : > { %v631_v14 = vrot.slane %v8989_v22, 2  ;;  %v637_v27 = vsel %vm557_vm1, %v634_v21, %v636_v34  ;;  %v8991_v21 = vld [vmem:[#allocation7_spill] sm:$0xff]  ;;  %v3678_v34 = vunpack.c.l.bf16 %v3687_v59  ;;  %v3679_v1 = vunpack.c.h.bf16 %v3687_v59 }
  0x5b   : > { %3958 = vrot.lane.b32.xlu0 %v5780_v5, %s5254_s11  ;;  %v5802_v53 = vpack.i.bf16 %v637_v27, %v635_v48  ;;  %v3987_v62 = vpack.i.bf16 %v8991_v21, %v8990_v43  ;;  %v328_v57 = vunpack.c.l.bf16 %v274_v58  ;;  %v5829_v48 = vpack.i.bf16 %v5378_v13, %v5376_v12  ;;  %v9005_v43 = vld [vmem:[#allocation40_spill] sm:$0xff] }
  0x5c   : > { %v632_v44 = vsel %vm557_vm1, %v629_v11, %v631_v14  ;;  %v934_v35 = vrot.slane %v3678_v34, 2  ;;  %v5824_v11 = vpack.i.bf16 %v5436_v51, %v5434_v50  ;;  %v935_v22 = vrot.slane %v3679_v1, 2 }
  0x5d   : > { %3973 = vrot.lane.b32.xlu1 %v5790_v28, %s5254_s11  ;;  %v5807_v23 = vpack.i.bf16 %v632_v44, %v630_v17  ;;  %v937_v14 = vrot.slane %v328_v57, 2  ;;  %v5839_v59 = vpack.i.bf16 %v5477_v25, %v5471_v18  ;;  %v5845_v58 = vpack.i.bf16 %v5420_v42, %v5418_v41  ;;  %v9001_v25 = vld [vmem:[#allocation28_spill] sm:$0xff]  ;;  %v9003_v42 = vld [vmem:[#allocation35_spill] sm:$0xff] }
  0x5e   : > { %v936_v27 = vsel %vm557_vm1, %v934_v35, %v935_v22  ;;  %v5853_v35 = vpack.i.bf16 %v5517_v63, %v5506_v52  ;;  %v836_v18 = vrot.slane %v328_v57, 1 }
  0x5f   : > { %3968 = vrot.lane.b32.xlu0 %v5796_v36, %s5254_s11  ;;  %v938_v17 = vsel %vm557_vm1, %v935_v22, %v937_v14  ;;  %v5859_v22 = vpack.i.bf16 %v5460_v8, %v5458_v2  ;;  %v5865_v14 = vpack.i.bf16 %v5553_v49, %v5547_v60  ;;  %v5883_v60 = vpack.i.bf16 %v5536_v38, %v5530_v31  ;;  %v8998_v31 = vld [vmem:[#allocation31_spill] sm:$0xff] }
  0x60   : > { %v5833_v44 = vpack.i.bf16 %v938_v17, %v936_v27  ;;  %v5871_v27 = vpack.i.bf16 %v5495_v40, %v5493_v39  ;;  %v5877_v17 = vpack.i.bf16 %v5593_v0, %v5582_v55  ;;  %v5889_v49 = vpack.i.bf16 %v5628_v24, %v5623_v61  ;;  %v8992_v61 = vld [vmem:[#allocation6_spill] sm:$0xff]  ;;  %v8993_v24 = vld [vmem:[#allocation13_spill] sm:$0xff]  ;;  %v8999_v38 = vld [vmem:[#allocation23_spill] sm:$0xff] }
  0x61   : > { %3983 = vrot.lane.b32.xlu1 %v5802_v53, %s5254_s11  ;;  %v5895_v55 = vpack.i.bf16 %v5571_v47, %v5569_v56  ;;  %v5903_v0 = vpack.i.bf16 %v5612_v20, %v5606_v19  ;;  %v8994_v56 = vld [vmem:[#allocation19_spill] sm:$0xff]  ;;  %v8995_v47 = vld [vmem:[#allocation10_spill] sm:$0xff]  ;;  %v8996_v19 = vld [vmem:[#allocation25_spill] sm:$0xff]  ;;  %v833_v39 = vrot.slane %v3678_v34, 1  ;;  %v834_v40 = vrot.slane %v3679_v1, 1 }
  0x62   : > { %v8997_v20 = vld [vmem:[#allocation16_spill] sm:$0xff]  ;;  %v9002_v8 = vld [vmem:[#allocation43_spill] sm:$0xff] }
  0x63   : > { %3978 = vrot.lane.b32.xlu0 %v5807_v23, %s5254_s11  ;;  %v835_v51 = vsel %vm380_vm0, %v833_v39, %v834_v40  ;;  %v837_v41 = vsel %vm380_vm0, %v834_v40, %v836_v18 }
  0x65   : > { %3993 = vrot.lane.b32.xlu1 %v5811_v9, %s5255_s12 }
  0x67   : > { %3988 = vrot.lane.b32.xlu0 %v3987_v62, %s5255_s12  ;;  %v5847_v62 = vpack.i.bf16 %v3679_v1, %v3678_v34  ;;  %v5947_v1 = vpack.i.bf16 %v837_v41, %v835_v51 }
  0x69   : > { %4003 = vrot.lane.b32.xlu1 %v5824_v11, %s5255_s12  ;;  %9004 = vst [vmem:[#allocation46_spill] sm:$0xff] %v5947_v1 }
  0x6b   : > { %3998 = vrot.lane.b32.xlu0 %v5829_v48, %s5255_s12 }
  0x6d   : > { %4013 = vrot.lane.b32.xlu1 %v5839_v59, %s5255_s12 }
  0x6f   : > { %4008 = vrot.lane.b32.xlu0 %v5845_v58, %s5255_s12 }
  0x71   : > { %4023 = vrot.lane.b32.xlu1 %v5853_v35, %s5255_s12 }
  0x73   : > { %4018 = vrot.lane.b32.xlu0 %v5859_v22, %s5255_s12 }
  0x75   : > { %4033 = vrot.lane.b32.xlu1 %v5865_v14, %s5255_s12 }
  0x77   : > { %4028 = vrot.lane.b32.xlu0 %v5871_v27, %s5255_s12 }
  0x79   : > { %4043 = vrot.lane.b32.xlu1 %v5877_v17, %s5255_s12 }
  0x7b   : > { %4038 = vrot.lane.b32.xlu0 %v5883_v60, %s5255_s12 }
  0x7d   : > { %4053 = vrot.lane.b32.xlu1 %v5889_v49, %s5255_s12 }
  0x7f   : > { %4048 = vrot.lane.b32.xlu0 %v5895_v55, %s5255_s12 }
  0x81   : > { %4063 = vrot.lane.b32.xlu1 %v5847_v62, %s5255_s12 }
  0x83   : > { %4058 = vrot.lane.b32.xlu0 %v5903_v0, %s5255_s12  ;;  %s5265_s12 = smov 72  }
  0x85   : > { %4073 = vrot.lane.b32.xlu1 %v8992_v61, %s5256_s13 }
  0x87   : > { %4068 = vrot.lane.b32.xlu0 %v8993_v24, %s5256_s13  ;;  %v9000_v24 = vld [vmem:[#allocation37_spill] sm:$0xff] }
  0x89   : > { %4083 = vrot.lane.b32.xlu1 %v8994_v56, %s5256_s13 }
  0x8b   : > { %4078 = vrot.lane.b32.xlu0 %v8995_v47, %s5256_s13 }
  0x8d   : > { %4093 = vrot.lane.b32.xlu1 %v8996_v19, %s5256_s13 }
  0x8f   : > { %4088 = vrot.lane.b32.xlu0 %v8997_v20, %s5256_s13 }
  0x91   : > { %4103 = vrot.lane.b32.xlu1 %v8998_v31, %s5256_s13 }
  0x93   : > { %4098 = vrot.lane.b32.xlu0 %v8999_v38, %s5256_s13 }
  0x95   : > { %v5925_v52 = vpop.permute.xlu1 %3838  ;;  %4113 = vrot.lane.b32.xlu1 %v9000_v24, %s5256_s13  ;;  %v5929_v63 = vpop.permute.xlu0 %3828 }
  0x97   : > { %4108 = vrot.lane.b32.xlu0 %v9001_v25, %s5256_s13 }
  0x99   : > { %v5933_v2 = vpop.permute.xlu1 %3843  ;;  %4123 = vrot.lane.b32.xlu1 %v9002_v8, %s5256_s13 }
  0x9a   : > { %v5937_v50 = vpop.permute.xlu0 %3833 }
  0x9b   : > { %4118 = vrot.lane.b32.xlu0 %v9003_v42, %s5256_s13 }
  0x9d   : > { %v5943_v34 = vpop.permute.xlu1 %3853  ;;  %4133 = vrot.lane.b32.xlu1 %v5662_v37, %s5256_s13 }
  0x9e   : > { %v5949_v57 = vpop.permute.xlu0 %3848 }
  0x9f   : > { %4128 = vrot.lane.b32.xlu0 %v9005_v43, %s5256_s13 }
  0xa1   : > { %4143 = vrot.lane.b32.xlu1 %v5947_v1, %s5256_s13  ;;  %v5955_v39 = vpop.permute.xlu1 %3863 }
  0xa2   : > { %9006 = vst [vmem:[#allocation47_spill] sm:$0xff] %v5955_v39 }
  0xa3   : > { %4138 = vrot.lane.b32.xlu0 %v5650_v54, %s5256_s13  ;;  %v5959_v18 = vpop.permute.xlu0 %3858 }
  0xa4   : > { %9007 = vst [vmem:[#allocation48_spill] sm:$0xff] %v5959_v18 }
  0xa5   : > { %4153 = vrot.lane.b32.xlu1 %v5696_v7, %s5257_s14  ;;  %v5962_v41 = vpop.permute.xlu1 %3873 }
  0xa7   : > { %4148 = vrot.lane.b32.xlu0 %v5664_v15, %s5257_s14  ;;  %v5965_v51 = vpop.permute.xlu0 %3868 }
  0xa8   : > { %9008 = vst [vmem:[#allocation49_spill] sm:$0xff] %v5965_v51 }
  0xa9   : > { %4163 = vrot.lane.b32.xlu1 %v5720_v33, %s5257_s14 }
  0xaa   : > { %v5968_v40 = vpop.permute.xlu1 %3883 }
  0xab   : > { %9009 = vst [vmem:[#allocation50_spill] sm:$0xff] %v5968_v40  ;;  %4158 = vrot.lane.b32.xlu0 %v5686_v30, %s5257_s14 }
  0xac   : > { %v5971_v39 = vpop.permute.xlu0 %3878 }
  0xad   : > { %9010 = vst [vmem:[#allocation51_spill] sm:$0xff] %v5971_v39  ;;  %4173 = vrot.lane.b32.xlu1 %v5740_v45, %s5257_s14 }
  0xae   : > { %v5974_v18 = vpop.permute.xlu1 %3893 }
  0xaf   : > { %9011 = vst [vmem:[#allocation52_spill] sm:$0xff] %v5974_v18  ;;  %4168 = vrot.lane.b32.xlu0 %v5708_v29, %s5257_s14 }
  0xb0   : > { %v5977_v21 = vpop.permute.xlu0 %3888 }
  0xb1   : > { %9012 = vst [vmem:[#allocation53_spill] sm:$0xff] %v5977_v21  ;;  %4183 = vrot.lane.b32.xlu1 %v5760_v46, %s5257_s14 }
  0xb3   : > { %4178 = vrot.lane.b32.xlu0 %v5730_v26, %s5257_s14  ;;  %v5981_v15 = vpop.permute.xlu1 %3903 }
  0xb4   : > { %9013 = vst [vmem:[#allocation54_spill] sm:$0xff] %v5981_v15 }
  0xb5   : > { %v5983_v51 = vpop.permute.xlu0 %3898  ;;  %4193 = vrot.lane.b32.xlu1 %v5780_v5, %s5257_s14 }
  0xb6   : > { %9014 = vst [vmem:[#allocation55_spill] sm:$0xff] %v5983_v51 }
  0xb7   : > { %4188 = vrot.lane.b32.xlu0 %v5750_v16, %s5257_s14  ;;  %v5987_v39 = vpop.permute.xlu1 %3913 }
  0xb8   : > { %9015 = vst [vmem:[#allocation56_spill] sm:$0xff] %v5987_v39 }
  0xb9   : > { %v5989_v40 = vpop.permute.xlu0 %3908  ;;  %4203 = vrot.lane.b32.xlu1 %v5796_v36, %s5257_s14 }
  0xba   : > { %9016 = vst [vmem:[#allocation57_spill] sm:$0xff] %v5989_v40 }
  0xbb   : > { %4198 = vrot.lane.b32.xlu0 %v5770_v32, %s5257_s14  ;;  %v5993_v21 = vpop.permute.xlu1 %3923 }
  0xbd   : > { %v5995_v18 = vpop.permute.xlu0 %3918  ;;  %4213 = vrot.lane.b32.xlu1 %v5807_v23, %s5257_s14 }
  0xbe   : > { %9017 = vst [vmem:[#allocation58_spill] sm:$0xff] %v5995_v18 }
  0xbf   : > { %4208 = vrot.lane.b32.xlu0 %v5790_v28, %s5257_s14  ;;  %v5999_v51 = vpop.permute.xlu1 %3933 }
  0xc0   : > { %9018 = vst [vmem:[#allocation59_spill] sm:$0xff] %v5999_v51 }
  0xc1   : > { %v6001_v15 = vpop.permute.xlu0 %3928  ;;  %4223 = vrot.lane.b32.xlu1 %v5833_v44, %s5257_s14 }
  0xc3   : > { %4218 = vrot.lane.b32.xlu0 %v5802_v53, %s5257_s14  ;;  %v6005_v40 = vpop.permute.xlu1 %3943 }
  0xc4   : > { %9019 = vst [vmem:[#allocation60_spill] sm:$0xff] %v6005_v40 }
  0xc5   : > { %v6007_v39 = vpop.permute.xlu0 %3938  ;;  %4233 = vrot.lane.b32.xlu1 %v5829_v48, %s5258_s15 }
  0xc6   : > { %9020 = vst [vmem:[#allocation61_spill] sm:$0xff] %v6007_v39 }
  0xc7   : > { %4228 = vrot.lane.b32.xlu0 %v5811_v9, %s5258_s15  ;;  %v6013_v18 = vpop.permute.xlu1 %3953 }
  0xc9   : > { %v6015_v51 = vpop.permute.xlu0 %3948  ;;  %4243 = vrot.lane.b32.xlu1 %v5845_v58, %s5258_s15 }
  0xcb   : > { %4238 = vrot.lane.b32.xlu0 %v5824_v11, %s5258_s15  ;;  %v6021_v40 = vpop.permute.xlu1 %3963 }
  0xcd   : > { %v6023_v39 = vpop.permute.xlu0 %3958  ;;  %4253 = vrot.lane.b32.xlu1 %v5859_v22, %s5258_s15  ;;  %v275_v22 = vld [vmem:[%s5352_s9 + $0xcc] sm:$0xff]  }
  0xcf   : > { %4248 = vrot.lane.b32.xlu0 %v5839_v59, %s5258_s15  ;;  %v6029_v9 = vpop.permute.xlu1 %3973 }
  0xd1   : > { %v6031_v48 = vpop.permute.xlu0 %3968  ;;  %4263 = vrot.lane.b32.xlu1 %v5871_v27, %s5258_s15  ;;  %v6052_v27 = vunpack.c.l.bf16 %v275_v22 }
  0xd2   : > { %9021 = vst [vmem:[#allocation62_spill] sm:$0xff] %v6031_v48 }
  0xd3   : > { %4258 = vrot.lane.b32.xlu0 %v5853_v35, %s5258_s15  ;;  %v6037_v11 = vpop.permute.xlu1 %3983  ;;  %v6054_v35 = vunpack.c.h.bf16 %v275_v22 }
  0xd5   : > { %v6039_v58 = vpop.permute.xlu0 %3978  ;;  %4273 = vrot.lane.b32.xlu1 %v5883_v60, %s5258_s15 }
  0xd6   : > { %9022 = vst [vmem:[#allocation63_spill] sm:$0xff] %v6039_v58 }
  0xd7   : > { %4268 = vrot.lane.b32.xlu0 %v5865_v14, %s5258_s15  ;;  %v6046_v59 = vpop.permute.xlu1 %3993  ;;  %v4302_v14 = vpack.i.bf16 %v6054_v35, %v6052_v27 }
  0xd9   : > { %v6048_v48 = vpop.permute.xlu0 %3988  ;;  %4283 = vrot.lane.b32.xlu1 %v5895_v55, %s5258_s15 }
  0xdb   : > { %4278 = vrot.lane.b32.xlu0 %v5877_v17, %s5258_s15  ;;  %v6058_v58 = vpop.permute.xlu1 %4003 }
  0xdc   : > { %9023 = vst [vmem:[#allocation64_spill] sm:$0xff] %v6058_v58  ;;  %v9110_v58 = vld [vmem:[#allocation41_spill] sm:$0xff] }
  0xdd   : > { %v6060_v60 = vpop.permute.xlu0 %3998  ;;  %4293 = vrot.lane.b32.xlu1 %v5903_v0, %s5258_s15 }
  0xde   : > { %9024 = vst [vmem:[#allocation65_spill] sm:$0xff] %v6060_v60 }
  0xdf   : > { %4288 = vrot.lane.b32.xlu0 %v5889_v49, %s5258_s15  ;;  %v6068_v55 = vpop.permute.xlu1 %4013 }
  0xe0   : > { %9025 = vst [vmem:[#allocation66_spill] sm:$0xff] %v6068_v55 }
  0xe1   : > { %v6070_v22 = vpop.permute.xlu0 %4008  ;;  %4303 = vrot.lane.b32.xlu1 %v4302_v14, %s5258_s15 }
  0xe2   : > { %9026 = vst [vmem:[#allocation67_spill] sm:$0xff] %v6070_v22 }
  0xe3   : > { %4298 = vrot.lane.b32.xlu0 %v5847_v62, %s5258_s15  ;;  %v6075_v17 = vpop.permute.xlu1 %4023  ;;  %v5188_v62 = vld [vmem:[%s8705_s1 + $0x10] ss:$0 sps:$4 sm:$0x33]  }
  0xe4   : > { %9027 = vst [vmem:[#allocation68_spill] sm:$0xff] %v6075_v17  ;;  %3763 = vmatprep.subr.msk.bf16.mxu0 %vm1692_vm2, %v5188_v62 }
  0xe5   : > { %v6077_v60 = vpop.permute.xlu0 %4018  ;;  %4313 = vrot.lane.b32.xlu1 %v8995_v47, %s5259_s16 }
  0xe6   : > { %9028 = vst [vmem:[#allocation69_spill] sm:$0xff] %v6077_v60  ;;  %v9107_v60 = vld [vmem:[#allocation39_spill] sm:$0xff] }
  0xe7   : > { %4308 = vrot.lane.b32.xlu0 %v8992_v61, %s5259_s16  ;;  %v6083_v49 = vpop.permute.xlu1 %4033  ;;  %v1694_v61 = vsel %vm1692_vm2, %v5188_v62, 0  ;;  %vm3440_vm2 = vcmask 621568  }
  0xe8   : > { %9029 = vst [vmem:[#allocation70_spill] sm:$0xff] %v6083_v49  ;;  %3726 = vmatpush3.bf16.msra.mxu0 %v1694_v61  ;;  %v5190_v61 = vld [vmem:[%s8705_s1] sm:$0xff]  }
  0xe9   : > { %v6085_v0 = vpop.permute.xlu0 %4028  ;;  %4323 = vrot.lane.b32.xlu1 %v8997_v20, %s5259_s16  ;;  %v5189_v20 = vld [vmem:[%s8705_s1 + $0x8] sm:$0xff]  }
  0xea   : > { %9030 = vst [vmem:[#allocation71_spill] sm:$0xff] %v6085_v0  ;;  %3727 = vmatprep.subr.bf16.mxu0 %v5189_v20 }
  0xeb   : > { %4318 = vrot.lane.b32.xlu0 %v8994_v56, %s5259_s16  ;;  %v6094_v14 = vpop.permute.xlu1 %4043 }
  0xec   : > { %9031 = vst [vmem:[#allocation72_spill] sm:$0xff] %v6094_v14  ;;  %3728 = vmatpush3.bf16.msra.mxu0 %v5189_v20 }
  0xed   : > { %v6096_v47 = vpop.permute.xlu0 %4038  ;;  %4333 = vrot.lane.b32.xlu1 %v8999_v38, %s5259_s16  ;;  %3729 = vmatprep.subr.bf16.mxu0 %v5190_v61 }
  0xee   : > { %9032 = vst [vmem:[#allocation73_spill] sm:$0xff] %v6096_v47  ;;  %v9105_v47 = vld [vmem:[#allocation59_spill] sm:$0xff] }
  0xef   : > { %4328 = vrot.lane.b32.xlu0 %v8996_v19, %s5259_s16  ;;  %v6105_v0 = vpop.permute.xlu1 %4053  ;;  %v3935_v14 = vunpack.i.l.bf16 %v9105_v47 }
  0xf0   : > { %9033 = vst [vmem:[#allocation74_spill] sm:$0xff] %v6105_v0  ;;  %3730 = vmatpush3.bf16.msra.mxu0 %v5190_v61 }
  0xf1   : > { %v6107_v56 = vpop.permute.xlu0 %4048  ;;  %4343 = vrot.lane.b32.xlu1 %v9001_v25, %s5259_s16 }
  0xf2   : > { %9034 = vst [vmem:[#allocation75_spill] sm:$0xff] %v6107_v56  ;;  %v9104_v56 = vld [vmem:[#allocation58_spill] sm:$0xff] }
  0xf3   : > { %4338 = vrot.lane.b32.xlu0 %v8998_v31, %s5259_s16  ;;  %v6116_v62 = vpop.permute.xlu1 %4063  ;;  %v3920_v0 = vunpack.i.l.bf16 %v9104_v56 }
  0xf4   : > { %9035 = vst [vmem:[#allocation76_spill] sm:$0xff] %v6116_v62  ;;  %v5261_v62 = vmov 0.0  }
  0xf5   : > { %v6118_v19 = vpop.permute.xlu0 %4058  ;;  %4353 = vrot.lane.b32.xlu1 %v9003_v42, %s5259_s16 }
  0xf6   : > { %9036 = vst [vmem:[#allocation77_spill] sm:$0xff] %v6118_v19 }
  0xf7   : > { %4348 = vrot.lane.b32.xlu0 %v9000_v24, %s5259_s16  ;;  %v6124_v20 = vpop.permute.xlu1 %4073 }
  0xf8   : > { %9037 = vst [vmem:[#allocation78_spill] sm:$0xff] %v6124_v20  ;;  %v9101_v20 = vld [vmem:[#allocation57_spill] sm:$0xff] }
  0xf9   : > { %v6126_v25 = vpop.permute.xlu0 %4068  ;;  %4363 = vrot.lane.b32.xlu1 %v9005_v43, %s5259_s16 }
  0xfa   : > { %9038 = vst [vmem:[#allocation79_spill] sm:$0xff] %v6126_v25  ;;  %v9100_v25 = vld [vmem:[#allocation56_spill] sm:$0xff] }
  0xfb   : > { %4358 = vrot.lane.b32.xlu0 %v9002_v8, %s5259_s16  ;;  %v6132_v38 = vpop.permute.xlu1 %4083 }
  0xfc   : > { %9039 = vst [vmem:[#allocation80_spill] sm:$0xff] %v6132_v38 }
  0xfd   : > { %v6134_v31 = vpop.permute.xlu0 %4078  ;;  %4373 = vrot.lane.b32.xlu1 %v5686_v30, %s5260_s7 }
  0xfe   : > { %9040 = vst [vmem:[#allocation81_spill] sm:$0xff] %v6134_v31  ;;  %v9087_v31 = vld [vmem:[#allocation27_spill] sm:$0xff] }
  0xff   : > { %4368 = vrot.lane.b32.xlu0 %v5696_v7, %s5260_s7  ;;  %v6140_v61 = vpop.permute.xlu1 %4093 }
 0x100   : > { %9041 = vst [vmem:[#allocation82_spill] sm:$0xff] %v6140_v61 }
 0x101   : > { %v6142_v24 = vpop.permute.xlu0 %4088  ;;  %4383 = vrot.lane.b32.xlu1 %v5708_v29, %s5260_s7 }
 0x102   : > { %9042 = vst [vmem:[#allocation83_spill] sm:$0xff] %v6142_v24 }
 0x103   : > { %4378 = vrot.lane.b32.xlu0 %v5720_v33, %s5260_s7  ;;  %v6148_v42 = vpop.permute.xlu1 %4103  ;;  %v277_v33 = vld [vmem:[%s5352_s9 + $0xd4] sm:$0x1]  ;;  %s5263_s9 = smov 56  }
 0x104   : > { %9043 = vst [vmem:[#allocation84_spill] sm:$0xff] %v6148_v42 }
 0x105   : > { %v6150_v8 = vpop.permute.xlu0 %4098  ;;  %4393 = vrot.lane.b32.xlu1 %v5730_v26, %s5260_s7  ;;  %v331_v26 = vunpack.c.l.bf16 %v277_v33 }
 0x106   : > { %9044 = vst [vmem:[#allocation85_spill] sm:$0xff] %v6150_v8 }
 0x107   : > { %4388 = vrot.lane.b32.xlu0 %v5740_v45, %s5260_s7  ;;  %v6156_v30 = vpop.permute.xlu1 %4113 }
 0x108   : > { %9045 = vst [vmem:[#allocation86_spill] sm:$0xff] %v6156_v30 }
 0x109   : > { %v6158_v7 = vpop.permute.xlu0 %4108  ;;  %4403 = vrot.lane.b32.xlu1 %v5750_v16, %s5260_s7  ;;  %v1134_v16 = vrot.slane %v6052_v27, 1 }
 0x10a   : > { %9046 = vst [vmem:[#allocation87_spill] sm:$0xff] %v6158_v7 }
 0x10b   : > { %4398 = vrot.lane.b32.xlu0 %v5760_v46, %s5260_s7  ;;  %v6164_v29 = vpop.permute.xlu1 %4123  ;;  %v1135_v46 = vrot.slane %v6054_v35, 1 }
 0x10c   : > { %9047 = vst [vmem:[#allocation88_spill] sm:$0xff] %v6164_v29  ;;  %v1137_v29 = vrot.slane %v331_v26, 1 }
 0x10d   : > { %v6167_v43 = vpop.permute.xlu0 %4118  ;;  %4413 = vrot.lane.b32.xlu1 %v5770_v32, %s5260_s7 }
 0x10e   : > { %9048 = vst [vmem:[#allocation89_spill] sm:$0xff] %v6167_v43  ;;  %v1238_v43 = vrot.slane %v331_v26, 2 }
 0x10f   : > { %4408 = vrot.lane.b32.xlu0 %v5780_v5, %s5260_s7  ;;  %v6173_v45 = vpop.permute.xlu1 %4133  ;;  %v1136_v5 = vsel %vm380_vm0, %v1134_v16, %v1135_v46 }
 0x110   : > { %9049 = vst [vmem:[#allocation90_spill] sm:$0xff] %v6173_v45  ;;  %v1236_v45 = vrot.slane %v6054_v35, 2 }
 0x111   : > { %v6175_v7 = vpop.permute.xlu0 %4128  ;;  %4423 = vrot.lane.b32.xlu1 %v5790_v28, %s5260_s7  ;;  %v1235_v28 = vrot.slane %v6052_v27, 2 }
 0x112   : > { %9050 = vst [vmem:[#allocation91_spill] sm:$0xff] %v6175_v7  ;;  %v1138_v7 = vsel %vm380_vm0, %v1135_v46, %v1137_v29  ;;  %v1239_v29 = vsel %vm557_vm1, %v1236_v45, %v1238_v43  ;;  %v3841_v43 = vunpack.i.h.bf16 %v5925_v52 }
 0x113   : > { %4418 = vrot.lane.b32.xlu0 %v5796_v36, %s5260_s7  ;;  %v6183_v32 = vpop.permute.xlu1 %4143  ;;  %v1237_v16 = vsel %vm557_vm1, %v1235_v28, %v1236_v45  ;;  %v3830_v45 = vunpack.i.l.bf16 %v5929_v63  ;;  %v3845_v28 = vunpack.i.l.bf16 %v5933_v2 }
 0x114   : > { %9051 = vst [vmem:[#allocation92_spill] sm:$0xff] %v6183_v32  ;;  %v4462_v26 = vpack.i.bf16 %v1239_v29, %v1237_v16  ;;  %v3836_v16 = vunpack.i.h.bf16 %v5937_v50 }
 0x115   : > { %v6185_v33 = vpop.permute.xlu0 %4138  ;;  %4433 = vrot.lane.b32.xlu1 %v5650_v54, %s5259_s16  ;;  %v4452_v54 = vpack.i.bf16 %v1138_v7, %v1136_v5  ;;  %v3840_v7 = vunpack.i.l.bf16 %v5925_v52  ;;  %v3846_v5 = vunpack.i.h.bf16 %v5933_v2  ;;  %v3851_v52 = vunpack.i.h.bf16 %v5949_v57 }
 0x116   : > { %9052 = vst [vmem:[#allocation93_spill] sm:$0xff] %v6185_v33  ;;  %v9078_v33 = vld [vmem:[#allocation52_spill] sm:$0xff] }
 0x117   : > { %4428 = vrot.lane.b32.xlu0 %v5662_v37, %s5259_s16  ;;  %v6195_v36 = vpop.permute.xlu1 %4153  ;;  %v3855_v37 = vunpack.i.l.bf16 %v5943_v34  ;;  %v6243_v2 = vsel %vm1336_vm3, %v5359_v3, %v3840_v7  ;;  %v9063_v7 = vld [vmem:[#allocation47_spill] sm:$0xff]  ;;  %v3895_v30 = vunpack.i.l.bf16 %v9078_v33 }
 0x118   : > { %9053 = vst [vmem:[#allocation94_spill] sm:$0xff] %v6195_v36 }
 0x119   : > { %v6197_v32 = vpop.permute.xlu0 %4148  ;;  %4443 = vrot.lane.b32.xlu1 %v5802_v53, %s5260_s7 }
 0x11a   : > { %9054 = vst [vmem:[#allocation95_spill] sm:$0xff] %v6197_v32 }
 0x11b   : > { %4438 = vrot.lane.b32.xlu0 %v5807_v23, %s5260_s7  ;;  %v6205_v27 = vpop.permute.xlu1 %4163 }
 0x11c   : > { %9055 = vst [vmem:[#allocation96_spill] sm:$0xff] %v6205_v27  ;;  %v9075_v27 = vld [vmem:[#allocation51_spill] sm:$0xff] }
 0x11d   : > { %v6207_v35 = vpop.permute.xlu0 %4158  ;;  %4453 = vrot.lane.b32.xlu1 %v4452_v54, %s5259_s16  ;;  %v3831_v54 = vunpack.i.h.bf16 %v5929_v63 }
 0x11e   : > { %9056 = vst [vmem:[#allocation97_spill] sm:$0xff] %v6207_v35 }
 0x11f   : > { %4448 = vrot.lane.b32.xlu0 %v5947_v1, %s5259_s16  ;;  %v6212_v46 = vpop.permute.xlu1 %4173  ;;  %v3850_v1 = vunpack.i.l.bf16 %v5949_v57  ;;  %v6255_v57 = vsel %vm1336_vm3, %v5378_v13, %v3846_v5  ;;  %v9067_v5 = vld [vmem:[#allocation8_spill] sm:$0xff]  ;;  %s5195_s16 = sshll.u32 %s5268_s22, 4  ;;  %s5196_s16 = int_to_ptr.vmem [resolvable:$false] %s5195_s16 }
 0x120   : > { %9057 = vst [vmem:[#allocation98_spill] sm:$0xff] %v6212_v46 }
 0x121   : > { %v6214_v53 = vpop.permute.xlu0 %4168  ;;  %4463 = vrot.lane.b32.xlu1 %v4462_v26, %s5260_s7  ;;  %v3856_v26 = vunpack.i.h.bf16 %v5943_v34  ;;  %v6251_v34 = vsel %vm1336_vm3, %v5364_v6, %v3830_v45  ;;  %v9066_v45 = vld [vmem:[#allocation9_spill] sm:$0xff] }
 0x122   : > { %9058 = vst [vmem:[#allocation99_spill] sm:$0xff] %v6214_v53 }
 0x123   : > { %4458 = vrot.lane.b32.xlu0 %v5833_v44, %s5260_s7  ;;  %v6219_v23 = vpop.permute.xlu1 %4183  ;;  %v3835_v44 = vunpack.i.l.bf16 %v5937_v50  ;;  %v6247_v50 = vsel %vm1336_vm3, %v5373_v10, %v3831_v54  ;;  %v9065_v54 = vld [vmem:[#allocation5_spill] sm:$0xff]  ;;  %v6274_v13 = vsel %vm1336_vm3, %v9066_v45, %v3856_v26  ;;  %v3876_v45 = vunpack.i.h.bf16 %v5962_v41 }
 0x124   : > { %9059 = vst [vmem:[#allocation100_spill] sm:$0xff] %v6219_v23  ;;  %v6239_v23 = vsel %vm1336_vm3, %v5361_v4, %v3841_v43  ;;  %v6259_v4 = vsel %vm1336_vm3, %v5376_v12, %v3845_v28  ;;  %v9062_v43 = vld [vmem:[#allocation7_spill] sm:$0xff]  ;;  %v6278_v12 = vsel %vm1336_vm3, %v9067_v5, %v3855_v37  ;;  %v3865_v28 = vunpack.i.l.bf16 %v9063_v7  ;;  %v9072_v5 = vld [vmem:[#allocation49_spill] sm:$0xff] }
 0x125   : > { %v6228_v29 = vpop.permute.xlu0 %4178  ;;  %v6263_v3 = vsel %vm1336_vm3, %v9062_v43, %v3836_v16  ;;  %v6270_v6 = vsel %vm1336_vm3, %v9065_v54, %v3835_v44  ;;  %v9068_v16 = vld [vmem:[#allocation12_spill] sm:$0xff]  ;;  %v3875_v37 = vunpack.i.l.bf16 %v5962_v41  ;;  %v3870_v46 = vunpack.i.l.bf16 %v9072_v5 }
 0x126   : > { %9060 = vst [vmem:[#allocation101_spill] sm:$0xff] %v6228_v29  ;;  %v6283_v43 = vsel %vm1336_vm3, %v9068_v16, %v3851_v52  ;;  %v9069_v29 = vld [vmem:[#allocation11_spill] sm:$0xff]  ;;  %v9070_v44 = vld [vmem:[#allocation48_spill] sm:$0xff]  ;;  %v3880_v41 = vunpack.i.l.bf16 %v9075_v27 }
 0x127   : > { %v6235_v63 = vpop.permute.xlu1 %4193  ;;  %v3861_v54 = vunpack.i.h.bf16 %v9070_v44  ;;  %v3860_v53 = vunpack.i.l.bf16 %v9070_v44  ;;  %v9073_v52 = vld [vmem:[#allocation15_spill] sm:$0xff]  ;;  %v3881_v44 = vunpack.i.h.bf16 %v9075_v27  ;;  %v9083_v27 = vld [vmem:[#allocation21_spill] sm:$0xff] }
 0x128   : > { %9061 = vst [vmem:[#allocation102_spill] sm:$0xff] %v6235_v63  ;;  %v3866_v63 = vunpack.i.h.bf16 %v9063_v7  ;;  %v3871_v7 = vunpack.i.h.bf16 %v9072_v5  ;;  %v3896_v5 = vunpack.i.h.bf16 %v9078_v33  ;;  %v6327_v24 = vsel %vm1336_vm3, %v9083_v27, %v3876_v45  ;;  %v9084_v33 = vld [vmem:[#allocation20_spill] sm:$0xff]  ;;  %v9089_v27 = vld [vmem:[#allocation30_spill] sm:$0xff] }
 0x129   : > { %v6266_v10 = vpop.permute.xlu0 %4188  ;;  %v6331_v61 = vsel %vm1336_vm3, %v9084_v33, %v3875_v37  ;;  %v6351_v37 = vsel %vm1336_vm3, %v9089_v27, %v3881_v44  ;;  %v9095_v44 = vld [vmem:[#allocation34_spill] sm:$0xff] }
 0x12a   : > { %9064 = vst [vmem:[#allocation7_spill] sm:$0xff] %v6266_v10  ;;  %v6287_v10 = vsel %vm1336_vm3, %v9069_v29, %v3850_v1  ;;  %v6299_v16 = vsel %vm1336_vm3, %v9073_v52, %v3866_v63  ;;  %v9074_v1 = vld [vmem:[#allocation50_spill] sm:$0xff] }
 0x12b   : > { %v6291_v26 = vpop.permute.xlu1 %4203  ;;  %v3886_v29 = vunpack.i.h.bf16 %v9074_v1  ;;  %v3885_v35 = vunpack.i.l.bf16 %v9074_v1  ;;  %v9079_v63 = vld [vmem:[#allocation18_spill] sm:$0xff]  ;;  %v9080_v1 = vld [vmem:[#allocation17_spill] sm:$0xff] }
 0x12c   : > { %9071 = vst [vmem:[#allocation47_spill] sm:$0xff] %v6291_v26  ;;  %v9077_v26 = vld [vmem:[#allocation14_spill] sm:$0xff]  ;;  %v6315_v52 = vsel %vm1336_vm3, %v9079_v63, %v3861_v54  ;;  %v6319_v8 = vsel %vm1336_vm3, %v9080_v1, %v3860_v53  ;;  %v9085_v54 = vld [vmem:[#allocation24_spill] sm:$0xff] }
 0x12d   : > { %v6304_v32 = vpop.permute.xlu0 %4198  ;;  %v6308_v36 = vsel %vm1336_vm3, %v9077_v26, %v3865_v28  ;;  %v6335_v63 = vsel %vm1336_vm3, %v9085_v54, %v3871_v7  ;;  %v9086_v53 = vld [vmem:[#allocation22_spill] sm:$0xff]  ;;  %v9091_v7 = vld [vmem:[#allocation29_spill] sm:$0xff] }
 0x12e   : > { %9076 = vst [vmem:[#allocation5_spill] sm:$0xff] %v6304_v32  ;;  %v9081_v32 = vld [vmem:[#allocation53_spill] sm:$0xff]  ;;  %v6339_v1 = vsel %vm1336_vm3, %v9086_v53, %v3870_v46  ;;  %v6357_v54 = vsel %vm1336_vm3, %v9091_v7, %v3880_v41 }
 0x12f   : > { %v3891_v42 = vunpack.i.h.bf16 %v9081_v32  ;;  %v3890_v28 = vunpack.i.l.bf16 %v9081_v32  ;;  %v6323_v26 = vpop.permute.xlu1 %4213  ;;  %v6343_v32 = vsel %vm1336_vm3, %v9087_v31, %v3886_v29  ;;  %v9092_v46 = vld [vmem:[#allocation33_spill] sm:$0xff]  ;;  %v9093_v31 = vld [vmem:[#allocation32_spill] sm:$0xff] }
 0x130   : > { %9082 = vst [vmem:[#allocation9_spill] sm:$0xff] %v6323_v26  ;;  %v9088_v26 = vld [vmem:[#allocation26_spill] sm:$0xff]  ;;  %v6361_v53 = vsel %vm1336_vm3, %v9092_v46, %v3896_v5  ;;  %v6365_v29 = vsel %vm1336_vm3, %v9093_v31, %v3895_v30  ;;  %v6378_v5 = vrot.slane %v5261_v62, 7  ;;  %v9099_v30 = vld [vmem:[#allocation55_spill] sm:$0xff] }
 0x131   : > { %v6347_v45 = vsel %vm1336_vm3, %v9088_v26, %v3885_v35  ;;  %v6353_v33 = vpop.permute.xlu0 %4208  ;;  %v9094_v35 = vld [vmem:[#allocation36_spill] sm:$0xff]  ;;  %v6373_v27 = vsel %vm1336_vm3, %v9095_v44, %v3890_v28  ;;  %v3901_v31 = vunpack.i.h.bf16 %v9099_v30  ;;  %v3900_v38 = vunpack.i.l.bf16 %v9099_v30 }
 0x132   : > { %9090 = vst [vmem:[#allocation8_spill] sm:$0xff] %v6353_v33  ;;  %v6369_v26 = vsel %vm1336_vm3, %v9094_v35, %v3891_v42  ;;  %v9096_v33 = vld [vmem:[#allocation54_spill] sm:$0xff]  ;;  %9098 = vst [vmem:[#allocation11_spill] sm:$0xff] %v6378_v5  ;;  %v3916_v42 = vunpack.i.h.bf16 %v9100_v25  ;;  %v3915_v35 = vunpack.i.l.bf16 %v9100_v25  ;;  %v3911_v28 = vunpack.i.h.bf16 %v9101_v20 }
 0x133   : > { %v3906_v41 = vunpack.i.h.bf16 %v9096_v33  ;;  %v6376_v7 = vpop.permute.xlu1 %4223  ;;  %v3905_v46 = vunpack.i.l.bf16 %v9096_v33  ;;  %v3910_v44 = vunpack.i.l.bf16 %v9101_v20  ;;  %v6391_v62 = vsel %vm1922_vm5, 0.0, %v6378_v5 }
 0x134   : > { %9097 = vst [vmem:[#allocation12_spill] sm:$0xff] %v6376_v7  ;;  %9103 = vst [vmem:[#allocation49_spill] sm:$0xff] %v6391_v62  ;;  %v3926_v33 = vunpack.i.h.bf16 %v5993_v21  ;;  %v3925_v7 = vunpack.i.l.bf16 %v5993_v21  ;;  %v3921_v30 = vunpack.i.h.bf16 %v9104_v56  ;;  %v3936_v25 = vunpack.i.h.bf16 %v9105_v47  ;;  %v9108_v21 = vld [vmem:[#allocation38_spill] sm:$0xff] }
 0x135   : > { %v6387_v19 = vpop.permute.xlu0 %4218  ;;  %v3930_v20 = vunpack.i.l.bf16 %v6001_v15  ;;  %v6406_v17 = vsel %vm1336_vm3, %v9107_v60, %v3906_v41  ;;  %v6410_v22 = vsel %vm1336_vm3, %v9108_v21, %v3905_v46  ;;  %v9109_v56 = vld [vmem:[#allocation42_spill] sm:$0xff]  ;;  %v3931_v47 = vunpack.i.h.bf16 %v6001_v15 }
 0x136   : > { %9102 = vst [vmem:[#allocation48_spill] sm:$0xff] %v6387_v19  ;;  %v4477_v19 = vpack.i.bf16 %v6378_v5, %v6391_v62  ;;  %v6414_v55 = vsel %vm1336_vm3, %v9109_v56, %v3901_v31  ;;  %v6423_v62 = vsel %vm1369_vm4, %v6270_v6, %v3915_v35  ;;  %v6427_v60 = vsel %vm1369_vm4, %v6263_v3, %v3916_v42 }
 0x137   : > { %v6400_v49 = vpop.permute.xlu1 %4233  ;;  %v6431_v41 = vsel %vm1369_vm4, %v6251_v34, %v3910_v44  ;;  %v6442_v15 = vsel %vm1369_vm4, %v6255_v57, %v3926_v33  ;;  %v6450_v34 = vsel %vm1369_vm4, %v6239_v23, %v3921_v30  ;;  %v6454_v3 = vsel %vm1369_vm4, %v6243_v2, %v3920_v0  ;;  %v9111_v0 = vld [vmem:[#allocation60_spill] sm:$0xff] }
 0x138   : > { %9106 = vst [vmem:[#allocation15_spill] sm:$0xff] %v6400_v49  ;;  %v6419_v49 = vsel %vm1336_vm3, %v9110_v58, %v3900_v38  ;;  %4478 = vrot.lane.b32.xlu1 %v4477_v19, %s5262_s8  ;;  %v6438_v38 = vsel %vm1369_vm4, %v6247_v50, %v3911_v28  ;;  %v6446_v58 = vsel %vm1369_vm4, %v6259_v4, %v3925_v7  ;;  %v3946_v2 = vunpack.i.h.bf16 %v9111_v0 }
 0x139   : > { %v6433_v46 = vpop.permute.xlu0 %4228  ;;  %v6458_v19 = vsel %vm1369_vm4, %v6274_v13, %v3936_v25  ;;  %v6462_v50 = vsel %vm1369_vm4, %v6278_v12, %v3935_v14  ;;  %v6466_v57 = vsel %vm1369_vm4, %v6287_v10, %v3930_v20  ;;  %v6472_v23 = vsel %vm1369_vm4, %v6283_v43, %v3931_v47  ;;  %v9112_v13 = vld [vmem:[#allocation61_spill] sm:$0xff] }
 0x13a   : > { %v3945_v6 = vunpack.i.l.bf16 %v9111_v0  ;;  %v3940_v7 = vunpack.i.l.bf16 %v9112_v13  ;;  %v3941_v31 = vunpack.i.h.bf16 %v9112_v13  ;;  %v3956_v14 = vunpack.i.h.bf16 %v6013_v18 }
 0x13b   : > { %v6468_v4 = vpop.permute.xlu1 %4243  ;;  %v3955_v12 = vunpack.i.l.bf16 %v6013_v18  ;;  %v3950_v10 = vunpack.i.l.bf16 %v6015_v51  ;;  %v3951_v35 = vunpack.i.h.bf16 %v6015_v51  ;;  %v3966_v43 = vunpack.i.h.bf16 %v6021_v40  ;;  %v9113_v18 = vld [vmem:[#allocation62_spill] sm:$0xff] }
 0x13c   : > { %v3965_v28 = vunpack.i.l.bf16 %v6021_v40  ;;  %v3960_v44 = vunpack.i.l.bf16 %v6023_v39  ;;  %v3961_v33 = vunpack.i.h.bf16 %v6023_v39  ;;  %v3976_v30 = vunpack.i.h.bf16 %v6029_v9 }
 0x13d   : > { %v6481_v42 = vpop.permute.xlu0 %4238  ;;  %v3975_v25 = vunpack.i.l.bf16 %v6029_v9  ;;  %v3970_v20 = vunpack.i.l.bf16 %v9113_v18  ;;  %v6495_v51 = vsel %vm1369_vm4, %v6299_v16, %v3946_v2  ;;  %v6499_v40 = vsel %vm1369_vm4, %v6308_v36, %v3945_v6 }
 0x13e   : > { %v6503_v56 = vsel %vm1369_vm4, %v6319_v8, %v3940_v7  ;;  %v3971_v39 = vunpack.i.h.bf16 %v9113_v18  ;;  %v6508_v9 = vsel %vm1369_vm4, %v6315_v52, %v3941_v31  ;;  %v6512_v47 = vsel %vm1369_vm4, %v6327_v24, %v3956_v14 }
 0x13f   : > { %v6491_v21 = vpop.permute.xlu1 %4253  ;;  %v6516_v16 = vsel %vm1369_vm4, %v6331_v61, %v3955_v12  ;;  %v6520_v36 = vsel %vm1369_vm4, %v6339_v1, %v3950_v10  ;;  %v6526_v0 = vsel %vm1369_vm4, %v6335_v63, %v3951_v35  ;;  %v6530_v52 = vsel %vm1369_vm4, %v6343_v32, %v3966_v43  ;;  %v9116_v43 = vld [vmem:[#allocation65_spill] sm:$0xff] }
 0x140   : > { %v6534_v24 = vsel %vm1369_vm4, %v6347_v45, %v3965_v28  ;;  %v6538_v61 = vsel %vm1369_vm4, %v6357_v54, %v3960_v44  ;;  %v6542_v1 = vsel %vm1369_vm4, %v6351_v37, %v3961_v33  ;;  %v6546_v63 = vsel %vm1369_vm4, %v6361_v53, %v3976_v30  ;;  %v9114_v53 = vld [vmem:[#allocation63_spill] sm:$0xff]  ;;  %v9117_v44 = vld [vmem:[#allocation66_spill] sm:$0xff] }
 0x141   : > { %v6522_v8 = vpop.permute.xlu0 %4248  ;;  %v6550_v32 = vsel %vm1369_vm4, %v6365_v29, %v3975_v25  ;;  %v6554_v45 = vsel %vm1369_vm4, %v6373_v27, %v3970_v20  ;;  %v6560_v54 = vsel %vm1369_vm4, %v6369_v26, %v3971_v39  ;;  %v3986_v37 = vunpack.i.h.bf16 %v6037_v11  ;;  %v9115_v26 = vld [vmem:[#allocation64_spill] sm:$0xff]  ;;  %v9118_v25 = vld [vmem:[#allocation67_spill] sm:$0xff] }
 0x142   : > { %v3985_v6 = vunpack.i.l.bf16 %v6037_v11  ;;  %v3980_v13 = vunpack.i.l.bf16 %v9114_v53  ;;  %v3981_v7 = vunpack.i.h.bf16 %v9114_v53  ;;  %v3996_v29 = vunpack.i.h.bf16 %v6046_v59 }
 0x143   : > { %v6556_v2 = vpop.permute.xlu1 %4263  ;;  %v3995_v31 = vunpack.i.l.bf16 %v6046_v59  ;;  %v3990_v27 = vunpack.i.l.bf16 %v6048_v48  ;;  %v3991_v12 = vunpack.i.h.bf16 %v6048_v48  ;;  %v4006_v10 = vunpack.i.h.bf16 %v9115_v26 }
 0x144   : > { %v4005_v35 = vunpack.i.l.bf16 %v9115_v26  ;;  %v4000_v11 = vunpack.i.l.bf16 %v9116_v43  ;;  %v4001_v28 = vunpack.i.h.bf16 %v9116_v43  ;;  %v4016_v33 = vunpack.i.h.bf16 %v9117_v44 }
 0x145   : > { %v6569_v14 = vpop.permute.xlu0 %4258  ;;  %v4015_v30 = vunpack.i.l.bf16 %v9117_v44  ;;  %v4010_v59 = vunpack.i.l.bf16 %v9118_v25  ;;  %v6583_v20 = vsel %vm1369_vm4, %v6406_v17, %v3986_v37  ;;  %v6587_v48 = vsel %vm1369_vm4, %v6410_v22, %v3985_v6 }
 0x146   : > { %9120 = vst [vmem:[#allocation51_spill] sm:$0xff] %v6583_v20  ;;  %9121 = vst [vmem:[#allocation14_spill] sm:$0xff] %v6587_v48  ;;  %v6591_v39 = vsel %vm1369_vm4, %v6419_v49, %v3980_v13  ;;  %v4011_v53 = vunpack.i.h.bf16 %v9118_v25  ;;  %v6596_v26 = vsel %vm1369_vm4, %v6414_v55, %v3981_v7  ;;  %v6600_v43 = vsel %vm1402_vm6, %v6423_v62, %v3995_v31 }
 0x147   : > { %v6579_v18 = vpop.permute.xlu1 %4273  ;;  %v6604_v17 = vsel %vm1402_vm6, %v6427_v60, %v3996_v29  ;;  %v6608_v22 = vsel %vm1402_vm6, %v6431_v41, %v3990_v27  ;;  %v6614_v37 = vsel %vm1402_vm6, %v6438_v38, %v3991_v12  ;;  %v6618_v55 = vsel %vm1402_vm6, %v6446_v58, %v4005_v35 }
 0x148   : > { %9119 = vst [vmem:[#allocation50_spill] sm:$0xff] %v6579_v18  ;;  %v6622_v62 = vsel %vm1402_vm6, %v6442_v15, %v4006_v10  ;;  %v6626_v60 = vsel %vm1402_vm6, %v6454_v3, %v4000_v11  ;;  %v6630_v41 = vsel %vm1402_vm6, %v6450_v34, %v4001_v28  ;;  %v6634_v38 = vsel %vm1402_vm6, %v6462_v50, %v4015_v30  ;;  %v9123_v34 = vld [vmem:[#allocation68_spill] sm:$0xff]  ;;  %v9124_v50 = vld [vmem:[#allocation69_spill] sm:$0xff] }
 0x149   : > { %v6610_v49 = vpop.permute.xlu0 %4268  ;;  %v6638_v58 = vsel %vm1402_vm6, %v6458_v19, %v4016_v33  ;;  %v6642_v15 = vsel %vm1402_vm6, %v6466_v57, %v4010_v59  ;;  %v6648_v3 = vsel %vm1402_vm6, %v6472_v23, %v4011_v53  ;;  %v4026_v13 = vunpack.i.h.bf16 %v9123_v34  ;;  %v9125_v19 = vld [vmem:[#allocation70_spill] sm:$0xff]  ;;  %v9126_v57 = vld [vmem:[#allocation71_spill] sm:$0xff]  ;;  %v9128_v11 = vld [vmem:[#allocation72_spill] sm:$0xff] }
 0x14a   : > { %v4025_v7 = vunpack.i.l.bf16 %v9123_v34  ;;  %v4020_v29 = vunpack.i.l.bf16 %v9124_v50  ;;  %v4021_v31 = vunpack.i.h.bf16 %v9124_v50  ;;  %v4036_v27 = vunpack.i.h.bf16 %v9125_v19  ;;  %v9129_v33 = vld [vmem:[#allocation73_spill] sm:$0xff]  ;;  %v9130_v59 = vld [vmem:[#allocation74_spill] sm:$0xff]  ;;  %v9131_v50 = vld [vmem:[#allocation75_spill] sm:$0xff] }
 0x14b   : > { %v6644_v6 = vpop.permute.xlu1 %4283  ;;  %v4035_v12 = vunpack.i.l.bf16 %v9125_v19  ;;  %v4030_v10 = vunpack.i.l.bf16 %v9126_v57  ;;  %v4031_v23 = vunpack.i.h.bf16 %v9126_v57  ;;  %v4046_v28 = vunpack.i.h.bf16 %v9128_v11 }
 0x14c   : > { %9122 = vst [vmem:[#allocation52_spill] sm:$0xff] %v6644_v6  ;;  %v4045_v44 = vunpack.i.l.bf16 %v9128_v11  ;;  %v4040_v30 = vunpack.i.l.bf16 %v9129_v33  ;;  %v4041_v25 = vunpack.i.h.bf16 %v9129_v33  ;;  %v4056_v53 = vunpack.i.h.bf16 %v9130_v59  ;;  %v9151_v6 = vld [vmem:[#allocation91_spill] sm:$0xff] }
 0x14d   : > { %v6657_v35 = vpop.permute.xlu0 %4278  ;;  %v4055_v34 = vunpack.i.l.bf16 %v9130_v59  ;;  %v4050_v19 = vunpack.i.l.bf16 %v9131_v50  ;;  %v6671_v20 = vsel %vm1402_vm6, %v6499_v40, %v4025_v7  ;;  %v6675_v57 = vsel %vm1402_vm6, %v6495_v51, %v4026_v13 }
 0x14e   : > { %9127 = vst [vmem:[#allocation18_spill] sm:$0xff] %v6657_v35  ;;  %v6679_v11 = vsel %vm1402_vm6, %v6503_v56, %v4020_v29  ;;  %v4051_v33 = vunpack.i.h.bf16 %v9131_v50  ;;  %v6684_v59 = vsel %vm1402_vm6, %v6508_v9, %v4021_v31  ;;  %v6688_v48 = vsel %vm1402_vm6, %v6516_v16, %v4035_v12 }
 0x14f   : > { %v6667_v5 = vpop.permute.xlu1 %4293  ;;  %v6692_v40 = vsel %vm1402_vm6, %v6512_v47, %v4036_v27  ;;  %v6696_v51 = vsel %vm1402_vm6, %v6520_v36, %v4030_v10  ;;  %v6702_v13 = vsel %vm1402_vm6, %v6526_v0, %v4031_v23  ;;  %v6706_v9 = vsel %vm1402_vm6, %v6534_v24, %v4045_v44 }
 0x150   : > { %9132 = vst [vmem:[#allocation17_spill] sm:$0xff] %v6667_v5  ;;  %v6710_v16 = vsel %vm1402_vm6, %v6530_v52, %v4046_v28  ;;  %v6714_v47 = vsel %vm1402_vm6, %v6538_v61, %v4040_v30  ;;  %v6718_v36 = vsel %vm1402_vm6, %v6542_v1, %v4041_v25  ;;  %v6722_v0 = vsel %vm1402_vm6, %v6550_v32, %v4055_v34  ;;  %v9135_v1 = vld [vmem:[#allocation77_spill] sm:$0xff]  ;;  %v9136_v32 = vld [vmem:[#allocation78_spill] sm:$0xff] }
 0x151   : > { %v6698_v56 = vpop.permute.xlu0 %4288  ;;  %v6726_v24 = vsel %vm1402_vm6, %v6546_v63, %v4056_v53  ;;  %v6730_v52 = vsel %vm1402_vm6, %v6554_v45, %v4050_v19  ;;  %v6736_v61 = vsel %vm1402_vm6, %v6560_v54, %v4051_v33  ;;  %v4061_v29 = vunpack.i.h.bf16 %v9135_v1  ;;  %v9137_v63 = vld [vmem:[#allocation79_spill] sm:$0xff]  ;;  %v9138_v45 = vld [vmem:[#allocation80_spill] sm:$0xff]  ;;  %v9141_v34 = vld [vmem:[#allocation81_spill] sm:$0xff] }
 0x152   : > { %9133 = vst [vmem:[#allocation53_spill] sm:$0xff] %v6698_v56  ;;  %v4060_v31 = vunpack.i.l.bf16 %v9135_v1  ;;  %v4075_v27 = vunpack.i.l.bf16 %v9136_v32  ;;  %v4076_v12 = vunpack.i.h.bf16 %v9136_v32  ;;  %v4071_v10 = vunpack.i.h.bf16 %v9137_v63  ;;  %v9142_v33 = vld [vmem:[#allocation82_spill] sm:$0xff] }
 0x153   : > { %v6732_v7 = vpop.permute.xlu1 %4303  ;;  %v4070_v23 = vunpack.i.l.bf16 %v9137_v63  ;;  %v4085_v28 = vunpack.i.l.bf16 %v9138_v45  ;;  %v4086_v53 = vunpack.i.h.bf16 %v9138_v45  ;;  %v4080_v50 = vunpack.i.l.bf16 %v9141_v34 }
 0x154   : > { %9134 = vst [vmem:[#allocation21_spill] sm:$0xff] %v6732_v7  ;;  %v4081_v19 = vunpack.i.h.bf16 %v9141_v34  ;;  %v4096_v1 = vunpack.i.h.bf16 %v9142_v33  ;;  %v4095_v32 = vunpack.i.l.bf16 %v9142_v33  ;;  %v9143_v7 = vld [vmem:[#allocation83_spill] sm:$0xff]  ;;  %v6763_v25 = vsel %vm1402_vm6, %v6596_v26, %v4061_v29 }
 0x155   : > { %v6745_v44 = vpop.permute.xlu0 %4298  ;;  %v4090_v63 = vunpack.i.l.bf16 %v9143_v7  ;;  %v6767_v45 = vsel %vm1435_vm7, %v6600_v43, %v4075_v27  ;;  %v4091_v34 = vunpack.i.h.bf16 %v9143_v7  ;;  %v6772_v33 = vsel %vm1435_vm7, %v6604_v17, %v4076_v12 }
 0x156   : > { %9139 = vst [vmem:[#allocation20_spill] sm:$0xff] %v6745_v44  ;;  %v6759_v44 = vsel %vm1402_vm6, %v6591_v39, %v4060_v31  ;;  %v6776_v54 = vsel %vm1435_vm7, %v6608_v22, %v4070_v23  ;;  %v6780_v39 = vsel %vm1435_vm7, %v6614_v37, %v4071_v10  ;;  %v6784_v26 = vsel %vm1435_vm7, %v6618_v55, %v4085_v28  ;;  %v9144_v22 = vld [vmem:[#allocation84_spill] sm:$0xff] }
 0x157   : > { %v6755_v5 = vpop.permute.xlu1 %4313  ;;  %v6790_v7 = vsel %vm1435_vm7, %v6622_v62, %v4086_v53  ;;  %v6794_v17 = vsel %vm1435_vm7, %v6626_v60, %v4080_v50  ;;  %v4106_v29 = vunpack.i.h.bf16 %v9144_v22  ;;  %v4105_v31 = vunpack.i.l.bf16 %v9144_v22  ;;  %v9149_v22 = vld [vmem:[#allocation89_spill] sm:$0xff] }
 0x158   : > { %v6800_v37 = vsel %vm1435_vm7, %v6630_v41, %v4081_v19  ;;  %v6804_v55 = vsel %vm1435_vm7, %v6634_v38, %v4095_v32  ;;  %v6808_v62 = vsel %vm1435_vm7, %v6638_v58, %v4096_v1  ;;  %v6812_v60 = vsel %vm1435_vm7, %v6642_v15, %v4090_v63  ;;  %v9145_v41 = vld [vmem:[#allocation85_spill] sm:$0xff]  ;;  %v9146_v38 = vld [vmem:[#allocation86_spill] sm:$0xff]  ;;  %v9147_v58 = vld [vmem:[#allocation87_spill] sm:$0xff] }
 0x159   : > { %v6786_v43 = vpop.permute.xlu0 %4308  ;;  %v6818_v12 = vsel %vm1435_vm7, %v6648_v3, %v4091_v34  ;;  %v4101_v10 = vunpack.i.h.bf16 %v9145_v41  ;;  %v4100_v23 = vunpack.i.l.bf16 %v9145_v41  ;;  %v4115_v28 = vunpack.i.l.bf16 %v9146_v38  ;;  %v9148_v15 = vld [vmem:[#allocation88_spill] sm:$0xff] }
 0x15a   : > { %v4116_v53 = vunpack.i.h.bf16 %v9146_v38  ;;  %v4111_v50 = vunpack.i.h.bf16 %v9147_v58  ;;  %v4110_v19 = vunpack.i.l.bf16 %v9147_v58  ;;  %v4125_v1 = vunpack.i.l.bf16 %v9148_v15  ;;  %v9150_v58 = vld [vmem:[#allocation90_spill] sm:$0xff] }
 0x15b   : > { %v6814_v27 = vpop.permute.xlu1 %4323  ;;  %v6831_v3 = vsel %vm1435_vm7, %v6671_v20, %v4105_v31  ;;  %v6835_v63 = vsel %vm1435_vm7, %v6675_v57, %v4106_v29  ;;  %v4126_v34 = vunpack.i.h.bf16 %v9148_v15  ;;  %v4120_v41 = vunpack.i.l.bf16 %v9149_v22 }
 0x15c   : > { %v4121_v38 = vunpack.i.h.bf16 %v9149_v22  ;;  %v4136_v30 = vunpack.i.h.bf16 %v9150_v58  ;;  %v4135_v56 = vunpack.i.l.bf16 %v9150_v58  ;;  %v4130_v35 = vunpack.i.l.bf16 %v9151_v6 }
 0x15d   : > { %v6827_v32 = vpop.permute.xlu0 %4318  ;;  %v6847_v20 = vsel %vm1435_vm7, %v6679_v11, %v4100_v23  ;;  %v6851_v57 = vsel %vm1435_vm7, %v6684_v59, %v4101_v10  ;;  %v6855_v29 = vsel %vm1435_vm7, %v6688_v48, %v4115_v28  ;;  %v4131_v31 = vunpack.i.h.bf16 %v9151_v6 }
 0x15e   : > { %v6860_v15 = vsel %vm1435_vm7, %v6692_v40, %v4116_v53  ;;  %v6864_v22 = vsel %vm1435_vm7, %v6696_v51, %v4110_v19  ;;  %v6868_v11 = vsel %vm1435_vm7, %v6702_v13, %v4111_v50  ;;  %v6872_v59 = vsel %vm1435_vm7, %v6706_v9, %v4125_v1  ;;  %v9152_v51 = vld [vmem:[#allocation93_spill] sm:$0xff]  ;;  %v9158_v19 = vld [vmem:[#allocation94_spill] sm:$0xff] }
 0x15f   : > { %v6843_v18 = vpop.permute.xlu1 %4333  ;;  %v6878_v6 = vsel %vm1435_vm7, %v6710_v16, %v4126_v34  ;;  %v6882_v40 = vsel %vm1435_vm7, %v6714_v47, %v4120_v41  ;;  %v4141_v10 = vunpack.i.h.bf16 %v9152_v51  ;;  %v4140_v23 = vunpack.i.l.bf16 %v9152_v51 }
 0x160   : > { %v6888_v13 = vsel %vm1435_vm7, %v6718_v36, %v4121_v38  ;;  %v6892_v9 = vsel %vm1435_vm7, %v6722_v0, %v4135_v56  ;;  %v6896_v16 = vsel %vm1435_vm7, %v6726_v24, %v4136_v30  ;;  %v6900_v47 = vsel %vm1435_vm7, %v6730_v52, %v4130_v35  ;;  %v9159_v30 = vld [vmem:[#allocation95_spill] sm:$0xff]  ;;  %v9160_v52 = vld [vmem:[#allocation96_spill] sm:$0xff] }
 0x161   : > { %v6874_v48 = vpop.permute.xlu0 %4328  ;;  %9153 = vst [vmem:[#allocation24_spill] sm:$0xff] %v6892_v9  ;;  %9154 = vst [vmem:[#allocation22_spill] sm:$0xff] %v6896_v16  ;;  %v6906_v53 = vsel %vm1435_vm7, %v6736_v61, %v4131_v31  ;;  %v4156_v56 = vunpack.i.h.bf16 %v9158_v19  ;;  %v4155_v0 = vunpack.i.l.bf16 %v9158_v19  ;;  %v4151_v1 = vunpack.i.h.bf16 %v9159_v30  ;;  %v9163_v31 = vld [vmem:[#allocation97_spill] sm:$0xff]  ;;  %v9165_v36 = vld [vmem:[#allocation99_spill] sm:$0xff] }
 0x162   : > { %9155 = vst [vmem:[#allocation27_spill] sm:$0xff] %v6900_v47  ;;  %9156 = vst [vmem:[#allocation26_spill] sm:$0xff] %v6906_v53  ;;  %v4150_v35 = vunpack.i.l.bf16 %v9159_v30  ;;  %v4165_v34 = vunpack.i.l.bf16 %v9160_v52  ;;  %v6919_v61 = vsel %vm1435_vm7, %v6759_v44, %v4140_v23  ;;  %v6923_v38 = vsel %vm1435_vm7, %v6763_v25, %v4141_v10  ;;  %v9164_v30 = vld [vmem:[#allocation98_spill] sm:$0xff]  ;;  %v9166_v23 = vld [vmem:[#allocation100_spill] sm:$0xff] }
 0x163   : > { %v6902_v28 = vpop.permute.xlu1 %4343  ;;  %9161 = vst [vmem:[#allocation30_spill] sm:$0xff] %v6919_v61  ;;  %9162 = vst [vmem:[#allocation29_spill] sm:$0xff] %v6923_v38  ;;  %v4166_v58 = vunpack.i.h.bf16 %v9160_v52  ;;  %v4160_v51 = vunpack.i.l.bf16 %v9163_v31  ;;  %v4161_v19 = vunpack.i.h.bf16 %v9163_v31  ;;  %v4176_v50 = vunpack.i.h.bf16 %v9164_v30 }
 0x164   : > { %v4175_v24 = vunpack.i.l.bf16 %v9164_v30  ;;  %v4170_v16 = vunpack.i.l.bf16 %v9165_v36  ;;  %v1471_v44 = vsel %vm1468_vm8, %v6767_v45, %v4155_v0  ;;  %v1472_v25 = vsel %vm1468_vm8, %v6772_v33, %v4156_v56  ;;  %v9167_v56 = vld [vmem:[#allocation15_spill] sm:$0xff] }
 0x165   : > { %v6915_v41 = vpop.permute.xlu0 %4338  ;;  %v4171_v10 = vunpack.i.h.bf16 %v9165_v36  ;;  %v4185_v52 = vunpack.i.l.bf16 %v9166_v23  ;;  %v1469_v31 = vsel %vm1468_vm8, %v6776_v54, %v4150_v35  ;;  %v1470_v30 = vsel %vm1468_vm8, %v6780_v39, %v4151_v1 }
 0x166   : > { %v6945_v38 = vsel %vm1468_vm8, %v6784_v26, %v4165_v34  ;;  %v4186_v61 = vunpack.i.h.bf16 %v9166_v23  ;;  %v6952_v33 = vsel %vm1468_vm8, %v6790_v7, %v4166_v58  ;;  %v1473_v36 = vsel %vm1468_vm8, %v6794_v17, %v4160_v51 }
 0x167   : > { %v6931_v9 = vpop.permute.xlu1 %4353  ;;  %v4236_v54 = vunpack.i.h.bf16 %v9167_v56  ;;  %v4235_v0 = vunpack.i.l.bf16 %v9167_v56  ;;  %v1474_v39 = vsel %vm1468_vm8, %v6800_v37, %v4161_v19  ;;  %v6962_v26 = vsel %vm1468_vm8, %v6804_v55, %v4175_v24 }
 0x168   : > { %v6966_v1 = vsel %vm1468_vm8, %v6808_v62, %v4176_v50  ;;  %v6970_v7 = vsel %vm1468_vm8, %v6812_v60, %v4170_v16  ;;  %v6976_v35 = vsel %vm1468_vm8, %v6818_v12, %v4171_v10  ;;  %v6980_v37 = vsel %vm1468_vm8, %v6831_v3, %v4185_v52  ;;  %v9168_v60 = vld [vmem:[#allocation101_spill] sm:$0xff] }
 0x169   : > { %v6948_v45 = vpop.permute.xlu0 %4348  ;;  %v4231_v55 = vunpack.i.h.bf16 %v6433_v46  ;;  %v4230_v24 = vunpack.i.l.bf16 %v6433_v46  ;;  %v6986_v62 = vsel %vm1468_vm8, %v6835_v63, %v4186_v61  ;;  %v4316_v50 = vunpack.i.h.bf16 %v6755_v5 }
 0x16a   : > { %v4315_v12 = vunpack.i.l.bf16 %v6755_v5  ;;  %v1504_v3 = vsel %vm1501_vm9, %v1471_v44, %v4235_v0  ;;  %v1505_v58 = vsel %vm1501_vm9, %v1472_v25, %v4236_v54  ;;  %v4246_v51 = vunpack.i.h.bf16 %v6468_v4 }
 0x16b   : > { %v6972_v17 = vpop.permute.xlu1 %4363  ;;  %v4245_v46 = vunpack.i.l.bf16 %v6468_v4  ;;  %v4241_v19 = vunpack.i.h.bf16 %v6481_v42  ;;  %v4240_v63 = vunpack.i.l.bf16 %v6481_v42  ;;  %v4311_v61 = vunpack.i.h.bf16 %v6786_v43 }
 0x16c   : > { %v4310_v10 = vunpack.i.l.bf16 %v6786_v43  ;;  %v1502_v56 = vsel %vm1501_vm9, %v1469_v31, %v4230_v24  ;;  %v1503_v44 = vsel %vm1501_vm9, %v1470_v30, %v4231_v55  ;;  %v1537_v25 = vsel %vm1534_vm10, %v1504_v3, %v4315_v12 }
 0x16d   : > { %v6991_v34 = vpop.permute.xlu0 %4358  ;;  %v1538_v54 = vsel %vm1534_vm10, %v1505_v58, %v4316_v50  ;;  %v4321_v4 = vunpack.i.h.bf16 %v6827_v32  ;;  %v4320_v0 = vunpack.i.l.bf16 %v6827_v32  ;;  %v1507_v31 = vsel %vm1501_vm9, %v1474_v39, %v4241_v19 }
 0x16e   : > { %v1535_v30 = vsel %vm1534_vm10, %v1502_v56, %v4310_v10  ;;  %v1536_v55 = vsel %vm1534_vm10, %v1503_v44, %v4311_v61  ;;  %v4251_v24 = vunpack.i.h.bf16 %v6522_v8  ;;  %v4250_v58 = vunpack.i.l.bf16 %v6522_v8 }
 0x16f   : > { %v4374_v23 = vpop.permute.xlu1 %4373  ;;  %v1540_v61 = vsel %vm1534_vm10, %v1507_v31, %v4321_v4  ;;  %v4331_v56 = vunpack.i.h.bf16 %v6874_v48  ;;  %v4180_v8 = vunpack.i.l.bf16 %v9168_v60 }
 0x170   : > { %v4376_v5 = vunpack.i.h.bf16 %v4374_v23  ;;  %v4375_v52 = vunpack.i.l.bf16 %v4374_v23  ;;  %v1506_v23 = vsel %vm1501_vm9, %v1473_v36, %v4240_v63  ;;  %v4325_v36 = vunpack.i.l.bf16 %v6814_v27 }
 0x171   : > { %v4369_v42 = vpop.permute.xlu0 %4368  ;;  %v1539_v19 = vsel %vm1534_vm10, %v1506_v23, %v4320_v0  ;;  %v1511_v4 = vsel %vm1501_vm9, %v6976_v35, %v4251_v24  ;;  %v9169_v35 = vld [vmem:[#allocation102_spill] sm:$0xff] }
 0x172   : > { %v1570_v16 = vsel %vm1567_vm11, %v1537_v25, %v4375_v52  ;;  %v1571_v43 = vsel %vm1567_vm11, %v1538_v54, %v4376_v5  ;;  %v4371_v53 = vunpack.i.h.bf16 %v4369_v42  ;;  %v4370_v47 = vunpack.i.l.bf16 %v4369_v42 }
 0x173   : > { %v4384_v50 = vpop.permute.xlu1 %4383  ;;  %v1601_v3 = vpack.c.bf16 %v1571_v43, %v1570_v16  ;;  %v4326_v5 = vunpack.i.h.bf16 %v6814_v27  ;;  %v1508_v27 = vsel %vm1501_vm9, %v6945_v38, %v4245_v46  ;;  %v1509_v54 = vsel %vm1501_vm9, %v6952_v33, %v4246_v51 }
 0x174   : > { %v1568_v32 = vsel %vm1567_vm11, %v1535_v30, %v4370_v47  ;;  %v1569_v12 = vsel %vm1567_vm11, %v1536_v55, %v4371_v53  ;;  %v4330_v47 = vunpack.i.l.bf16 %v6874_v48  ;;  %v4386_v53 = vunpack.i.h.bf16 %v4384_v50 }
 0x175   : > { %v4379_v63 = vpop.permute.xlu0 %4378  ;;  %v1600_v39 = vpack.c.bf16 %v1569_v12, %v1568_v32  ;;  %v4385_v16 = vunpack.i.l.bf16 %v4384_v50  ;;  %v1510_v48 = vsel %vm1501_vm9, %v6970_v7, %v4250_v58  ;;  %v1541_v43 = vsel %vm1534_vm10, %v1508_v27, %v4325_v36 }
 0x176   : > { %v4381_v10 = vunpack.i.h.bf16 %v4379_v63  ;;  %v4380_v52 = vunpack.i.l.bf16 %v4379_v63  ;;  %v1542_v38 = vsel %vm1534_vm10, %v1509_v54, %v4326_v5  ;;  %v1543_v30 = vsel %vm1534_vm10, %v1510_v48, %v4330_v47 }
 0x177   : > { %3731 = vmatprep.mubr.msk.bf16.mxu0 %vm1643_vm12, %v1600_v39  ;;  %v4394_v46 = vpop.permute.xlu1 %4393  ;;  %v1544_v55 = vsel %vm1534_vm10, %v1511_v4, %v4331_v56  ;;  %v1574_v33 = vsel %vm1567_vm11, %v1541_v43, %v4385_v16  ;;  %v1575_v7 = vsel %vm1567_vm11, %v1542_v38, %v4386_v53  ;;  %v4196_v51 = vunpack.i.h.bf16 %v9169_v35 }
 0x178   : > { %v1572_v44 = vsel %vm1567_vm11, %v1539_v19, %v4380_v52  ;;  %v1573_v25 = vsel %vm1567_vm11, %v1540_v61, %v4381_v10  ;;  %3732 = vmatmul.mubr.msk.bf16.vlgmr.msra.gmra.mxu0 %vm1643_vm12, %v1601_v3  ;;  %v4195_v24 = vunpack.i.l.bf16 %v9169_v35  ;;  %v4256_v12 = vunpack.i.h.bf16 %v6491_v21 }
 0x179   : > { %v4389_v0 = vpop.permute.xlu0 %4388  ;;  %v1602_v42 = vpack.c.bf16 %v1573_v25, %v1572_v44  ;;  %v4255_v3 = vunpack.i.l.bf16 %v6491_v21  ;;  %v4261_v58 = vunpack.i.h.bf16 %v6569_v14  ;;  %v4260_v5 = vunpack.i.l.bf16 %v6569_v14 }
 0x17a   : > { %v4391_v23 = vunpack.i.h.bf16 %v4389_v0  ;;  %v4390_v31 = vunpack.i.l.bf16 %v4389_v0  ;;  %v4336_v63 = vunpack.i.h.bf16 %v6843_v18  ;;  %v4335_v39 = vunpack.i.l.bf16 %v6843_v18 }
 0x17b   : > { %3735 = vmatprep.mubr.msk.bf16.mxu0 %vm1643_vm12, %v1602_v42  ;;  %v4341_v19 = vunpack.i.h.bf16 %v6915_v41  ;;  %v1603_v61 = vpack.c.bf16 %v1575_v7, %v1574_v33  ;;  %v4340_v10 = vunpack.i.l.bf16 %v6915_v41  ;;  %v4396_v52 = vunpack.i.h.bf16 %v4394_v46  ;;  %v4404_v16 = vpop.permute.xlu1 %4403 }
 0x17c   : > { %v1576_v50 = vsel %vm1567_vm11, %v1543_v30, %v4390_v31  ;;  %v1577_v32 = vsel %vm1567_vm11, %v1544_v55, %v4391_v23  ;;  %v4395_v56 = vunpack.i.l.bf16 %v4394_v46  ;;  %v1481_v21 = vsel %vm1468_vm8, %v6847_v20, %v4180_v8 }
 0x17d   : > { %v4399_v36 = vpop.permute.xlu0 %4398  ;;  %v1604_v47 = vpack.c.bf16 %v1577_v32, %v1576_v50  ;;  %v9170_v53 = vunpack.i.h.bf16 %v9168_v60  ;;  %v7064_v18 = vsel %vm1468_vm8, %v6855_v29, %v4195_v24  ;;  %v7068_v41 = vsel %vm1468_vm8, %v6860_v15, %v4196_v51 }
 0x17e   : > { %v4401_v27 = vunpack.i.h.bf16 %v4399_v36  ;;  %v4400_v44 = vunpack.i.l.bf16 %v4399_v36  ;;  %v1512_v20 = vsel %vm1501_vm9, %v6962_v26, %v4255_v3  ;;  %v1513_v60 = vsel %vm1501_vm9, %v6966_v1, %v4256_v12  ;;  %v9171_v1 = vld [vmem:[#allocation7_spill] sm:$0xff] }
 0x17f   : > { %v1482_v14 = vsel %vm1468_vm8, %v6851_v57, %v9170_v53  ;;  %v1514_v8 = vsel %vm1501_vm9, %v1481_v21, %v4260_v5  ;;  %v1545_v29 = vsel %vm1534_vm10, %v1512_v20, %v4335_v39  ;;  %v1546_v54 = vsel %vm1534_vm10, %v1513_v60, %v4336_v63  ;;  %v7096_v51 = vpop.permute.xlu1 %4413 }
 0x180   : > { %3736 = vmatmul.mubr.msk.bf16.gmra.mxu0 %vm1643_vm12, %v1603_v61  ;;  %v1515_v25 = vsel %vm1501_vm9, %v1482_v14, %v4261_v58  ;;  %v1547_v15 = vsel %vm1534_vm10, %v1514_v8, %v4340_v10  ;;  %v1578_v26 = vsel %vm1567_vm11, %v1545_v29, %v4395_v56  ;;  %v1579_v4 = vsel %vm1567_vm11, %v1546_v54, %v4396_v52 }
 0x181   : > { %v4409_v57 = vpop.permute.xlu0 %4408  ;;  %3739 = vmatprep.mubr.msk.bf16.mxu0 %vm1643_vm12, %v1604_v47  ;;  %v1548_v48 = vsel %vm1534_vm10, %v1515_v25, %v4341_v19  ;;  %v4191_v0 = vunpack.i.h.bf16 %v9171_v1  ;;  %v4190_v42 = vunpack.i.l.bf16 %v9171_v1  ;;  %v1580_v43 = vsel %vm1567_vm11, %v1547_v15, %v4400_v44  ;;  %v9174_v44 = vld [vmem:[#allocation50_spill] sm:$0xff] }
 0x182   : > { %v1581_v38 = vsel %vm1567_vm11, %v1548_v48, %v4401_v27  ;;  %v4266_v46 = vunpack.i.h.bf16 %v6556_v2  ;;  %v4265_v23 = vunpack.i.l.bf16 %v6556_v2  ;;  %v4271_v31 = vunpack.i.h.bf16 %v6610_v49 }
 0x183   : > { %v4270_v30 = vunpack.i.l.bf16 %v6610_v49  ;;  %v4346_v33 = vunpack.i.h.bf16 %v6902_v28  ;;  %v4345_v7 = vunpack.i.l.bf16 %v6902_v28  ;;  %v4351_v35 = vunpack.i.h.bf16 %v6948_v45  ;;  %v9172_v28 = vld [vmem:[#allocation47_spill] sm:$0xff]  ;;  %v7125_v27 = vpop.permute.xlu1 %4423 }
 0x184   : > { %v1605_v24 = vpack.c.bf16 %v1579_v4, %v1578_v26  ;;  %v4350_v50 = vunpack.i.l.bf16 %v6948_v45  ;;  %v4406_v32 = vunpack.i.h.bf16 %v4404_v16  ;;  %v4405_v12 = vunpack.i.l.bf16 %v4404_v16 }
 0x185   : > { %v7091_v55 = vpop.permute.xlu0 %4418  ;;  %v1606_v2 = vpack.c.bf16 %v1581_v38, %v1580_v43  ;;  %v1485_v3 = vsel %vm1468_vm8, %v6864_v22, %v4190_v42  ;;  %v1486_v49 = vsel %vm1468_vm8, %v6868_v11, %v4191_v0  ;;  %v4411_v58 = vunpack.i.h.bf16 %v4409_v57 }
 0x186   : > { %v4410_v5 = vunpack.i.l.bf16 %v4409_v57  ;;  %v4206_v36 = vunpack.i.h.bf16 %v9172_v28  ;;  %v4205_v63 = vunpack.i.l.bf16 %v9172_v28  ;;  %v1516_v45 = vsel %vm1501_vm9, %v6980_v37, %v4265_v23  ;;  %v9175_v57 = vld [vmem:[#allocation18_spill] sm:$0xff] }
 0x187   : > { %v1517_v39 = vsel %vm1501_vm9, %v6986_v62, %v4266_v46  ;;  %v1518_v22 = vsel %vm1501_vm9, %v1485_v3, %v4270_v30  ;;  %v1519_v11 = vsel %vm1501_vm9, %v1486_v49, %v4271_v31  ;;  %v1549_v19 = vsel %vm1534_vm10, %v1516_v45, %v4345_v7  ;;  %v9173_v62 = vld [vmem:[#allocation5_spill] sm:$0xff] }
 0x188   : > { %3740 = vmatmul.mubr.msk.bf16.gmra.mxu0 %vm1643_vm12, %v1605_v24  ;;  %v1550_v61 = vsel %vm1534_vm10, %v1517_v39, %v4346_v33  ;;  %v1551_v10 = vsel %vm1534_vm10, %v1518_v22, %v4350_v50  ;;  %v1552_v52 = vsel %vm1534_vm10, %v1519_v11, %v4351_v35  ;;  %v1582_v56 = vsel %vm1567_vm11, %v1549_v19, %v4405_v12  ;;  %v7157_v33 = vpop.permute.xlu1 %4433  ;;  %v9176_v35 = vld [vmem:[#allocation8_spill] sm:$0xff]  ;;  %v9178_v49 = vld [vmem:[#allocation53_spill] sm:$0xff] }
 0x189   : > { %3743 = vmatprep.mubr.msk.bf16.mxu0 %vm1643_vm12, %v1606_v2  ;;  %v1583_v37 = vsel %vm1567_vm11, %v1550_v61, %v4406_v32  ;;  %v7119_v47 = vpop.permute.xlu0 %4428  ;;  %v4201_v21 = vunpack.i.h.bf16 %v9173_v62  ;;  %v4200_v53 = vunpack.i.l.bf16 %v9173_v62  ;;  %v1584_v14 = vsel %vm1567_vm11, %v1551_v10, %v4410_v5  ;;  %v9177_v12 = vld [vmem:[#allocation52_spill] sm:$0xff]  ;;  %v9179_v10 = vld [vmem:[#allocation9_spill] sm:$0xff] }
 0x18a   : > { %v1585_v16 = vsel %vm1567_vm11, %v1552_v52, %v4411_v58  ;;  %v4276_v20 = vunpack.i.h.bf16 %v9174_v44  ;;  %v4275_v60 = vunpack.i.l.bf16 %v9174_v44  ;;  %v4281_v8 = vunpack.i.h.bf16 %v9175_v57 }
 0x18b   : > { %v4280_v25 = vunpack.i.l.bf16 %v9175_v57  ;;  %v4356_v29 = vunpack.i.h.bf16 %v6931_v9  ;;  %v4355_v54 = vunpack.i.l.bf16 %v6931_v9  ;;  %v4361_v15 = vunpack.i.h.bf16 %v6991_v34 }
 0x18c   : > { %v1607_v48 = vpack.c.bf16 %v1583_v37, %v1582_v56  ;;  %v4360_v26 = vunpack.i.l.bf16 %v6991_v34  ;;  %v4416_v4 = vunpack.i.h.bf16 %v7096_v51  ;;  %v4415_v1 = vunpack.i.l.bf16 %v7096_v51  ;;  %v4444_v37 = vpop.permute.xlu1 %4443 }
 0x18d   : > { %v1608_v0 = vpack.c.bf16 %v1585_v16, %v1584_v14  ;;  %v1491_v42 = vsel %vm1468_vm8, %v6872_v59, %v4205_v63  ;;  %v1492_v43 = vsel %vm1468_vm8, %v6878_v6, %v4206_v36  ;;  %v4421_v38 = vunpack.i.h.bf16 %v7091_v55  ;;  %v4439_v31 = vpop.permute.xlu0 %4438  ;;  %v9181_v14 = vld [vmem:[#allocation26_spill] sm:$0xff] }
 0x18e   : > { %v4420_v9 = vunpack.i.l.bf16 %v7091_v55  ;;  %v1489_v34 = vsel %vm1468_vm8, %v6882_v40, %v4200_v53  ;;  %v1490_v46 = vsel %vm1468_vm8, %v6888_v13, %v4201_v21  ;;  %v1520_v23 = vsel %vm1501_vm9, %v7064_v18, %v4275_v60 }
 0x18f   : > { %v1521_v59 = vsel %vm1501_vm9, %v7068_v41, %v4276_v20  ;;  %v1522_v6 = vsel %vm1501_vm9, %v1489_v34, %v4280_v25  ;;  %v1523_v30 = vsel %vm1501_vm9, %v1490_v46, %v4281_v8  ;;  %v1553_v55 = vsel %vm1534_vm10, %v1520_v23, %v4355_v54 }
 0x190   : > { %3744 = vmatmul.mubr.msk.bf16.gmra.mxu0 %vm1643_vm12, %v1607_v48  ;;  %v1554_v40 = vsel %vm1534_vm10, %v1521_v59, %v4356_v29  ;;  %v1555_v13 = vsel %vm1534_vm10, %v1522_v6, %v4360_v26  ;;  %v1556_v18 = vsel %vm1534_vm10, %v1523_v30, %v4361_v15  ;;  %v1586_v7 = vsel %vm1567_vm11, %v1553_v55, %v4415_v1  ;;  %v9182_v15 = vld [vmem:[#allocation48_spill] sm:$0xff]  ;;  %v4454_v6 = vpop.permute.xlu1 %4453 }
 0x191   : > { %3747 = vmatprep.mubr.msk.bf16.mxu0 %vm1643_vm12, %v1608_v0  ;;  %v1587_v41 = vsel %vm1567_vm11, %v1554_v40, %v4416_v4  ;;  %v4211_v51 = vunpack.i.h.bf16 %v9176_v35  ;;  %v4210_v24 = vunpack.i.l.bf16 %v9176_v35  ;;  %v1588_v50 = vsel %vm1567_vm11, %v1555_v13, %v4420_v9  ;;  %v4449_v19 = vpop.permute.xlu0 %4448  ;;  %v9183_v0 = vld [vmem:[#allocation17_spill] sm:$0xff]  ;;  %v9186_v35 = vld [vmem:[#allocation22_spill] sm:$0xff] }
 0x192   : > { %v1589_v32 = vsel %vm1567_vm11, %v1556_v18, %v4421_v38  ;;  %v4286_v2 = vunpack.i.h.bf16 %v9177_v12  ;;  %v4285_v3 = vunpack.i.l.bf16 %v9177_v12  ;;  %v4291_v58 = vunpack.i.h.bf16 %v9178_v49  ;;  %v9184_v38 = vld [vmem:[#allocation20_spill] sm:$0xff]  ;;  %v9188_v12 = vld [vmem:[#allocation29_spill] sm:$0xff] }
 0x193   : > { %v4290_v5 = vunpack.i.l.bf16 %v9178_v49  ;;  %v4366_v28 = vunpack.i.h.bf16 %v6972_v17  ;;  %v4365_v36 = vunpack.i.l.bf16 %v6972_v17  ;;  %v4426_v63 = vunpack.i.h.bf16 %v7125_v27  ;;  %v9180_v17 = vld [vmem:[#allocation27_spill] sm:$0xff] }
 0x194   : > { %v1609_v45 = vpack.c.bf16 %v1587_v41, %v1586_v7  ;;  %v4425_v39 = vunpack.i.l.bf16 %v7125_v27  ;;  %v4431_v22 = vunpack.i.h.bf16 %v7119_v47  ;;  %v4430_v11 = vunpack.i.l.bf16 %v7119_v47  ;;  %v9185_v7 = vld [vmem:[#allocation24_spill] sm:$0xff] }
 0x195   : > { %v1610_v61 = vpack.c.bf16 %v1589_v32, %v1588_v50  ;;  %v4216_v52 = vunpack.i.h.bf16 %v9179_v10  ;;  %v4215_v56 = vunpack.i.l.bf16 %v9179_v10  ;;  %v4441_v62 = vunpack.i.h.bf16 %v4439_v31  ;;  %v4459_v46 = vpop.permute.xlu0 %4458  ;;  %v9187_v32 = vld [vmem:[#allocation30_spill] sm:$0xff]  ;;  %v4464_v10 = vpop.permute.xlu1 %4463 }
 0x196   : > { %v4440_v21 = vunpack.i.l.bf16 %v4439_v31  ;;  %v1493_v53 = vsel %vm1468_vm8, %v9180_v17, %v4210_v24  ;;  %v1494_v16 = vsel %vm1468_vm8, %v9181_v14, %v4211_v51  ;;  %v1524_v27 = vsel %vm1501_vm9, %v1491_v42, %v4285_v3  ;;  %v9194_v14 = vld [vmem:[#allocation51_spill] sm:$0xff] }
 0x197   : > { %v1525_v47 = vsel %vm1501_vm9, %v1492_v43, %v4286_v2  ;;  %v1526_v44 = vsel %vm1501_vm9, %v1493_v53, %v4290_v5  ;;  %v1527_v20 = vsel %vm1501_vm9, %v1494_v16, %v4291_v58  ;;  %v1557_v60 = vsel %vm1534_vm10, %v1524_v27, %v4365_v36  ;;  %v9195_v27 = vld [vmem:[#allocation21_spill] sm:$0xff] }
 0x198   : > { %3748 = vmatmul.mubr.msk.bf16.gmra.mxu0 %vm1643_vm12, %v1609_v45  ;;  %v1558_v57 = vsel %vm1534_vm10, %v1525_v47, %v4366_v28  ;;  %v1590_v8 = vsel %vm1567_vm11, %v1557_v60, %v4425_v39  ;;  %v1559_v29 = vsel %vm1534_vm10, %v1526_v44, %v4430_v11  ;;  %v1560_v54 = vsel %vm1534_vm10, %v1527_v20, %v4431_v22  ;;  %v9189_v11 = vld [vmem:[#allocation12_spill] sm:$0xff] }
 0x199   : > { %3751 = vmatprep.mubr.msk.bf16.mxu0 %vm1643_vm12, %v1610_v61  ;;  %v1591_v25 = vsel %vm1567_vm11, %v1558_v57, %v4426_v63  ;;  %v4221_v48 = vunpack.i.h.bf16 %v9182_v15  ;;  %v4220_v26 = vunpack.i.l.bf16 %v9182_v15  ;;  %v1592_v4 = vsel %vm1567_vm11, %v1559_v29, %v4440_v21  ;;  %v9192_v21 = vld [vmem:[#allocation14_spill] sm:$0xff]  ;;  %v9196_v20 = vld [vmem:[#allocation92_spill] sm:$0xff] }
 0x19a   : > { %v1593_v1 = vsel %vm1567_vm11, %v1560_v54, %v4441_v62  ;;  %v4296_v42 = vunpack.i.h.bf16 %v9183_v0  ;;  %v4295_v43 = vunpack.i.l.bf16 %v9183_v0  ;;  %v4301_v9 = vunpack.i.h.bf16 %v9184_v38 }
 0x19b   : > { %v4300_v34 = vunpack.i.l.bf16 %v9184_v38  ;;  %v4436_v23 = vunpack.i.h.bf16 %v7157_v33  ;;  %v4435_v59 = vunpack.i.l.bf16 %v7157_v33  ;;  %v4446_v31 = vunpack.i.h.bf16 %v4444_v37 }
 0x19c   : > { %v1611_v30 = vpack.c.bf16 %v1591_v25, %v1590_v8  ;;  %v4445_v55 = vunpack.i.l.bf16 %v4444_v37  ;;  %v4451_v40 = vunpack.i.h.bf16 %v4449_v19  ;;  %v4450_v13 = vunpack.i.l.bf16 %v4449_v19  ;;  %v9190_v37 = vld [vmem:[#allocation76_spill] sm:$0xff] }
 0x19d   : > { %v1612_v18 = vpack.c.bf16 %v1593_v1, %v1592_v4  ;;  %v1495_v41 = vsel %vm1468_vm8, %v9185_v7, %v4215_v56  ;;  %v1496_v51 = vsel %vm1468_vm8, %v9186_v35, %v4216_v52  ;;  %v4461_v24 = vunpack.i.h.bf16 %v4459_v46 }
 0x19e   : > { %v4460_v50 = vunpack.i.l.bf16 %v4459_v46  ;;  %v1497_v33 = vsel %vm1468_vm8, %v9187_v32, %v4220_v26  ;;  %v1498_v2 = vsel %vm1468_vm8, %v9188_v12, %v4221_v48  ;;  %v1528_v3 = vsel %vm1501_vm9, %v1495_v41, %v4295_v43  ;;  %v9202_v12 = vld [vmem:[#allocation31_spill] sm:$0xff] }
 0x19f   : > { %v1529_v49 = vsel %vm1501_vm9, %v1496_v51, %v4296_v42  ;;  %v1530_v58 = vsel %vm1501_vm9, %v1497_v33, %v4300_v34  ;;  %v1531_v5 = vsel %vm1501_vm9, %v1498_v2, %v4301_v9  ;;  %v1561_v28 = vsel %vm1534_vm10, %v1528_v3, %v4435_v59  ;;  %v9199_v59 = vld [vmem:[#allocation11_spill] sm:$0xff]  ;;  %v9201_v33 = vld [vmem:[#allocation46_spill] sm:$0xff]  ;;  %v7277_v2 = vld [vmem:[%s8706_s2] ss:$0 sm:$0xff] }
 0x1a0   : > { %3752 = vmatmul.mubr.msk.bf16.gmra.mxu0 %vm1643_vm12, %v1611_v30  ;;  %v1562_v36 = vsel %vm1534_vm10, %v1529_v49, %v4436_v23  ;;  %v1594_v63 = vsel %vm1567_vm11, %v1561_v28, %v4445_v55  ;;  %v1563_v39 = vsel %vm1534_vm10, %v1530_v58, %v4450_v13  ;;  %v1564_v22 = vsel %vm1534_vm10, %v1531_v5, %v4451_v40 }
 0x1a1   : > { %3755 = vmatprep.mubr.msk.bf16.mxu0 %vm1643_vm12, %v1612_v18  ;;  %v1595_v45 = vsel %vm1567_vm11, %v1562_v36, %v4446_v31  ;;  %v4226_v19 = vunpack.i.h.bf16 %v9189_v11  ;;  %v4225_v61 = vunpack.i.l.bf16 %v9189_v11  ;;  %v1596_v52 = vsel %vm1567_vm11, %v1563_v39, %v4460_v50 }
 0x1a2   : > { %v1597_v56 = vsel %vm1567_vm11, %v1564_v22, %v4461_v24  ;;  %v9191_v62 = vunpack.i.l.bf16 %v9190_v37  ;;  %v9193_v53 = vunpack.i.h.bf16 %v9190_v37  ;;  %v4306_v47 = vunpack.i.h.bf16 %v9195_v27 }
 0x1a3   : > { %v4305_v44 = vunpack.i.l.bf16 %v9195_v27  ;;  %v9197_v60 = vunpack.i.l.bf16 %v9196_v20  ;;  %v4456_v8 = vunpack.i.h.bf16 %v4454_v6  ;;  %v4455_v25 = vunpack.i.l.bf16 %v4454_v6  ;;  %v9200_v6 = vld [vmem:[#allocation49_spill] sm:$0xff] }
 0x1a4   : > { %v1433_v17 = vsel %vm1402_vm6, %v9192_v21, %v9191_v62  ;;  %v1434_v16 = vsel %vm1402_vm6, %v9194_v14, %v9193_v53  ;;  %v1613_v29 = vpack.c.bf16 %v1595_v45, %v1594_v63  ;;  %v9198_v54 = vunpack.i.h.bf16 %v9196_v20 }
 0x1a5   : > { %v1466_v57 = vsel %vm1435_vm7, %v1433_v17, %v9197_v60  ;;  %v4466_v48 = vunpack.i.h.bf16 %v4464_v10  ;;  %v4465_v26 = vunpack.i.l.bf16 %v4464_v10  ;;  %v1614_v4 = vpack.c.bf16 %v1597_v56, %v1596_v52 }
 0x1a6   : > { %v1467_v15 = vsel %vm1435_vm7, %v1434_v16, %v9198_v54  ;;  %v1499_v1 = vsel %vm1468_vm8, %v1466_v57, %v4225_v61  ;;  %v2039_v31 = vsel %vm1922_vm5, %v9199_v59, 0.0  ;;  %v2088_v30 = vrot.slane %v9200_v6, 1 }
 0x1a7   : > { %v1500_v0 = vsel %vm1468_vm8, %v1467_v15, %v4226_v19  ;;  %v1532_v42 = vsel %vm1501_vm9, %v1499_v1, %v4305_v44  ;;  %v2089_v55 = vrot.slane %v9199_v59, 1  ;;  %v2091_v40 = vrot.slane %v2039_v31, 1 }
 0x1a8   : > { %3756 = vmatmul.mubr.msk.bf16.gmra.mxu0 %vm1643_vm12, %v1613_v29  ;;  %v1533_v43 = vsel %vm1501_vm9, %v1500_v0, %v4306_v47  ;;  %v1565_v38 = vsel %vm1534_vm10, %v1532_v42, %v4455_v25  ;;  %v2264_v41 = vrot.slane %v9200_v6, 2  ;;  %v2265_v35 = vrot.slane %v9199_v59, 2 }
 0x1a9   : > { %3759 = vmatprep.mubr.msk.bf16.mxu0 %vm1643_vm12, %v1614_v4  ;;  %v1566_v9 = vsel %vm1534_vm10, %v1533_v43, %v4456_v8  ;;  %v1598_v34 = vsel %vm1567_vm11, %v1565_v38, %v4465_v26  ;;  %v2090_v13 = vsel %vm380_vm0, %v2088_v30, %v2089_v55  ;;  %v2092_v18 = vsel %vm380_vm0, %v2089_v55, %v2091_v40 }
 0x1aa   : > { %v1599_v46 = vsel %vm1567_vm11, %v1566_v9, %v4466_v48  ;;  %v4467_v7 = vpack.i.bf16 %v2092_v18, %v2090_v13  ;;  %v2267_v51 = vrot.slane %v2039_v31, 2  ;;  %v2266_v24 = vsel %vm557_vm1, %v2264_v41, %v2265_v35 }
 0x1ab   : > { %v1615_v23 = vpack.c.bf16 %v1599_v46, %v1598_v34 }
 0x1ac   : > { %4468 = vrot.lane.b32.xlu0 %v4467_v7, %s5254_s11  ;;  %4483 = vrot.lane.b32.xlu1 %v4467_v7, %s5263_s9  ;;  %v2268_v50 = vsel %vm557_vm1, %v2265_v35, %v2267_v51 }
 0x1ad   : > { %v4472_v32 = vpack.i.bf16 %v2268_v50, %v2266_v24 }
 0x1b0   : > { %3760 = vmatmul.mubr.msk.bf16.gmra.mxu0 %vm1643_vm12, %v1615_v23  ;;  %4473 = vrot.lane.b32.xlu0 %v4472_v32, %s5256_s13 }
 0x1b1   : > { %4488 = vrot.lane.b32.xlu1 %v4472_v32, %s5264_s10 }
 0x1b4   : > { %4493 = vrot.lane.b32.xlu0 %v9202_v12, %s5265_s12 }
 0x1b5   : > { %4498 = vrot.lane.b32.xlu1 %v9201_v33, %s5265_s12 }
 0x238   : > { %v3733_v3 = vpop.f32.mrf.mxu0 }
 0x239   : > { %v1739_v49 = vadd.f32 %v3733_v3, %v7277_v2 }
 0x23a   : > { %v1730_v58 = vpop.f32.mrf.mxu0 }
 0x23b   : > { %v1731_v5 = vadd.f32 %v7277_v2, %v1730_v58  ;;  %v1859_v36 = vmax.f32 %v1739_v49, 0.0 }
 0x23c   : > { %v3734_v28 = vpop.f32.mrf.mxu0 }
 0x23d   : > { %v1742_v63 = vadd.f32 %v3734_v28, %v7277_v2  ;;  %v1857_v11 = vmax.f32 %v1731_v5, 0.0  ;;  %v1928_v61 = vrot.slane %v1859_v36, 7 }
 0x23e   : > { %v1733_v45 = vpop.f32.mrf.mxu0 }
 0x23f   : > { %v1860_v39 = vmax.f32 %v1742_v63, 0.0  ;;  %v1734_v22 = vadd.f32 %v7277_v2, %v1733_v45  ;;  %v1925_v17 = vrot.slane %v1857_v11, 7  ;;  %v7289_v27 = vsel %vm1922_vm5, 0.0, %v1928_v61 }
 0x240   : > { %v3737_v19 = vpop.f32.mrf.mxu0  ;;  %9204 = vst [vmem:[#allocation32_spill] sm:$0xff] %v7289_v27  ;;  %v2098_v60 = vrot.slane %v7289_v27, 1  ;;  %v2274_v18 = vrot.slane %v7289_v27, 2 }
 0x241   : > { %v1929_v10 = vrot.slane %v1860_v39, 7  ;;  %v1858_v52 = vmax.f32 %v1734_v22, 0.0  ;;  %v7297_v57 = vsel %vm1922_vm5, 0.0, %v1925_v17  ;;  %v1755_v31 = vadd.f32 %v3737_v19, %v7277_v2 }
 0x242   : > { %v1746_v56 = vpop.f32.mrf.mxu0  ;;  %9206 = vst [vmem:[#allocation34_spill] sm:$0xff] %v7297_v57  ;;  %v2093_v1 = vrot.slane %v7297_v57, 1  ;;  %v2269_v58 = vrot.slane %v7297_v57, 2 }
 0x243   : > { %v7284_v37 = vsel %vm1922_vm5, %v1928_v61, %v1929_v10  ;;  %v2041_v62 = vsel %vm1922_vm5, %v1929_v10, 0.0  ;;  %v1926_v21 = vrot.slane %v1858_v52, 7  ;;  %v1863_v35 = vmax.f32 %v1755_v31, 0.0 }
 0x244   : > { %9203 = vst [vmem:[#allocation33_spill] sm:$0xff] %v7284_v37  ;;  %v2099_v53 = vrot.slane %v7284_v37, 1  ;;  %v2101_v14 = vrot.slane %v2041_v62, 1  ;;  %v3738_v16 = vpop.f32.mrf.mxu0  ;;  %v7302_v25 = vpack.i.bf16 %v7284_v37, %v7289_v27  ;;  %v2275_v46 = vrot.slane %v7284_v37, 2 }
 0x245   : > { %v7292_v47 = vsel %vm1922_vm5, %v1925_v17, %v1926_v21  ;;  %v2040_v44 = vsel %vm1922_vm5, %v1926_v21, 0.0  ;;  %v1758_v9 = vadd.f32 %v3738_v16, %v7277_v2  ;;  %v2277_v23 = vrot.slane %v2041_v62, 2 }
 0x246   : > { %9205 = vst [vmem:[#allocation36_spill] sm:$0xff] %v7292_v47  ;;  %v1749_v20 = vpop.f32.mrf.mxu0  ;;  %v2102_v8 = vsel %vm380_vm0, %v2099_v53, %v2101_v14  ;;  %9207 = vst [vmem:[#allocation54_spill] sm:$0xff] %v7302_v25  ;;  %v2094_v54 = vrot.slane %v7292_v47, 1  ;;  %v2096_v15 = vrot.slane %v2040_v44, 1  ;;  %v4507_v48 = vpack.i.bf16 %v7292_v47, %v7297_v57  ;;  %4503 = vrot.lane.b32.xlu1 %v7302_v25, %s5258_s15 }
 0x247   : > { %v2100_v26 = vsel %vm380_vm0, %v2098_v60, %v2099_v53  ;;  %v1864_v40 = vmax.f32 %v1758_v9, 0.0  ;;  %v2278_v7 = vsel %vm557_vm1, %v2275_v46, %v2277_v23  ;;  %v1750_v41 = vadd.f32 %v7277_v2, %v1749_v20 }
 0x248   : > { %v7304_v29 = vpop.f32.mrf.mxu0  ;;  %4508 = vrot.lane.b32.xlu0 %v4507_v48, %s5258_s15  ;;  %v7316_v0 = vpack.i.bf16 %v2102_v8, %v2100_v26  ;;  %v2095_v43 = vsel %vm380_vm0, %v2093_v1, %v2094_v54  ;;  %v2097_v38 = vsel %vm380_vm0, %v2094_v54, %v2096_v15  ;;  %v1747_v51 = vadd.f32 %v7277_v2, %v1746_v56 }
 0x249   : > { %v4527_v30 = vpack.i.bf16 %v2097_v38, %v2095_v43  ;;  %v2276_v24 = vsel %vm557_vm1, %v2274_v18, %v2275_v46  ;;  %v2270_v32 = vrot.slane %v7292_v47, 2  ;;  %v2272_v33 = vrot.slane %v2040_v44, 2 }
 0x24a   : > { %v7312_v4 = vpop.f32.mrf.mxu0  ;;  %9208 = vst [vmem:[#allocation55_spill] sm:$0xff] %v7316_v0  ;;  %4523 = vrot.lane.b32.xlu1 %v7316_v0, %s5260_s7  ;;  %v1935_v12 = vrot.slane %v1864_v40, 7  ;;  %v7340_v3 = vpack.i.bf16 %v2278_v7, %v2276_v24  ;;  %v1862_v49 = vmax.f32 %v1750_v41, 0.0  ;;  %v1934_v5 = vrot.slane %v1863_v35, 7 }
 0x24b   : > { %v1861_v28 = vmax.f32 %v1747_v51, 0.0  ;;  %v2271_v39 = vsel %vm557_vm1, %v2269_v58, %v2270_v32  ;;  %v2273_v22 = vsel %vm557_vm1, %v2270_v32, %v2272_v33  ;;  %v1771_v43 = vadd.f32 %v7304_v29, %v7277_v2 }
 0x24c   : > { %v3742_v42 = vpop.f32.mrf.mxu0  ;;  %4513 = vrot.lane.b32.xlu0 %v7316_v0, %s5254_s11  ;;  %9209 = vst [vmem:[#allocation56_spill] sm:$0xff] %v7340_v3  ;;  %v7348_v63 = vsel %vm1922_vm5, %v1934_v5, %v1935_v12  ;;  %v2043_v45 = vsel %vm1922_vm5, %v1935_v12, 0.0  ;;  %v1932_v11 = vrot.slane %v1862_v49, 7  ;;  %v7354_v19 = vsel %vm1922_vm5, 0.0, %v1934_v5 }
 0x24d   : > { %9210 = vst [vmem:[#allocation57_spill] sm:$0xff] %v7348_v63  ;;  %9211 = vst [vmem:[#allocation58_spill] sm:$0xff] %v7354_v19  ;;  %v1931_v61 = vrot.slane %v1861_v28, 7  ;;  %v2109_v10 = vrot.slane %v7348_v63, 1  ;;  %v2111_v52 = vrot.slane %v2043_v45, 1  ;;  %v7357_v56 = vpack.i.bf16 %v2273_v22, %v2271_v39 }
 0x24e   : > { %v1765_v34 = vpop.f32.mrf.mxu0  ;;  %4528 = vrot.lane.b32.xlu1 %v4527_v30, %s5254_s11  ;;  %v2042_v17 = vsel %vm1922_vm5, %v1932_v11, 0.0  ;;  %v2108_v53 = vrot.slane %v7354_v19, 1  ;;  %v1774_v44 = vadd.f32 %v3742_v42, %v7277_v2  ;;  %v7376_v20 = vpack.i.bf16 %v7348_v63, %v7354_v19 }
 0x24f   : > { %9212 = vst [vmem:[#allocation59_spill] sm:$0xff] %v7357_v56  ;;  %v7362_v21 = vsel %vm1922_vm5, %v1931_v61, %v1932_v11  ;;  %v7370_v14 = vsel %vm1922_vm5, 0.0, %v1931_v61  ;;  %v2112_v16 = vsel %vm380_vm0, %v2109_v10, %v2111_v52  ;;  %v2106_v54 = vrot.slane %v2042_v17, 1 }
 0x250   : > { %v7327_v55 = vpop.f32.mrf.mxu0  ;;  %4518 = vrot.lane.b32.xlu0 %v7340_v3, %s5256_s13  ;;  %9213 = vst [vmem:[#allocation39_spill] sm:$0xff] %v7362_v21  ;;  %9214 = vst [vmem:[#allocation38_spill] sm:$0xff] %v7370_v14  ;;  %v2104_v8 = vrot.slane %v7362_v21, 1  ;;  %v7383_v15 = vpack.i.bf16 %v7362_v21, %v7370_v14  ;;  %v2110_v48 = vsel %vm380_vm0, %v2108_v53, %v2109_v10  ;;  %v2103_v26 = vrot.slane %v7370_v14, 1 }
 0x251   : > { %v2285_v1 = vrot.slane %v7348_v63, 2  ;;  %v2287_v42 = vrot.slane %v2043_v45, 2  ;;  %v1766_v38 = vadd.f32 %v7277_v2, %v1765_v34  ;;  %v7395_v9 = vpack.i.bf16 %v2112_v16, %v2110_v48 }
 0x252   : > { %v7330_v13 = vpop.f32.mrf.mxu0  ;;  %4533 = vrot.lane.b32.xlu1 %v7357_v56, %s5256_s13  ;;  %9215 = vst [vmem:[#allocation42_spill] sm:$0xff] %v7383_v15  ;;  %v2107_v23 = vsel %vm380_vm0, %v2104_v8, %v2106_v54  ;;  %v1868_v31 = vmax.f32 %v1774_v44, 0.0  ;;  %v1763_v40 = vadd.f32 %v7277_v2, %v7312_v4  ;;  %v2284_v29 = vrot.slane %v7354_v19, 2 }
 0x253   : > { %v2288_v18 = vsel %vm557_vm1, %v2285_v1, %v2287_v42  ;;  %v1867_v34 = vmax.f32 %v1771_v43, 0.0  ;;  %v2280_v7 = vrot.slane %v7362_v21, 2  ;;  %v2282_v41 = vrot.slane %v2042_v17, 2 }
 0x254   : > { %v7337_v50 = vpop.f32.mrf.mxu0  ;;  %4538 = vrot.lane.b32.xlu0 %v4527_v30, %s5260_s7  ;;  %v2105_v30 = vsel %vm380_vm0, %v2103_v26, %v2104_v8  ;;  %v1866_v35 = vmax.f32 %v1766_v38, 0.0  ;;  %v1941_v4 = vrot.slane %v1868_v31, 7  ;;  %v2286_v32 = vsel %vm557_vm1, %v2284_v29, %v2285_v1 }
 0x255   : > { %v7412_v24 = vpack.i.bf16 %v2107_v23, %v2105_v30  ;;  %v1865_v33 = vmax.f32 %v1763_v40, 0.0  ;;  %v1940_v12 = vrot.slane %v1867_v34, 7  ;;  %v7417_v49 = vpack.i.bf16 %v2288_v18, %v2286_v32 }
 0x256   : > { %v7345_v36 = vpop.f32.mrf.mxu0  ;;  %4543 = vrot.lane.b32.xlu1 %v7376_v20, %s5258_s15  ;;  %v2279_v58 = vrot.slane %v7370_v14, 2  ;;  %v2283_v5 = vsel %vm557_vm1, %v2280_v7, %v2282_v41  ;;  %v1938_v28 = vrot.slane %v1866_v35, 7  ;;  %v2045_v22 = vsel %vm1922_vm5, %v1941_v4, 0.0 }
 0x257   : > { %9216 = vst [vmem:[#allocation41_spill] sm:$0xff] %v7412_v24  ;;  %v7424_v39 = vsel %vm1922_vm5, %v1940_v12, %v1941_v4  ;;  %v1937_v11 = vrot.slane %v1865_v33, 7  ;;  %v7431_v10 = vsel %vm1922_vm5, 0.0, %v1940_v12  ;;  %v1787_v52 = vadd.f32 %v7327_v55, %v7277_v2 }
 0x258   : > { %v7359_v62 = vpop.f32.mrf.mxu0  ;;  %4548 = vrot.lane.b32.xlu0 %v7383_v15, %s5258_s15  ;;  %9217 = vst [vmem:[#allocation60_spill] sm:$0xff] %v7424_v39  ;;  %v2281_v61 = vsel %vm557_vm1, %v2279_v58, %v2280_v7  ;;  %9218 = vst [vmem:[#allocation61_spill] sm:$0xff] %v7431_v10  ;;  %v2119_v53 = vrot.slane %v7424_v39, 1  ;;  %v2121_v16 = vrot.slane %v2045_v22, 1  ;;  %v1790_v8 = vadd.f32 %v7337_v50, %v7277_v2 }
 0x259   : > { %v7435_v17 = vpack.i.bf16 %v2283_v5, %v2281_v61  ;;  %v7439_v44 = vsel %vm1922_vm5, %v1937_v11, %v1938_v28  ;;  %v2118_v55 = vrot.slane %v7431_v10, 1  ;;  %v7451_v48 = vsel %vm1922_vm5, 0.0, %v1937_v11 }
 0x25a   : > { %v7378_v60 = vpop.f32.mrf.mxu0  ;;  %4563 = vrot.lane.b32.xlu1 %v7395_v9, %s5260_s7  ;;  %9219 = vst [vmem:[#allocation62_spill] sm:$0xff] %v7439_v44  ;;  %9220 = vst [vmem:[#allocation63_spill] sm:$0xff] %v7451_v48  ;;  %v2044_v26 = vsel %vm1922_vm5, %v1938_v28, 0.0  ;;  %v1779_v1 = vadd.f32 %v7277_v2, %v7330_v13  ;;  %v1782_v50 = vadd.f32 %v7277_v2, %v7345_v36  ;;  %v1871_v23 = vmax.f32 %v1787_v52, 0.0 }
 0x25b   : > { %v7460_v42 = vpack.i.bf16 %v7424_v39, %v7431_v10  ;;  %v7464_v43 = vpack.i.bf16 %v7439_v44, %v7451_v48  ;;  %v2122_v38 = vsel %vm380_vm0, %v2119_v53, %v2121_v16  ;;  %v1872_v31 = vmax.f32 %v1790_v8, 0.0 }
 0x25c   : > { %v7397_v46 = vpop.f32.mrf.mxu0  ;;  %4553 = vrot.lane.b32.xlu0 %v7395_v9, %s5254_s11  ;;  %v2120_v40 = vsel %vm380_vm0, %v2118_v55, %v2119_v53  ;;  %v2114_v13 = vrot.slane %v7439_v44, 1  ;;  %v2116_v29 = vrot.slane %v2044_v26, 1  ;;  %v1869_v36 = vmax.f32 %v1779_v1, 0.0 }
 0x25d   : > { %v1803_v18 = vadd.f32 %v7359_v62, %v7277_v2  ;;  %v1795_v34 = vadd.f32 %v7277_v2, %v7378_v60  ;;  %v2295_v7 = vrot.slane %v7424_v39, 2  ;;  %v2297_v41 = vrot.slane %v2045_v22, 2 }
 0x25e   : > { %v7410_v51 = vpop.f32.mrf.mxu0  ;;  %4568 = vrot.lane.b32.xlu1 %v7412_v24, %s5254_s11  ;;  %v1870_v35 = vmax.f32 %v1782_v50, 0.0  ;;  %v7480_v4 = vpack.i.bf16 %v2122_v38, %v2120_v40  ;;  %v2294_v32 = vrot.slane %v7431_v10, 2  ;;  %v2113_v33 = vrot.slane %v7451_v48, 1 }
 0x25f   : > { %v1946_v12 = vrot.slane %v1871_v23, 7  ;;  %v1947_v58 = vrot.slane %v1872_v31, 7  ;;  %v2117_v28 = vsel %vm380_vm0, %v2114_v13, %v2116_v29  ;;  %v2290_v62 = vrot.slane %v7439_v44, 2 }
 0x260   : > { %v7421_v45 = vpop.f32.mrf.mxu0  ;;  %4558 = vrot.lane.b32.xlu0 %v7417_v49, %s5256_s13  ;;  %v2292_v11 = vrot.slane %v2044_v26, 2  ;;  %v1806_v60 = vadd.f32 %v7397_v46, %v7277_v2  ;;  %v1943_v22 = vrot.slane %v1869_v36, 7  ;;  %v1875_v61 = vmax.f32 %v1803_v18, 0.0 }
 0x261   : > { %v1873_v52 = vmax.f32 %v1795_v34, 0.0  ;;  %v2289_v53 = vrot.slane %v7451_v48, 2  ;;  %v2298_v16 = vsel %vm557_vm1, %v2295_v7, %v2297_v41  ;;  %v1944_v8 = vrot.slane %v1870_v35, 7 }
 0x262   : > { %v7443_v54 = vpop.f32.mrf.mxu0  ;;  %4573 = vrot.lane.b32.xlu1 %v7435_v17, %s5256_s13  ;;  %v2115_v55 = vsel %vm380_vm0, %v2113_v33, %v2114_v13  ;;  %v7496_v1 = vsel %vm1922_vm5, %v1946_v12, %v1947_v58  ;;  %v2047_v26 = vsel %vm1922_vm5, %v1947_v58, 0.0  ;;  %v2296_v38 = vsel %vm557_vm1, %v2294_v32, %v2295_v7 }
 0x263   : > { %9221 = vst [vmem:[#allocation64_spill] sm:$0xff] %v7496_v1  ;;  %v7503_v46 = vpack.i.bf16 %v2117_v28, %v2115_v55  ;;  %v2293_v23 = vsel %vm557_vm1, %v2290_v62, %v2292_v11  ;;  %v7508_v31 = vsel %vm1922_vm5, 0.0, %v1946_v12  ;;  %v1876_v40 = vmax.f32 %v1806_v60, 0.0 }
 0x264   : > { %4578 = vrot.lane.b32.xlu0 %v7412_v24, %s5260_s7  ;;  %v7467_v30 = vpop.f32.mrf.mxu0  ;;  %9222 = vst [vmem:[#allocation65_spill] sm:$0xff] %v7508_v31  ;;  %v1798_v13 = vadd.f32 %v7277_v2, %v7410_v51  ;;  %v7513_v29 = vsel %vm1922_vm5, 0.0, %v1943_v22  ;;  %v1952_v36 = vrot.slane %v1875_v61, 7  ;;  %v1949_v18 = vrot.slane %v1873_v52, 7 }
 0x265   : > { %v7517_v34 = vpack.i.bf16 %v2298_v16, %v2296_v38  ;;  %v2129_v7 = vrot.slane %v7496_v1, 1  ;;  %v2131_v41 = vrot.slane %v2047_v26, 1  ;;  %v2305_v35 = vrot.slane %v7496_v1, 2 }
 0x266   : > { %4583 = vrot.lane.b32.xlu1 %v7460_v42, %s5258_s15  ;;  %v7484_v5 = vpop.f32.mrf.mxu0  ;;  %v2291_v32 = vsel %vm557_vm1, %v2289_v53, %v2290_v62  ;;  %v2307_v33 = vrot.slane %v2047_v26, 2  ;;  %v7523_v51 = vsel %vm1922_vm5, %v1943_v22, %v1944_v8  ;;  %v2046_v12 = vsel %vm1922_vm5, %v1944_v8, 0.0 }
 0x267   : > { %9223 = vst [vmem:[#allocation66_spill] sm:$0xff] %v7523_v51  ;;  %v7528_v28 = vpack.i.bf16 %v2293_v23, %v2291_v32  ;;  %v2128_v11 = vrot.slane %v7508_v31, 1  ;;  %v2304_v60 = vrot.slane %v7508_v31, 2  ;;  %v1953_v61 = vrot.slane %v1876_v40, 7 }
 0x268   : > { %4588 = vrot.lane.b32.xlu0 %v7464_v43, %s5258_s15  ;;  %v7499_v50 = vpop.f32.mrf.mxu0  ;;  %v1874_v52 = vmax.f32 %v1798_v13, 0.0  ;;  %v2123_v62 = vrot.slane %v7513_v29, 1  ;;  %v2299_v53 = vrot.slane %v7513_v29, 2  ;;  %v7535_v22 = vsel %vm1922_vm5, 0.0, %v1952_v36 }
 0x269   : > { %v7538_v16 = vsel %vm1922_vm5, 0.0, %v1949_v18  ;;  %v2132_v8 = vsel %vm380_vm0, %v2129_v7, %v2131_v41  ;;  %v2124_v55 = vrot.slane %v7523_v51, 1  ;;  %v2126_v26 = vrot.slane %v2046_v12, 1 }
 0x26a   : > { %4603 = vrot.lane.b32.xlu1 %v7480_v4, %s5260_s7  ;;  %v1826_v58 = vpop.f32.mrf.mxu0  ;;  %9224 = vst [vmem:[#allocation67_spill] sm:$0xff] %v7538_v16  ;;  %v2308_v38 = vsel %vm557_vm1, %v2305_v35, %v2307_v33  ;;  %v2300_v23 = vrot.slane %v7523_v51, 2  ;;  %v2302_v40 = vrot.slane %v2046_v12, 2  ;;  %v1819_v13 = vadd.f32 %v7421_v45, %v7277_v2 }
 0x26b   : > { %v7550_v59 = vsel %vm1922_vm5, %v1952_v36, %v1953_v61  ;;  %v1950_v47 = vrot.slane %v1874_v52, 7  ;;  %v1822_v41 = vadd.f32 %v7467_v30, %v7277_v2  ;;  %v2049_v12 = vsel %vm1922_vm5, %v1953_v61, 0.0 }
 0x26c   : > { %4593 = vrot.lane.b32.xlu0 %v7480_v4, %s5254_s11  ;;  %v3758_v32 = vpop.f32.mrf.mxu0  ;;  %v1811_v45 = vadd.f32 %v7277_v2, %v7443_v54  ;;  %v7562_v6 = vpack.i.bf16 %v7496_v1, %v7508_v31  ;;  %v2127_v36 = vsel %vm380_vm0, %v2124_v55, %v2126_v26  ;;  %v7568_v30 = vpack.i.bf16 %v7523_v51, %v7513_v29 }
 0x26d   : > { %v2130_v57 = vsel %vm380_vm0, %v2128_v11, %v2129_v7  ;;  %v2303_v33 = vsel %vm557_vm1, %v2300_v23, %v2302_v40  ;;  %v1879_v27 = vmax.f32 %v1819_v13, 0.0  ;;  %v2141_v26 = vrot.slane %v2049_v12, 1 }
 0x26e   : > { %4608 = vrot.lane.b32.xlu1 %v7503_v46, %s5254_s11  ;;  %v1829_v37 = vpop.f32.mrf.mxu0  ;;  %v7578_v31 = vsel %vm1922_vm5, %v1949_v18, %v1950_v47  ;;  %v1880_v1 = vmax.f32 %v1822_v41, 0.0  ;;  %v2048_v7 = vsel %vm1922_vm5, %v1950_v47, 0.0  ;;  %v1877_v11 = vmax.f32 %v1811_v45, 0.0 }
 0x26f   : > { %9225 = vst [vmem:[#allocation68_spill] sm:$0xff] %v7578_v31  ;;  %v1838_v40 = vadd.f32 %v3758_v32, %v7277_v2  ;;  %v7584_v13 = vpack.i.bf16 %v2132_v8, %v2130_v57  ;;  %v2317_v61 = vrot.slane %v2049_v12, 2  ;;  %v1830_v54 = vadd.f32 %v7277_v2, %v1829_v37 }
 0x270   : > { %4598 = vrot.lane.b32.xlu0 %v7517_v34, %s5256_s13  ;;  %v2125_v14 = vsel %vm380_vm0, %v2123_v62, %v2124_v55  ;;  %v1958_v52 = vrot.slane %v1879_v27, 7  ;;  %v1814_v18 = vadd.f32 %v7277_v2, %v7484_v5  ;;  %v1835_v41 = vadd.f32 %v7499_v50, %v7277_v2 }
 0x271   : > { %v2306_v47 = vsel %vm557_vm1, %v2304_v60, %v2305_v35  ;;  %v2136_v8 = vrot.slane %v2048_v7, 1  ;;  %v1959_v32 = vrot.slane %v1880_v1, 7  ;;  %v1827_v37 = vadd.f32 %v7277_v2, %v1826_v58 }
 0x272   : > { %4613 = vrot.lane.b32.xlu1 %v7528_v28, %s5256_s13  ;;  %v8882_v27 = vrot.slane %v7578_v31, 2  ;;  %v1955_v5 = vrot.slane %v1877_v11, 7  ;;  %v1884_v62 = vmax.f32 %v1838_v40, 0.0  ;;  %v7600_v55 = vpack.i.bf16 %v2127_v36, %v2125_v14 }
 0x273   : > { %v2312_v50 = vrot.slane %v2048_v7, 2  ;;  %v1882_v12 = vmax.f32 %v1830_v54, 0.0  ;;  %v7602_v45 = vpack.i.bf16 %v2308_v38, %v2306_v47  ;;  %v2301_v35 = vsel %vm557_vm1, %v2299_v53, %v2300_v23 }
 0x274   : > { %4618 = vrot.lane.b32.xlu0 %v7503_v46, %s5260_s7  ;;  %v9226_v60 = vrot.slane %v7550_v59, 1  ;;  %v7609_v58 = vsel %vm1922_vm5, 0.0, %v1958_v52  ;;  %v1878_v57 = vmax.f32 %v1814_v18, 0.0  ;;  %v1883_v21 = vmax.f32 %v1835_v41, 0.0 }
 0x275   : > { %v9227_v14 = vrot.slane %v7550_v59, 2  ;;  %v7619_v38 = vsel %vm1922_vm5, %v1958_v52, %v1959_v32  ;;  %v2051_v53 = vsel %vm1922_vm5, %v1959_v32, 0.0  ;;  %v1881_v23 = vmax.f32 %v1827_v37, 0.0 }
 0x276   : > { %4623 = vrot.lane.b32.xlu1 %v7562_v6, %s5258_s15  ;;  %v2142_v1 = vsel %vm380_vm0, %v9226_v60, %v2141_v26  ;;  %v9228_v54 = vrot.slane %v7578_v31, 1  ;;  %v7628_v7 = vsel %vm1922_vm5, 0.0, %v1955_v5  ;;  %v1965_v11 = vrot.slane %v1884_v62, 7 }
 0x277   : > { %v7616_v36 = vsel %vm557_vm1, %v9227_v14, %v2317_v61  ;;  %v7630_v40 = vpack.i.bf16 %v2303_v33, %v2301_v35  ;;  %v2313_v52 = vsel %vm557_vm1, %v8882_v27, %v2312_v50  ;;  %v1962_v18 = vrot.slane %v1882_v12, 7 }
 0x278   : > { %4628 = vrot.lane.b32.xlu0 %v7568_v30, %s5258_s15  ;;  %v2137_v26 = vsel %vm380_vm0, %v9228_v54, %v2136_v8  ;;  %v8884_v41 = vrot.slane %v7619_v38, 1  ;;  %v2151_v47 = vrot.slane %v2051_v53, 1  ;;  %v1956_v32 = vrot.slane %v1878_v57, 7 }
 0x279   : > { %v1964_v37 = vrot.slane %v1883_v21, 7  ;;  %v2324_v8 = vrot.slane %v7609_v58, 2  ;;  %v2325_v62 = vrot.slane %v7619_v38, 2  ;;  %v1961_v35 = vrot.slane %v1881_v23, 7 }
 0x27a   : > { %4643 = vrot.lane.b32.xlu1 %v7584_v13, %s5260_s7  ;;  %v2327_v50 = vrot.slane %v2051_v53, 2  ;;  %v7648_v21 = vsel %vm1922_vm5, %v1965_v11, 0.0  ;;  %v7652_v57 = vpack.i.bf16 %v7550_v59, %v7535_v22  ;;  %v2052_v14 = vsel %vm1922_vm5, %v1962_v18, 0.0 }
 0x27b   : > { %v7645_v12 = vsel %vm1922_vm5, %v1964_v37, %v1965_v11  ;;  %v7655_v60 = vsel %vm1922_vm5, %v1961_v35, %v1962_v18  ;;  %v9232_v23 = vrot.slane %v7550_v59, 1  ;;  %v9233_v54 = vrot.slane %v7535_v22, 1 }
 0x27c   : > { %4633 = vrot.lane.b32.xlu0 %v7584_v13, %s5254_s11  ;;  %9229 = vst [vmem:[#allocation69_spill] sm:$0xff] %v7645_v12  ;;  %9230 = vst [vmem:[#allocation70_spill] sm:$0xff] %v7652_v57  ;;  %v2319_v33 = vrot.slane %v7628_v7, 2  ;;  %v2152_v11 = vsel %vm380_vm0, %v8884_v41, %v2151_v47  ;;  %v7668_v61 = vsel %vm1922_vm5, %v1955_v5, %v1956_v32  ;;  %v2050_v27 = vsel %vm1922_vm5, %v1956_v32, 0.0 }
 0x27d   : > { %9231 = vst [vmem:[#allocation71_spill] sm:$0xff] %v7655_v60  ;;  %v2140_v53 = vsel %vm380_vm0, %v9233_v54, %v9232_v23  ;;  %v7674_v18 = vsel %vm1922_vm5, 0.0, %v1964_v37  ;;  %v7677_v19 = vsel %vm1922_vm5, 0.0, %v1961_v35  ;;  %v2159_v23 = vrot.slane %v7645_v12, 1 }
 0x27e   : > { %4653 = vrot.lane.b32.xlu1 %v7600_v55, %s5254_s11  ;;  %9234 = vst [vmem:[#allocation72_spill] sm:$0xff] %v7677_v19  ;;  %v2161_v54 = vrot.slane %v7648_v21, 1  ;;  %v2328_v5 = vsel %vm557_vm1, %v2325_v62, %v2327_v50  ;;  %v2330_v47 = vrot.slane %v7655_v60, 2  ;;  %v2332_v32 = vrot.slane %v2052_v14, 2 }
 0x27f   : > { %v7685_v41 = vpack.i.bf16 %v2142_v1, %v2140_v53  ;;  %v2144_v37 = vrot.slane %v7668_v61, 1  ;;  %v2146_v63 = vrot.slane %v2050_v27, 1  ;;  %v9236_v35 = vrot.slane %v7578_v31, 1 }
 0x280   : > { %4638 = vrot.lane.b32.xlu0 %v7602_v45, %s5256_s13  ;;  %v9237_v48 = vrot.slane %v7538_v16, 1  ;;  %v2320_v0 = vrot.slane %v7668_v61, 2  ;;  %v2322_v25 = vrot.slane %v2050_v27, 2  ;;  %v2158_v56 = vrot.slane %v7674_v18, 1 }
 0x281   : > { %9235 = vst [vmem:[#allocation73_spill] sm:$0xff] %v7685_v41  ;;  %v2329_v50 = vrot.slane %v7677_v19, 2  ;;  %v2162_v1 = vsel %vm380_vm0, %v2159_v23, %v2161_v54  ;;  %v2154_v53 = vrot.slane %v7655_v60, 1  ;;  %v4677_v24 = vpack.i.bf16 %v7578_v31, %v7538_v16 }
 0x282   : > { %4658 = vrot.lane.b32.xlu1 %v7630_v40, %s5256_s13  ;;  %v2135_v44 = vsel %vm380_vm0, %v9237_v48, %v9236_v35  ;;  %v2333_v48 = vsel %vm557_vm1, %v2330_v47, %v2332_v32  ;;  %v9238_v15 = vrot.slane %v7578_v31, 2  ;;  %v9239_v10 = vrot.slane %v7538_v16, 2 }
 0x283   : > { %v4702_v35 = vpack.i.bf16 %v2137_v26, %v2135_v44  ;;  %v2331_v27 = vsel %vm557_vm1, %v2329_v50, %v2330_v47  ;;  %v2160_v39 = vsel %vm380_vm0, %v2158_v56, %v2159_v23  ;;  %v2153_v3 = vrot.slane %v7677_v19, 1 }
 0x284   : > { %4648 = vrot.lane.b32.xlu0 %v7602_v45, %s5266_s17  ;;  %v2311_v54 = vsel %vm557_vm1, %v9239_v10, %v9238_v15  ;;  %v2323_v44 = vsel %vm557_vm1, %v2320_v0, %v2322_v25  ;;  %v2326_v47 = vsel %vm557_vm1, %v2324_v8, %v2325_v62  ;;  %v7719_v32 = vpack.i.bf16 %v2333_v48, %v2331_v27  ;;  %v3761_v48 = vpop.f32.mrf.mxu0 }
 0x285   : > { %v7721_v50 = vpack.i.bf16 %v2313_v52, %v2311_v54  ;;  %v2155_v56 = vsel %vm380_vm0, %v2153_v3, %v2154_v53  ;;  %v7724_v15 = vpack.i.bf16 %v2162_v1, %v2160_v39  ;;  %v7731_v25 = vpack.i.bf16 %v7619_v38, %v7609_v58  ;;  %v7751_v1 = vpop.permute.xlu1 %4478 }
 0x286   : > { %4673 = vrot.lane.b32.xlu1 %v7652_v57, %s5258_s15  ;;  %v2156_v57 = vrot.slane %v2052_v14, 1  ;;  %v2147_v14 = vsel %vm380_vm0, %v2144_v37, %v2146_v63  ;;  %v2321_v63 = vsel %vm557_vm1, %v2319_v33, %v2320_v0  ;;  %v9241_v10 = vrot.slane %v7619_v38, 1  ;;  %v1842_v54 = vpop.f32.mrf.mxu0 }
 0x287   : > { %9240 = vst [vmem:[#allocation74_spill] sm:$0xff] %v7721_v50  ;;  %v9242_v8 = vrot.slane %v7609_v58, 1  ;;  %v7738_v62 = vpack.i.bf16 %v2328_v5, %v2326_v47  ;;  %v9243_v3 = vrot.slane %v7550_v59, 2  ;;  %v9244_v0 = vrot.slane %v7535_v22, 2 }
 0x288   : > { %4663 = vrot.lane.b32.xlu0 %v7600_v55, %s5260_s7  ;;  %v2157_v26 = vsel %vm380_vm0, %v2154_v53, %v2156_v57  ;;  %v9245_v57 = vrot.slane %v7628_v7, 1  ;;  %v7753_v53 = vpack.i.bf16 %v2323_v44, %v2321_v63  ;;  %v3762_v44 = vpop.f32.mrf.mxu0  ;;  %v7788_v63 = vpack.i.bf16 %v7645_v12, %v7674_v18 }
 0x289   : > { %v2150_v52 = vsel %vm380_vm0, %v9242_v8, %v9241_v10  ;;  %v2316_v39 = vsel %vm557_vm1, %v9244_v0, %v9243_v3  ;;  %v7746_v33 = vpack.i.bf16 %v2157_v26, %v2155_v56  ;;  %v1851_v56 = vadd.f32 %v3761_v48, %v7277_v2 }
 0x28a   : > { %4698 = vrot.lane.b32.xlu1 %v7685_v41, %s5260_s7  ;;  %v2145_v23 = vsel %vm380_vm0, %v9245_v57, %v2144_v37  ;;  %v7755_v5 = vpack.i.bf16 %v2152_v11, %v2150_v52  ;;  %v7768_v37 = vpop.permute.xlu1 %4483  ;;  %v7772_v11 = vpop.permute.xlu0 %4468  ;;  %v1843_v3 = vadd.f32 %v7277_v2, %v1842_v54  ;;  %v7802_v57 = vpack.i.bf16 %v7668_v61, %v7628_v7 }
 0x28b   : > { %v7764_v27 = vpack.i.bf16 %v2147_v14, %v2145_v23  ;;  %9247 = vst [vmem:[#allocation77_spill] sm:$0xff] %v7772_v11  ;;  %v1854_v14 = vadd.f32 %v3762_v44, %v7277_v2  ;;  %v1845_v26 = vpop.f32.mrf.mxu0  ;;  %v1887_v0 = vmax.f32 %v1851_v56, 0.0  ;;  %v2335_v51 = vrot.slane %v7645_v12, 2 }
 0x28c   : > { %4668 = vrot.lane.b32.xlu0 %v7630_v40, %s5266_s17  ;;  %v1846_v10 = vadd.f32 %v7277_v2, %v1845_v26  ;;  %9249 = vst [vmem:[#allocation79_spill] sm:$0xff] %v7802_v57  ;;  %v1885_v48 = vmax.f32 %v1843_v3, 0.0 }
 0x28d   : > { %9246 = vst [vmem:[#allocation75_spill] sm:$0xff] %v7764_v27  ;;  %v1888_v8 = vmax.f32 %v1854_v14, 0.0  ;;  %v1970_v2 = vrot.slane %v1887_v0, 7 }
 0x28e   : > { %4703 = vrot.lane.b32.xlu1 %v4702_v35, %s5254_s11  ;;  %v7783_v47 = vpop.permute.xlu0 %4473 }
 0x28f   : > { %9248 = vst [vmem:[#allocation78_spill] sm:$0xff] %v7783_v47  ;;  %v1971_v23 = vrot.slane %v1888_v8, 7  ;;  %v7821_v8 = vsel %vm1922_vm5, 0.0, %v1970_v2 }
 0x290   : > { %4678 = vrot.lane.b32.xlu0 %v4677_v24, %s5258_s15 }
 0x291   : > { %v7813_v26 = vsel %vm1922_vm5, %v1970_v2, %v1971_v23  ;;  %v2055_v56 = vsel %vm1922_vm5, %v1971_v23, 0.0 }
 0x292   : > { %4708 = vrot.lane.b32.xlu1 %v7721_v50, %s5256_s13  ;;  %v2640_v3 = vrot.slane %v7813_v26, 2  ;;  %v2642_v0 = vrot.slane %v2055_v56, 2 }
 0x294   : > { %4683 = vrot.lane.b32.xlu0 %v4677_v24, %s5262_s8  ;;  %v7760_v24 = vpack.i.bf16 %v7616_v36, %v2316_v39  ;;  %v7777_v36 = vpop.permute.xlu1 %4488  ;;  %v1886_v39 = vmax.f32 %v1846_v10, 0.0  ;;  %v1967_v10 = vrot.slane %v1885_v48, 7  ;;  %v2639_v48 = vrot.slane %v7821_v8, 2 }
 0x296   : > { %4728 = vrot.lane.b32.xlu1 %v7731_v25, %s5258_s15  ;;  %v1968_v44 = vrot.slane %v1886_v39, 7  ;;  %v7838_v47 = vsel %vm1922_vm5, 0.0, %v1967_v10  ;;  %v2641_v16 = vsel %vm557_vm1, %v2639_v48, %v2640_v3  ;;  %v7855_v48 = vpack.i.bf16 %v7655_v60, %v7677_v19 }
 0x297   : > { %v2163_v31 = vrot.slane %v7838_v47, 1  ;;  %v2541_v19 = vrot.slane %v2055_v56, 1 }
 0x298   : > { %4688 = vrot.lane.b32.xlu0 %v7685_v41, %s5254_s11  ;;  %v7793_v52 = vpop.permute.xlu1 %4498  ;;  %v7825_v39 = vsel %vm1922_vm5, %v1967_v10, %v1968_v44 }
 0x299   : > { %v2164_v11 = vrot.slane %v7825_v39, 1  ;;  %v2340_v10 = vrot.slane %v7825_v39, 2 }
 0x29a   : > { %4748 = vrot.lane.b32.xlu1 %v7755_v5, %s5260_s7 }
 0x29c   : > { %4693 = vrot.lane.b32.xlu0 %v7760_v24, %s5256_s13 }
 0x29e   : > { %4753 = vrot.lane.b32.xlu1 %v7764_v27, %s5254_s11 }
 0x2a0   : > { %4713 = vrot.lane.b32.xlu0 %v4702_v35, %s5260_s7 }
 0x2a2   : > { %4758 = vrot.lane.b32.xlu1 %v7753_v53, %s5256_s13 }
 0x2a4   : > { %4718 = vrot.lane.b32.xlu0 %v4702_v35, %s5263_s9  ;;  %v7798_v35 = vpop.permute.xlu0 %4493 }
 0x2a6   : > { %4768 = vrot.lane.b32.xlu1 %v7788_v63, %s5258_s15 }
 0x2a8   : > { %4723 = vrot.lane.b32.xlu0 %v7721_v50, %s5264_s10 }
 0x2aa   : > { %4788 = vrot.lane.b32.xlu1 %v7724_v15, %s5260_s7 }
 0x2ac   : > { %4733 = vrot.lane.b32.xlu0 %v7802_v57, %s5258_s15 }
 0x2ae   : > { %4793 = vrot.lane.b32.xlu1 %v7746_v33, %s5254_s11 }
 0x2b0   : > { %4738 = vrot.lane.b32.xlu0 %v7755_v5, %s5254_s11 }
 0x2b2   : > { %4798 = vrot.lane.b32.xlu1 %v7719_v32, %s5256_s13 }
 0x2b4   : > { %4743 = vrot.lane.b32.xlu0 %v7738_v62, %s5256_s13 }
 0x2b8   : > { %v7808_v54 = vpop.permute.xlu1 %4503  ;;  %4763 = vrot.lane.b32.xlu0 %v7764_v27, %s5260_s7  ;;  %v2337_v27 = vrot.slane %v7648_v21, 2 }
 0x2b9   : > { %9250 = vst [vmem:[#allocation80_spill] sm:$0xff] %v7808_v54 }
 0x2ba   : > { %v7810_v14 = vpop.permute.xlu0 %4508 }
 0x2bb   : > { %9251 = vst [vmem:[#allocation81_spill] sm:$0xff] %v7810_v14  ;;  %v2054_v14 = vsel %vm1922_vm5, %v1968_v44, 0.0  ;;  %v4807_v44 = vpack.i.bf16 %v7813_v26, %v7821_v8 }
 0x2bc   : > { %v7830_v23 = vpop.permute.xlu1 %4523  ;;  %v2166_v54 = vrot.slane %v2054_v14, 1  ;;  %v2342_v57 = vrot.slane %v2054_v14, 2  ;;  %4773 = vrot.lane.b32.xlu0 %v7855_v48, %s5258_s15 }
 0x2bd   : > { %9252 = vst [vmem:[#allocation82_spill] sm:$0xff] %v7830_v23  ;;  %v2643_v23 = vsel %vm557_vm1, %v2640_v3, %v2642_v0  ;;  %4808 = vrot.lane.b32.xlu1 %v4807_v44, %s5258_s15  ;;  %v2165_v3 = vsel %vm380_vm0, %v2163_v31, %v2164_v11 }
 0x2be   : > { %v7835_v2 = vpop.permute.xlu0 %4513  ;;  %v2167_v50 = vsel %vm380_vm0, %v2164_v11, %v2166_v54  ;;  %v2334_v54 = vrot.slane %v7674_v18, 2  ;;  %v2338_v11 = vsel %vm557_vm1, %v2335_v51, %v2337_v27 }
 0x2bf   : > { %9253 = vst [vmem:[#allocation83_spill] sm:$0xff] %v7835_v2  ;;  %v4817_v2 = vpack.i.bf16 %v2643_v23, %v2641_v16  ;;  %v2339_v16 = vrot.slane %v7838_v47, 2  ;;  %v4822_v14 = vpack.i.bf16 %v2167_v50, %v2165_v3  ;;  %v2343_v23 = vsel %vm557_vm1, %v2340_v10, %v2342_v57 }
 0x2c0   : > { %v7850_v41 = vpop.permute.xlu1 %4528  ;;  %v2336_v21 = vsel %vm557_vm1, %v2334_v54, %v2335_v51  ;;  %4778 = vrot.lane.b32.xlu0 %v7724_v15, %s5254_s11  ;;  %v4812_v54 = vpack.i.bf16 %v7825_v39, %v7838_v47 }
 0x2c1   : > { %9254 = vst [vmem:[#allocation84_spill] sm:$0xff] %v7850_v41  ;;  %4818 = vrot.lane.b32.xlu1 %v4817_v2, %s5266_s17  ;;  %v2341_v31 = vsel %vm557_vm1, %v2339_v16, %v2340_v10  ;;  %v7879_v57 = vpack.i.bf16 %v2338_v11, %v2336_v21  ;;  %vm3384_vm1 = vcmask 588800  }
 0x2c2   : > { %v7858_v0 = vpop.permute.xlu0 %4518  ;;  %v4827_v12 = vpack.i.bf16 %v2343_v23, %v2341_v31  ;;  %v2538_v23 = vrot.slane %v7821_v8, 1 }
 0x2c3   : > { %9255 = vst [vmem:[#allocation85_spill] sm:$0xff] %v7858_v0  ;;  %v2539_v0 = vrot.slane %v7813_v26, 1 }
 0x2c4   : > { %v7872_v41 = vpop.permute.xlu1 %4533  ;;  %4783 = vrot.lane.b32.xlu0 %v7879_v57, %s5256_s13 }
 0x2c5   : > { %4823 = vrot.lane.b32.xlu1 %v4822_v14, %s5254_s11  ;;  %9256 = vst [vmem:[#allocation86_spill] sm:$0xff] %v7872_v41  ;;  %v2542_v51 = vsel %vm380_vm0, %v2539_v0, %v2541_v19 }
 0x2c6   : > { %v7877_v60 = vpop.permute.xlu0 %4538  ;;  %v4842_v26 = vpack.i.bf16 %v2167_v50, %v2542_v51  ;;  %v2540_v50 = vsel %vm380_vm0, %v2538_v23, %v2539_v0  ;;  %v9263_v0 = vld [vmem:[#allocation44_spill] sm:$0xff]  ;;  %vm3351_vm0 = vcmask 523264  }
 0x2c7   : > { %9257 = vst [vmem:[#allocation87_spill] sm:$0xff] %v7877_v60  ;;  %v4832_v31 = vpack.i.bf16 %v2540_v50, %v2165_v3  ;;  %v4862_v21 = vpack.i.bf16 %v2542_v51, %v2540_v50 }
 0x2c8   : > { %v7882_v27 = vpop.permute.xlu1 %4543  ;;  %4803 = vrot.lane.b32.xlu0 %v7746_v33, %s5260_s7 }
 0x2c9   : > { %4828 = vrot.lane.b32.xlu1 %v4827_v12, %s5256_s13  ;;  %9258 = vst [vmem:[#allocation88_spill] sm:$0xff] %v7882_v27 }
 0x2ca   : > { %v7887_v10 = vpop.permute.xlu0 %4548 }
 0x2cb   : > { %9259 = vst [vmem:[#allocation89_spill] sm:$0xff] %v7887_v10 }
 0x2cc   : > { %v7890_v56 = vpop.permute.xlu1 %4563  ;;  %4813 = vrot.lane.b32.xlu0 %v4812_v54, %s5258_s15 }
 0x2cd   : > { %4843 = vrot.lane.b32.xlu1 %v4842_v26, %s5260_s7  ;;  %9260 = vst [vmem:[#allocation90_spill] sm:$0xff] %v7890_v56 }
 0x2ce   : > { %v7894_v16 = vpop.permute.xlu0 %4553 }
 0x2d0   : > { %v7901_v19 = vpop.permute.xlu1 %4568  ;;  %4833 = vrot.lane.b32.xlu0 %v4832_v31, %s5260_s7  ;;  %s3552_s7 = sshll.u32 %s217_s6, 4  ;;  %s3553_s7 = int_to_ptr.vmem [resolvable:$true] %s3552_s7 }
 0x2d1   : > { %4848 = vrot.lane.b32.xlu1 %v4827_v12, %s5266_s17  ;;  %s5191_s14 = scalar_lea.vmem %s3553_s7, 256  ;;  %p5198_p0 = scmp.lt.s32.totalorder %s3553_s7, %s5196_s16 }
 0x2d2   : > { %v7904_v11 = vpop.permute.xlu0 %4558  ;;  %p5192_p11 = scmp.ne.s32.totalorder %s3553_s7, %s5191_s14 }
 0x2d4   : > { %v7908_v26 = vpop.permute.xlu1 %4573  ;;  %4838 = vrot.lane.b32.xlu0 %v7562_v6, %s5262_s8  ;;  %p5193_p12 = pnand %p5192_p11, %p5337_p5 }
 0x2d5   : > { %4853 = vrot.lane.b32.xlu1 %v4807_v44, %s5262_s8  ;;  %9261 = vst [vmem:[#allocation91_spill] sm:$0xff] %v7908_v26 }
 0x2d6   : > { %v7910_v60 = vpop.permute.xlu0 %4578  ;;  %p5194_p13 = pneg %p5193_p12 }
 0x2d7   : > { %9262 = vst [vmem:[#allocation93_spill] sm:$0xff] %v7910_v60 }
 0x2d8   : > { %v7915_v8 = vpop.permute.xlu1 %4583  ;;  %4858 = vrot.lane.b32.xlu0 %v7584_v13, %s5263_s9 }
 0x2d9   : > { %4863 = vrot.lane.b32.xlu1 %v4862_v21, %s5263_s9 }
 0x2da   : > { %v7918_v3 = vpop.permute.xlu0 %4588 }
 0x2dc   : > { %v7922_v44 = vpop.permute.xlu1 %4603  ;;  %4868 = vrot.lane.b32.xlu0 %v7602_v45, %s5264_s10 }
 0x2dd   : > { %4873 = vrot.lane.b32.xlu1 %v4817_v2, %s5264_s10  ;;  %v9264_v2 = vld [vmem:[#allocation23_spill] sm:$0xff] }
 0x2de   : > { %v7928_v51 = vpop.permute.xlu0 %4593 }
 0x2e0   : > { %v7932_v6 = vpop.permute.xlu1 %4608  ;;  %4878 = vrot.lane.b32.xlu0 %v9264_v2, %s5265_s12 }
 0x2e1   : > { %4883 = vrot.lane.b32.xlu1 %v9263_v0, %s5265_s12  ;;  %v9266_v0 = vld [vmem:[#allocation45_spill] sm:$0xff] }
 0x2e2   : > { %v7936_v23 = vpop.permute.xlu0 %4598 }
 0x2e4   : > { %v7939_v13 = vpop.permute.xlu1 %4613  ;;  %4888 = vrot.lane.b32.xlu0 %v7517_v34, %s5266_s17 }
 0x2e5   : > { %4893 = vrot.lane.b32.xlu1 %v7879_v57, %s5266_s17 }
 0x2e6   : > { %v7943_v45 = vpop.permute.xlu0 %4618 }
 0x2e8   : > { %4898 = vrot.lane.b32.xlu0 %v7568_v30, %s5262_s8  ;;  %v7948_v50 = vpop.permute.xlu1 %4623 }
 0x2e9   : > { %4903 = vrot.lane.b32.xlu1 %v4812_v54, %s5262_s8 }
 0x2ea   : > { %v7950_v31 = vpop.permute.xlu0 %4628 }
 0x2ec   : > { %4908 = vrot.lane.b32.xlu0 %v7600_v55, %s5263_s9  ;;  %v7955_v54 = vpop.permute.xlu1 %4643 }
 0x2ed   : > { %4913 = vrot.lane.b32.xlu1 %v4822_v14, %s5263_s9 }
 0x2ee   : > { %v7957_v21 = vpop.permute.xlu0 %4633 }
 0x2ef   : > { %9265 = vst [vmem:[#allocation94_spill] sm:$0xff] %v7957_v21 }
 0x2f0   : > { %4918 = vrot.lane.b32.xlu0 %v7630_v40, %s5264_s10  ;;  %v7963_v30 = vpop.permute.xlu1 %4653 }
 0x2f1   : > { %4923 = vrot.lane.b32.xlu1 %v4827_v12, %s5264_s10  ;;  %v9268_v12 = vld [vmem:[#allocation25_spill] sm:$0xff] }
 0x2f2   : > { %v7965_v14 = vpop.permute.xlu0 %4638 }
 0x2f3   : > { %9267 = vst [vmem:[#allocation95_spill] sm:$0xff] %v7965_v14 }
 0x2f4   : > { %4928 = vrot.lane.b32.xlu0 %v9268_v12, %s5265_s12  ;;  %v7971_v55 = vpop.permute.xlu1 %4658 }
 0x2f5   : > { %4933 = vrot.lane.b32.xlu1 %v9266_v0, %s5265_s12 }
 0x2f6   : > { %v7973_v2 = vpop.permute.xlu0 %4648 }
 0x2f8   : > { %4938 = vrot.lane.b32.xlu0 %v7528_v28, %s5266_s17  ;;  %v7979_v40 = vpop.permute.xlu1 %4673 }
 0x2f9   : > { %4943 = vrot.lane.b32.xlu1 %v7719_v32, %s5266_s17  ;;  %9269 = vst [vmem:[#allocation96_spill] sm:$0xff] %v7979_v40  ;;  %v9273_v40 = vld [vmem:[#allocation40_spill] sm:$0xff] }
 0x2fa   : > { %v7981_v0 = vpop.permute.xlu0 %4663 }
 0x2fc   : > { %4948 = vrot.lane.b32.xlu0 %v7460_v42, %s5262_s8  ;;  %v7987_v12 = vpop.permute.xlu1 %4698 }
 0x2fd   : > { %4953 = vrot.lane.b32.xlu1 %v7788_v63, %s5262_s8  ;;  %9270 = vst [vmem:[#allocation97_spill] sm:$0xff] %v7987_v12 }
 0x2fe   : > { %v7989_v14 = vpop.permute.xlu0 %4668 }
 0x300   : > { %4958 = vrot.lane.b32.xlu0 %v7480_v4, %s5263_s9  ;;  %v7995_v63 = vpop.permute.xlu1 %4703 }
 0x301   : > { %4963 = vrot.lane.b32.xlu1 %v7724_v15, %s5263_s9  ;;  %9271 = vst [vmem:[#allocation98_spill] sm:$0xff] %v7995_v63 }
 0x302   : > { %v7997_v21 = vpop.permute.xlu0 %4678 }
 0x303   : > { %9272 = vst [vmem:[#allocation99_spill] sm:$0xff] %v7997_v21 }
 0x304   : > { %4968 = vrot.lane.b32.xlu0 %v7517_v34, %s5264_s10  ;;  %v8003_v42 = vpop.permute.xlu1 %4708 }
 0x305   : > { %4973 = vrot.lane.b32.xlu1 %v7879_v57, %s5264_s10  ;;  %9274 = vst [vmem:[#allocation100_spill] sm:$0xff] %v8003_v42  ;;  %v9275_v57 = vld [vmem:[#allocation16_spill] sm:$0xff] }
 0x306   : > { %v8005_v15 = vpop.permute.xlu0 %4683 }
 0x308   : > { %4978 = vrot.lane.b32.xlu0 %v9275_v57, %s5265_s12  ;;  %v4729_v4 = vpop.permute.xlu1 %4728 }
 0x309   : > { %4983 = vrot.lane.b32.xlu1 %v9273_v40, %s5265_s12  ;;  %v4730_v56 = vunpack.i.l.bf16 %v4729_v4 }
 0x30a   : > { %v4689_v12 = vpop.permute.xlu0 %4688 }
 0x30c   : > { %4988 = vrot.lane.b32.xlu0 %v7417_v49, %s5266_s17  ;;  %v4749_v40 = vpop.permute.xlu1 %4748 }
 0x30d   : > { %4993 = vrot.lane.b32.xlu1 %v7738_v62, %s5266_s17  ;;  %v4750_v27 = vunpack.i.l.bf16 %v4749_v40 }
 0x30e   : > { %v4694_v34 = vpop.permute.xlu0 %4693 }
 0x310   : > { %4998 = vrot.lane.b32.xlu0 %v7464_v43, %s5262_s8  ;;  %v4754_v21 = vpop.permute.xlu1 %4753 }
 0x311   : > { %5003 = vrot.lane.b32.xlu1 %v7855_v48, %s5262_s8  ;;  %v4756_v57 = vunpack.i.h.bf16 %v4754_v21  ;;  %v4755_v63 = vunpack.i.l.bf16 %v4754_v21  ;;  %v9277_v21 = vld [vmem:[#allocation43_spill] sm:$0xff] }
 0x312   : > { %v8019_v42 = vpop.permute.xlu0 %4713 }
 0x313   : > { %9276 = vst [vmem:[#allocation15_spill] sm:$0xff] %v8019_v42  ;;  %v3147_v43 = vsel %vm1369_vm4, %v7668_v61, %v4756_v57  ;;  %v3146_v42 = vsel %vm1369_vm4, %v7628_v7, %v4755_v63 }
 0x314   : > { %5008 = vrot.lane.b32.xlu0 %v7503_v46, %s5263_s9  ;;  %v4759_v48 = vpop.permute.xlu1 %4758 }
 0x315   : > { %5013 = vrot.lane.b32.xlu1 %v7746_v33, %s5263_s9  ;;  %v4761_v41 = vunpack.i.h.bf16 %v4759_v48  ;;  %v4760_v60 = vunpack.i.l.bf16 %v4759_v48  ;;  %v4731_v33 = vunpack.i.h.bf16 %v4729_v4 }
 0x316   : > { %v8025_v10 = vpop.permute.xlu0 %4718 }
 0x317   : > { %v3178_v46 = vsel %vm1435_vm7, %v3146_v42, %v4760_v60  ;;  %v3179_v26 = vsel %vm1435_vm7, %v3147_v43, %v4761_v41  ;;  %v4691_v60 = vunpack.i.h.bf16 %v4689_v12  ;;  %v4690_v42 = vunpack.i.l.bf16 %v4689_v12 }
 0x318   : > { %5018 = vrot.lane.b32.xlu0 %v7528_v28, %s5264_s10  ;;  %v3210_v4 = vsel %vm1501_vm9, %v3178_v46, %v4730_v56  ;;  %v3211_v48 = vsel %vm1501_vm9, %v3179_v26, %v4731_v33  ;;  %v8039_v61 = vpop.permute.xlu1 %4768  ;;  %v4696_v28 = vunpack.i.h.bf16 %v4694_v34  ;;  %v4695_v41 = vunpack.i.l.bf16 %v4694_v34  ;;  %v9278_v56 = vld [vmem:[#allocation19_spill] sm:$0xff] }
 0x319   : > { %5023 = vrot.lane.b32.xlu1 %v7719_v32, %s5264_s10  ;;  %v4751_v32 = vunpack.i.h.bf16 %v4749_v40  ;;  %v8044_v7 = vsel %vm1567_vm11, %v3210_v4, %v4750_v27  ;;  %v3145_v27 = vsel %vm1369_vm4, %v7550_v59, %v4691_v60  ;;  %v3144_v33 = vsel %vm1369_vm4, %v7535_v22, %v4690_v42 }
 0x31a   : > { %v8041_v57 = vpop.permute.xlu0 %4723  ;;  %v3176_v12 = vsel %vm1435_vm7, %v3144_v33, %v4695_v41  ;;  %v3177_v34 = vsel %vm1435_vm7, %v3145_v27, %v4696_v28 }
 0x31b   : > { %v8047_v63 = vsel %vm1567_vm11, %v3211_v48, %v4751_v32 }
 0x31c   : > { %5028 = vrot.lane.b32.xlu0 %v9278_v56, %s5265_s12  ;;  %v8053_v26 = vpop.permute.xlu1 %4788 }
 0x31d   : > { %5033 = vrot.lane.b32.xlu1 %v9277_v21, %s5265_s12 }
 0x31e   : > { %v4734_v40 = vpop.permute.xlu0 %4733 }
 0x31f   : > { %v4736_v43 = vunpack.i.h.bf16 %v4734_v40  ;;  %v4735_v21 = vunpack.i.l.bf16 %v4734_v40 }
 0x320   : > { %5038 = vrot.lane.b32.xlu0 %v7435_v17, %s5266_s17  ;;  %v8067_v59 = vpop.permute.xlu1 %4793 }
 0x321   : > { %5043 = vrot.lane.b32.xlu1 %v7753_v53, %s5266_s17  ;;  %v3208_v32 = vsel %vm1501_vm9, %v3176_v12, %v4735_v21  ;;  %v3209_v46 = vsel %vm1501_vm9, %v3177_v34, %v4736_v43 }
 0x322   : > { %v4739_v4 = vpop.permute.xlu0 %4738 }
 0x323   : > { %v4741_v22 = vunpack.i.h.bf16 %v4739_v4  ;;  %v4740_v48 = vunpack.i.l.bf16 %v4739_v4 }
 0x324   : > { %5048 = vrot.lane.b32.xlu0 %v7376_v20, %s5262_s8 }
 0x325   : > { %5053 = vrot.lane.b32.xlu1 %v7731_v25, %s5262_s8  ;;  %v8073_v25 = vpop.permute.xlu1 %4798  ;;  %v3149_v41 = vsel %vm1369_vm4, %v7619_v38, %v4741_v22  ;;  %v3148_v56 = vsel %vm1369_vm4, %v7609_v58, %v4740_v48  ;;  %v9279_v22 = vld [vmem:[#allocation35_spill] sm:$0xff]  ;;  %v9287_v48 = vld [vmem:[#allocation61_spill] sm:$0xff] }
 0x326   : > { %v4744_v60 = vpop.permute.xlu0 %4743 }
 0x327   : > { %v4746_v42 = vunpack.i.h.bf16 %v4744_v60  ;;  %v4745_v28 = vunpack.i.l.bf16 %v4744_v60  ;;  %v9289_v60 = vld [vmem:[#allocation42_spill] sm:$0xff] }
 0x328   : > { %5058 = vrot.lane.b32.xlu0 %v7395_v9, %s5263_s9  ;;  %v4661_v9 = vunpack.i.h.bf16 %v7971_v55 }
 0x329   : > { %5063 = vrot.lane.b32.xlu1 %v7755_v5, %s5263_s9  ;;  %v3180_v40 = vsel %vm1435_vm7, %v3148_v56, %v4745_v28  ;;  %v3181_v27 = vsel %vm1435_vm7, %v3149_v41, %v4746_v42  ;;  %v4655_v42 = vunpack.i.l.bf16 %v7963_v30  ;;  %v4660_v28 = vunpack.i.l.bf16 %v7971_v55 }
 0x32a   : > { %v4764_v21 = vpop.permute.xlu0 %4763  ;;  %v4646_v5 = vunpack.i.h.bf16 %v7955_v54 }
 0x32b   : > { %v4766_v34 = vunpack.i.h.bf16 %v4764_v21  ;;  %v4765_v4 = vunpack.i.l.bf16 %v4764_v21 }
 0x32c   : > { %5068 = vrot.lane.b32.xlu0 %v7417_v49, %s5264_s10  ;;  %v3138_v49 = vsel %vm1369_vm4, %v7513_v29, %v4655_v42  ;;  %v4625_v29 = vunpack.i.l.bf16 %v7948_v50  ;;  %v9283_v42 = vld [vmem:[#allocation66_spill] sm:$0xff] }
 0x32d   : > { %5073 = vrot.lane.b32.xlu1 %v7738_v62, %s5264_s10  ;;  %v8104_v41 = vsel %vm1567_vm11, %v3208_v32, %v4765_v4  ;;  %v8107_v56 = vsel %vm1567_vm11, %v3209_v46, %v4766_v34  ;;  %v9282_v32 = vld [vmem:[#allocation10_spill] sm:$0xff]  ;;  %v4596_v46 = vunpack.i.h.bf16 %v7928_v51  ;;  %v3170_v34 = vsel %vm1435_vm7, %v3138_v49, %v4660_v28  ;;  %v9285_v49 = vld [vmem:[#allocation56_spill] sm:$0xff] }
 0x32e   : > { %9280 = vst [vmem:[#allocation101_spill] sm:$0xff] %v8104_v41  ;;  %9281 = vst [vmem:[#allocation102_spill] sm:$0xff] %v8107_v56  ;;  %v4774_v12 = vpop.permute.xlu0 %4773  ;;  %v4595_v4 = vunpack.i.l.bf16 %v7928_v51  ;;  %v3202_v51 = vsel %vm1501_vm9, %v3170_v34, %v4625_v29 }
 0x32f   : > { %v8087_v33 = vpop.permute.xlu1 %4808  ;;  %v4776_v58 = vunpack.i.h.bf16 %v4774_v12  ;;  %v4775_v38 = vunpack.i.l.bf16 %v4774_v12 }
 0x330   : > { %5078 = vrot.lane.b32.xlu0 %v9282_v32, %s5265_s12 }
 0x331   : > { %5083 = vrot.lane.b32.xlu1 %v9279_v22, %s5265_s12  ;;  %v4656_v22 = vunpack.i.h.bf16 %v7963_v30  ;;  %v8122_v30 = vsel %vm1501_vm9, %v3180_v40, %v4775_v38  ;;  %v8125_v55 = vsel %vm1501_vm9, %v3181_v27, %v4776_v58  ;;  %v9284_v38 = vld [vmem:[#allocation79_spill] sm:$0xff]  ;;  %v4600_v27 = vunpack.i.l.bf16 %v7936_v23 }
 0x332   : > { %v8133_v20 = vpop.permute.xlu0 %4778  ;;  %v4626_v58 = vunpack.i.h.bf16 %v7948_v50  ;;  %v4650_v50 = vunpack.i.l.bf16 %v7973_v2 }
 0x333   : > { %v8109_v21 = vpop.permute.xlu1 %4818  ;;  %v3139_v32 = vsel %vm1369_vm4, %v9283_v42, %v4656_v22  ;;  %v9286_v22 = vld [vmem:[#allocation60_spill] sm:$0xff]  ;;  %v4780_v41 = vunpack.i.l.bf16 %v8133_v20 }
 0x334   : > { %v3171_v28 = vsel %vm1435_vm7, %v3139_v32, %v4661_v9  ;;  %5088 = vrot.lane.b32.xlu0 %v9285_v49, %s5266_s17  ;;  %v3137_v42 = vsel %vm1369_vm4, %v9286_v22, %v4596_v46  ;;  %v4601_v9 = vunpack.i.h.bf16 %v7936_v23  ;;  %v4645_v32 = vunpack.i.l.bf16 %v7955_v54  ;;  %v9288_v22 = vld [vmem:[#allocation75_spill] sm:$0xff] }
 0x335   : > { %5093 = vrot.lane.b32.xlu1 %v7760_v24, %s5266_s17  ;;  %v3203_v62 = vsel %vm1501_vm9, %v3171_v28, %v4626_v58  ;;  %v4685_v28 = vunpack.i.l.bf16 %v8005_v15 }
 0x336   : > { %v8152_v29 = vpop.permute.xlu0 %4783  ;;  %v3234_v46 = vsel %vm1567_vm11, %v3202_v51, %v4645_v32  ;;  %v8168_v54 = vsel %vm1435_vm7, %v3137_v42, %v4601_v9  ;;  %v4811_v51 = vunpack.i.h.bf16 %v8087_v33  ;;  %v4721_v42 = vunpack.i.h.bf16 %v8025_v10 }
 0x337   : > { %v8127_v12 = vpop.permute.xlu1 %4823  ;;  %v4725_v9 = vunpack.i.l.bf16 %v8041_v57 }
 0x338   : > { %v4826_v40 = vunpack.i.h.bf16 %v8127_v12  ;;  %5098 = vrot.lane.b32.xlu0 %v9289_v60, %s5262_s8 }
 0x339   : > { %5103 = vrot.lane.b32.xlu1 %v9284_v38, %s5262_s8  ;;  %v3136_v38 = vsel %vm1369_vm4, %v9287_v48, %v4595_v4  ;;  %v4651_v4 = vunpack.i.h.bf16 %v7973_v2  ;;  %v3267_v2 = vsel %vm3252_vm13, %v3234_v46, %v4650_v50  ;;  %v4825_v46 = vunpack.i.l.bf16 %v8127_v12 }
 0x33a   : > { %v3155_v23 = vsel %vm1369_vm4, %v7825_v39, %v4826_v40  ;;  %v3168_v48 = vsel %vm1435_vm7, %v3136_v38, %v4600_v27  ;;  %v4630_v39 = vunpack.i.l.bf16 %v7950_v31  ;;  %v3235_v40 = vsel %vm1567_vm11, %v3203_v62, %v4646_v5  ;;  %v8179_v60 = vpop.permute.xlu0 %4803 }
 0x33b   : > { %v4829_v43 = vpop.permute.xlu1 %4828  ;;  %v4686_v27 = vunpack.i.h.bf16 %v8005_v15  ;;  %v4720_v38 = vunpack.i.l.bf16 %v8025_v10  ;;  %v4821_v5 = vunpack.i.h.bf16 %v8109_v21  ;;  %v3268_v50 = vsel %vm3252_vm13, %v3235_v40, %v4651_v4 }
 0x33c   : > { %v4831_v34 = vunpack.i.h.bf16 %v4829_v43  ;;  %v3300_v15 = vsel %vm3285_vm14, %v3267_v2, %v4685_v28  ;;  %v4726_v10 = vunpack.i.h.bf16 %v8041_v57  ;;  %v4830_v56 = vunpack.i.l.bf16 %v4829_v43  ;;  %v9291_v43 = vld [vmem:[#allocation37_spill] sm:$0xff] }
 0x33d   : > { %5113 = vrot.lane.b32.xlu1 %v9288_v22, %s5263_s9  ;;  %v9290_v22 = vld [vmem:[#allocation41_spill] sm:$0xff]  ;;  %v3333_v4 = vsel %vm3318_vm15, %v3300_v15, %v4720_v38  ;;  %v4781_v12 = vunpack.i.h.bf16 %v8133_v20  ;;  %v4785_v28 = vunpack.i.l.bf16 %v8152_v29  ;;  %v4631_v2 = vunpack.i.h.bf16 %v7950_v31 }
 0x33e   : > { %v3187_v58 = vsel %vm1435_vm7, %v3155_v23, %v4831_v34  ;;  %5108 = vrot.lane.b32.xlu0 %v9290_v22, %s5263_s9  ;;  %v4814_v40 = vpop.permute.xlu0 %4813  ;;  %v9292_v20 = vunpack.i.h.bf16 %v7751_v1 }
 0x33f   : > { %v8173_v32 = vpop.permute.xlu1 %4843  ;;  %v3219_v62 = vsel %vm1501_vm9, %v3187_v58, %v4811_v51  ;;  %v4816_v38 = vunpack.i.h.bf16 %v4814_v40 }
 0x340   : > { %v4845_v34 = vunpack.i.l.bf16 %v8173_v32 }
 0x341   : > { %5123 = vrot.lane.b32.xlu1 %v7753_v53, %s5264_s10  ;;  %v3301_v53 = vsel %vm3285_vm14, %v3268_v50, %v4686_v27  ;;  %v3154_v27 = vsel %vm1369_vm4, %v7838_v47, %v4825_v46  ;;  %v4810_v47 = vunpack.i.l.bf16 %v8087_v33  ;;  %v9293_v46 = vld [vmem:[#allocation69_spill] sm:$0xff]  ;;  %v9296_v33 = vunpack.i.h.bf16 %v7768_v37 }
 0x342   : > { %v3251_v23 = vsel %vm1567_vm11, %v3219_v62, %v4845_v34  ;;  %v3334_v57 = vsel %vm3318_vm15, %v3301_v53, %v4721_v42  ;;  %v4786_v34 = vunpack.i.h.bf16 %v8152_v29  ;;  %v4815_v62 = vunpack.i.l.bf16 %v4814_v40  ;;  %5118 = vrot.lane.b32.xlu0 %v7435_v17, %s5264_s10  ;;  %v4834_v22 = vpop.permute.xlu0 %4833  ;;  %v9297_v40 = vld [vmem:[#allocation6_spill] sm:$0xff] }
 0x343   : > { %v3284_v58 = vsel %vm3252_vm13, %v3251_v23, %v4821_v5  ;;  %v8196_v51 = vpop.permute.xlu1 %4848  ;;  %v3366_v5 = vsel %vm3351_vm0, %v3333_v4, %v4725_v9  ;;  %v3200_v42 = vsel %vm1501_vm9, %v3168_v48, %v4630_v39  ;;  %v3152_v29 = vsel %vm1369_vm4, %v7674_v18, %v4780_v41  ;;  %v9295_v39 = vld [vmem:[#allocation74_spill] sm:$0xff] }
 0x344   : > { %v3317_v31 = vsel %vm3285_vm14, %v3284_v58, %v9292_v20  ;;  %v3186_v50 = vsel %vm1435_vm7, %v3154_v27, %v4830_v56  ;;  %v3367_v15 = vsel %vm3351_vm0, %v3334_v57, %v4726_v10  ;;  %v3153_v23 = vsel %vm1369_vm4, %v9293_v46, %v4781_v12 }
 0x345   : > { %5133 = vrot.lane.b32.xlu1 %v9291_v43, %s5265_s12  ;;  %v3184_v17 = vsel %vm1435_vm7, %v3152_v29, %v4785_v28  ;;  %v9294_v58 = vunpack.i.l.bf16 %v7798_v35  ;;  %v3185_v18 = vsel %vm1435_vm7, %v3153_v23, %v4786_v34  ;;  %v4836_v41 = vunpack.i.h.bf16 %v4834_v22 }
 0x346   : > { %v4835_v56 = vunpack.i.l.bf16 %v4834_v22  ;;  %v3350_v10 = vsel %vm3318_vm15, %v3317_v31, %v9296_v33  ;;  %v4820_v53 = vunpack.i.l.bf16 %v8109_v21  ;;  %v3216_v4 = vsel %vm1501_vm9, %v3184_v17, %v4815_v62  ;;  %5128 = vrot.lane.b32.xlu0 %v9297_v40, %s5265_s12  ;;  %v8249_v31 = vpop.permute.xlu0 %4838  ;;  %v9302_v17 = vld [vmem:[#allocation59_spill] sm:$0xff] }
 0x347   : > { %v4854_v9 = vpop.permute.xlu1 %4853  ;;  %v3399_v48 = vsel %vm3384_vm1, %v3366_v5, %v9294_v58  ;;  %v3217_v12 = vsel %vm1501_vm9, %v3185_v18, %v4816_v38  ;;  %v3218_v28 = vsel %vm1501_vm9, %v3186_v50, %v4810_v47  ;;  %v4846_v57 = vunpack.i.h.bf16 %v8173_v32 }
 0x348   : > { %v3248_v34 = vsel %vm1567_vm11, %v3216_v4, %v4835_v56  ;;  %v3250_v43 = vsel %vm1567_vm11, %v3218_v28, %v4836_v41  ;;  %v9298_v27 = vunpack.i.h.bf16 %v7798_v35  ;;  %v3201_v62 = vsel %vm1501_vm9, %v8168_v54, %v4631_v2 }
 0x349   : > { %5143 = vrot.lane.b32.xlu1 %v9295_v39, %s5266_s17  ;;  %v4850_v38 = vunpack.i.l.bf16 %v8196_v51  ;;  %v3283_v20 = vsel %vm3252_vm13, %v3250_v43, %v4820_v53  ;;  %v9299_v32 = vunpack.i.h.bf16 %v7777_v36  ;;  %v4666_v50 = vunpack.i.h.bf16 %v7981_v0 }
 0x34a   : > { %v3400_v21 = vsel %vm3384_vm1, %v3367_v15, %v9298_v27  ;;  %v4665_v47 = vunpack.i.l.bf16 %v7981_v0  ;;  %v3249_v35 = vsel %vm1567_vm11, %v3217_v12, %v4846_v57  ;;  %v9300_v15 = vld [vmem:[#allocation70_spill] sm:$0xff]  ;;  %v9301_v54 = vunpack.i.l.bf16 %v7751_v1  ;;  %5138 = vrot.lane.b32.xlu0 %v9302_v17, %s5266_s17  ;;  %v4859_v12 = vpop.permute.xlu0 %4858  ;;  %s5197_s17 = scalar_lea.vmem %s5196_s16, 512 }
 0x34b   : > { %v4864_v5 = vpop.permute.xlu1 %4863  ;;  %v3383_v29 = vsel %vm3351_vm0, %v3350_v10, %v9299_v32  ;;  %v4851_v46 = vunpack.i.h.bf16 %v8196_v51  ;;  %v3281_v23 = vsel %vm3252_vm13, %v3248_v34, %v4850_v38  ;;  %v9303_v22 = vunpack.i.l.bf16 %v7768_v37  ;;  %p5199_p1 = scmp.lt.s32.totalorder %s5197_s17, %s5191_s14 }
 0x34c   : > { %v3316_v2 = vsel %vm3285_vm14, %v3283_v20, %v9301_v54  ;;  %v3424_v58 = vpack.c.bf16 %v3400_v21, %v3399_v48  ;;  %v4856_v18 = vunpack.i.h.bf16 %v4854_v9  ;;  %v4855_v41 = vunpack.i.l.bf16 %v4854_v9 }
 0x34d   : > { %5153 = vrot.lane.b32.xlu1 %v9300_v15, %s5262_s8  ;;  %v3349_v0 = vsel %vm3318_vm15, %v3316_v2, %v9303_v22  ;;  %v9304_v39 = vunpack.i.l.bf16 %v7777_v36  ;;  %v9305_v33 = vunpack.i.h.bf16 %v7793_v52  ;;  %v3282_v10 = vsel %vm3252_vm13, %v3249_v35, %v4851_v46  ;;  %v9307_v36 = vld [vmem:[#allocation73_spill] sm:$0xff]  ;;  %v9309_v22 = vld [vmem:[#allocation55_spill] sm:$0xff]  ;;  %p5200_p2 = por %p5199_p1, %p5198_p0 }
 0x34e   : > { %v4866_v53 = vunpack.i.h.bf16 %v4864_v5  ;;  %v4865_v4 = vunpack.i.l.bf16 %v4864_v5  ;;  %v9306_v37 = vunpack.i.l.bf16 %v7793_v52  ;;  %v3314_v9 = vsel %vm3285_vm14, %v3281_v23, %v4855_v41  ;;  %v9308_v52 = vld [vmem:[#allocation54_spill] sm:$0xff] }
 0x34f   : > { %v4874_v56 = vpop.permute.xlu1 %4873  ;;  %v3382_v1 = vsel %vm3351_vm0, %v3349_v0, %v9304_v39  ;;  %v3416_v51 = vsel %vm3384_vm1, %v3383_v29, %v9305_v33  ;;  %v3232_v34 = vsel %vm1567_vm11, %v3200_v42, %v4665_v47  ;;  %v3233_v43 = vsel %vm1567_vm11, %v3201_v62, %v4666_v50  ;;  %5148 = vrot.lane.b32.xlu0 %v9308_v52, %s5262_s8  ;;  %v4869_v47 = vpop.permute.xlu0 %4868  ;;  %v9312_v52 = vld [vmem:[#allocation62_spill] sm:$0xff]  ;;  %p5201_p3 = pnand %p5200_p2, %p5194_p13 }
 0x350   : > { %v3415_v48 = vsel %vm3384_vm1, %v3382_v1, %v9306_v37  ;;  %v4876_v28 = vunpack.i.h.bf16 %v4874_v56  ;;  %v4875_v40 = vunpack.i.l.bf16 %v4874_v56  ;;  %v4671_v27 = vunpack.i.h.bf16 %v7989_v14 }
 0x351   : > { %5163 = vrot.lane.b32.xlu1 %v9307_v36, %s5263_s9  ;;  %v3432_v57 = vpack.c.bf16 %v3416_v51, %v3415_v48  ;;  %v4670_v5 = vunpack.i.l.bf16 %v7989_v14  ;;  %v3315_v21 = vsel %vm3285_vm14, %v3282_v10, %v4856_v18  ;;  %v4841_v38 = vunpack.i.h.bf16 %v8249_v31  ;;  %v9310_v48 = vld [vmem:[#allocation28_spill] sm:$0xff] }
 0x352   : > { %v4840_v20 = vunpack.i.l.bf16 %v8249_v31  ;;  %v3466_v42 = vsel %vm3440_vm2, %v3424_v58, 0  ;;  %v3347_v62 = vsel %vm3318_vm15, %v3314_v9, %v4865_v4  ;;  %v3348_v29 = vsel %vm3318_vm15, %v3315_v21, %v4866_v53  ;;  %v9313_v21 = vld [vmem:[#allocation63_spill] sm:$0xff] }
 0x353   : > { %v4884_v32 = vpop.permute.xlu1 %4883  ;;  %3764 = vmatprep.subr.msk.bf16.mxu1 %vm3440_vm2, %v3432_v57  ;;  %v3380_v35 = vsel %vm3351_vm0, %v3347_v62, %v4875_v40  ;;  %v3381_v15 = vsel %vm3351_vm0, %v3348_v29, %v4876_v28  ;;  %v4861_v54 = vunpack.i.h.bf16 %v4859_v12  ;;  %v4860_v2 = vunpack.i.l.bf16 %v4859_v12  ;;  %5158 = vrot.lane.b32.xlu0 %v9309_v22, %s5263_s9  ;;  %v4879_v10 = vpop.permute.xlu0 %4878  ;;  %v9315_v29 = vld [vmem:[#allocation72_spill] sm:$0xff] }
 0x354   : > { %v4886_v50 = vunpack.i.h.bf16 %v4884_v32  ;;  %v4885_v14 = vunpack.i.l.bf16 %v4884_v32  ;;  %3708 = vmatpush3.bf16.xpose.msra.mxu1 %v3466_v42  ;;  %v4871_v23 = vunpack.i.h.bf16 %v4869_v47  ;;  %v4870_v17 = vunpack.i.l.bf16 %v4869_v47  ;;  %v9314_v42 = vld [vmem:[#allocation71_spill] sm:$0xff] }
 0x355   : > { %5173 = vrot.lane.b32.xlu1 %v7760_v24, %s5264_s10  ;;  %v4610_v0 = vunpack.i.l.bf16 %v7932_v6  ;;  %v3265_v58 = vsel %vm3252_vm13, %v3232_v34, %v4670_v5  ;;  %v3266_v18 = vsel %vm3252_vm13, %v3233_v43, %v4671_v27  ;;  %v8311_v24 = vld [vmem:[%s8707_s3] sm:$0xf]  ;;  %v4616_v39 = vunpack.i.h.bf16 %v7939_v13 }
 0x356   : > { %v3413_v31 = vsel %vm3384_vm1, %v3380_v35, %v4885_v14  ;;  %v3414_v46 = vsel %vm3384_vm1, %v3381_v15, %v4886_v50  ;;  %v4615_v1 = vunpack.i.l.bf16 %v7939_v13  ;;  %v3298_v33 = vsel %vm3285_vm14, %v3265_v58, %v4840_v20  ;;  %3723 = vmatprep.mubr.msk.bf16.mxu1 %vm3440_vm2, %v8311_v24 }
 0x357   : > { %v3431_v41 = vpack.c.bf16 %v3414_v46, %v3413_v31  ;;  %v8306_v56 = vpop.permute.xlu1 %4893  ;;  %v3299_v51 = vsel %vm3285_vm14, %v3266_v18, %v4841_v38  ;;  %v3331_v53 = vsel %vm3318_vm15, %v3298_v33, %v4860_v2  ;;  %v4881_v12 = vunpack.i.h.bf16 %v4879_v10  ;;  %5168 = vrot.lane.b32.xlu0 %v9285_v49, %s5264_s10  ;;  %v8340_v20 = vpop.permute.xlu0 %4888  ;;  %v3434_v46 = vld [vmem:[%s8708_s4] sm:$0xff]  ;;  %s8669_s10 = scalar_lea.hbm %s8709_s5, %s3643_s30 }
 0x358   : > { %v3332_v4 = vsel %vm3318_vm15, %v3299_v51, %v4861_v54  ;;  %v4880_v37 = vunpack.i.l.bf16 %v4879_v10  ;;  %v4796_v13 = vunpack.i.h.bf16 %v8067_v59  ;;  %v4795_v9 = vunpack.i.l.bf16 %v8067_v59 }
 0x359   : > { %5183 = vrot.lane.b32.xlu1 %v9310_v48, %s5265_s12  ;;  %3765 = vmatprep.subr.msk.bf16.mxu1 %vm3440_vm2, %v3431_v41  ;;  %v3364_v28 = vsel %vm3351_vm0, %v3331_v53, %v4870_v17  ;;  %v3365_v40 = vsel %vm3351_vm0, %v3332_v4, %v4871_v23  ;;  %v4801_v36 = vunpack.i.h.bf16 %v8073_v25  ;;  %v4800_v57 = vunpack.i.l.bf16 %v8073_v25 }
 0x35a   : > { %v3397_v43 = vsel %vm3384_vm1, %v3364_v28, %v4880_v37  ;;  %v3398_v27 = vsel %vm3384_vm1, %v3365_v40, %v4881_v12  ;;  %v9311_v5 = vunpack.i.h.bf16 %v7932_v6  ;;  %v3134_v38 = vsel %vm1369_vm4, %v9313_v21, %v4610_v0  ;;  %v9316_v6 = vld [vmem:[#allocation13_spill] sm:$0xff] }
 0x35b   : > { %v4904_v34 = vpop.permute.xlu1 %4903  ;;  %v3423_v49 = vpack.c.bf16 %v3398_v27, %v3397_v43  ;;  %v3166_v32 = vsel %vm1435_vm7, %v3134_v38, %v4615_v1  ;;  %v3151_v62 = vsel %vm1369_vm4, %v9314_v42, %v4796_v13  ;;  %v3150_v50 = vsel %vm1369_vm4, %v9315_v29, %v4795_v9  ;;  %5178 = vrot.lane.b32.xlu0 %v9316_v6, %s5265_s12  ;;  %v4899_v22 = vpop.permute.xlu0 %4898  ;;  %s3538_s12 = scalar_lea.sflag [#allocation3], %s215_s25 }
 0x35c   : > { %v3135_v59 = vsel %vm1369_vm4, %v9312_v52, %v9311_v5  ;;  %v4586_v47 = vunpack.i.h.bf16 %v7915_v8  ;;  %v4585_v35 = vunpack.i.l.bf16 %v7915_v8  ;;  %v3182_v15 = vsel %vm1435_vm7, %v3150_v50, %v4800_v57 }
 0x35d   : > { %v3167_v25 = vsel %vm1435_vm7, %v3135_v59, %v4616_v39  ;;  %v3463_v14 = vsel %vm3440_vm2, %v3423_v49, 0  ;;  %v3183_v54 = vsel %vm1435_vm7, %v3151_v62, %v4801_v36  ;;  %v5267_v31 = vmov 0  }
 0x35e   : > { %3710 = vmatpush3.bf16.xpose.msra.mxu1 %v3463_v14  ;;  %5187 = vset.pattern.permute.xlu0 %v5267_v31  ;;  %v4771_v23 = vunpack.i.h.bf16 %v8039_v61  ;;  %v4770_v17 = vunpack.i.l.bf16 %v8039_v61  ;;  %v4606_v0 = vunpack.i.h.bf16 %v7922_v44  ;;  %v4605_v8 = vunpack.i.l.bf16 %v7922_v44 }
 0x35f   : > { %v4914_v2 = vpop.permute.xlu1 %4913  ;;  %v3198_v58 = vsel %vm1501_vm9, %v3166_v32, %v4585_v35  ;;  %v3199_v18 = vsel %vm1501_vm9, %v3167_v25, %v4586_v47  ;;  %v4896_v1 = vunpack.i.h.bf16 %v8306_v56  ;;  %v4895_v33 = vunpack.i.l.bf16 %v8306_v56  ;;  %3437 = vperm.xlu0 %5187, %v3434_v46   ;;  %v4909_v13 = vpop.permute.xlu0 %4908 }
 0x360   : > { %v3214_v41 = vsel %vm1501_vm9, %v3182_v15, %v4770_v17  ;;  %v3215_v39 = vsel %vm1501_vm9, %v3183_v54, %v4771_v23  ;;  %v4791_v61 = vunpack.i.h.bf16 %v8053_v26  ;;  %v4790_v51 = vunpack.i.l.bf16 %v8053_v26 }
 0x361   : > { %v4906_v10 = vunpack.i.h.bf16 %v4904_v34  ;;  %v4905_v53 = vunpack.i.l.bf16 %v4904_v34  ;;  %v3230_v4 = vsel %vm1567_vm11, %v3198_v58, %v4605_v8  ;;  %v3231_v12 = vsel %vm1567_vm11, %v3199_v18, %v4606_v0 }
 0x362   : > { %v4916_v37 = vunpack.i.h.bf16 %v4914_v2  ;;  %v4915_v48 = vunpack.i.l.bf16 %v4914_v2  ;;  %v3246_v9 = vsel %vm1567_vm11, %v3214_v41, %v4790_v51  ;;  %v3247_v28 = vsel %vm1567_vm11, %v3215_v39, %v4791_v61 }
 0x363   : > { %v4924_v44 = vpop.permute.xlu1 %4923  ;;  %v3279_v36 = vsel %vm3252_vm13, %v3246_v9, %v4895_v33  ;;  %v3280_v26 = vsel %vm3252_vm13, %v3247_v28, %v4896_v1  ;;  %v4891_v57 = vunpack.i.h.bf16 %v8340_v20  ;;  %v4890_v34 = vunpack.i.l.bf16 %v8340_v20  ;;  %v4919_v25 = vpop.permute.xlu0 %4918 }
 0x364   : > { %v4926_v56 = vunpack.i.h.bf16 %v4924_v44  ;;  %v4925_v40 = vunpack.i.l.bf16 %v4924_v44  ;;  %v3312_v43 = vsel %vm3285_vm14, %v3279_v36, %v4905_v53  ;;  %v3313_v27 = vsel %vm3285_vm14, %v3280_v26, %v4906_v10 }
 0x365   : > { %v4901_v5 = vunpack.i.h.bf16 %v4899_v22  ;;  %v4900_v52 = vunpack.i.l.bf16 %v4899_v22  ;;  %v3345_v21 = vsel %vm3318_vm15, %v3312_v43, %v4915_v48  ;;  %v3346_v38 = vsel %vm3318_vm15, %v3313_v27, %v4916_v37 }
 0x366   : > { %v3378_v42 = vsel %vm3351_vm0, %v3345_v21, %v4925_v40  ;;  %v3379_v62 = vsel %vm3351_vm0, %v3346_v38, %v4926_v56  ;;  %v4911_v29 = vunpack.i.h.bf16 %v4909_v13  ;;  %v4910_v20 = vunpack.i.l.bf16 %v4909_v13  ;;  %v9317_v56 = vld [vmem:[#allocation57_spill] sm:$0xff]  ;;  %v9318_v40 = vld [vmem:[#allocation58_spill] sm:$0xff] }
 0x367   : > { %v4934_v59 = vpop.permute.xlu1 %4933  ;;  %v4921_v14 = vunpack.i.h.bf16 %v4919_v25  ;;  %v4920_v47 = vunpack.i.l.bf16 %v4919_v25  ;;  %v3263_v35 = vsel %vm3252_vm13, %v3230_v4, %v4890_v34  ;;  %v3264_v15 = vsel %vm3252_vm13, %v3231_v12, %v4891_v57  ;;  %v4929_v23 = vpop.permute.xlu0 %4928 }
 0x368   : > { %v4936_v49 = vunpack.i.h.bf16 %v4934_v59  ;;  %v4935_v32 = vunpack.i.l.bf16 %v4934_v59  ;;  %v3296_v31 = vsel %vm3285_vm14, %v3263_v35, %v4900_v52  ;;  %v3297_v46 = vsel %vm3285_vm14, %v3264_v15, %v4901_v5 }
 0x369   : > { %v3329_v17 = vsel %vm3318_vm15, %v3296_v31, %v4910_v20  ;;  %v3330_v22 = vsel %vm3318_vm15, %v3297_v46, %v4911_v29  ;;  %v4931_v0 = vunpack.i.h.bf16 %v4929_v23  ;;  %v4930_v8 = vunpack.i.l.bf16 %v4929_v23 }
 0x36a   : > { %v3411_v50 = vsel %vm3384_vm1, %v3378_v42, %v4935_v32  ;;  %v3412_v6 = vsel %vm3384_vm1, %v3379_v62, %v4936_v49  ;;  %v3362_v58 = vsel %vm3351_vm0, %v3329_v17, %v4920_v47  ;;  %v3363_v18 = vsel %vm3351_vm0, %v3330_v22, %v4921_v14 }
 0x36b   : > { %v3430_v54 = vpack.c.bf16 %v3412_v6, %v3411_v50  ;;  %v4944_v2 = vpop.permute.xlu1 %4943  ;;  %v3395_v39 = vsel %vm3384_vm1, %v3362_v58, %v4930_v8  ;;  %v3396_v1 = vsel %vm3384_vm1, %v3363_v18, %v4931_v0  ;;  %v4939_v33 = vpop.permute.xlu0 %4938  ;;  %v4556_v51 = vunpack.i.h.bf16 %v7894_v16 }
 0x36c   : > { %v3422_v61 = vpack.c.bf16 %v3396_v1, %v3395_v39  ;;  %v4555_v10 = vunpack.i.l.bf16 %v7894_v16  ;;  %v4561_v53 = vunpack.i.h.bf16 %v7904_v11  ;;  %v4560_v44 = vunpack.i.l.bf16 %v7904_v11 }
 0x36d   : > { %3766 = vmatprep.subr.msk.bf16.mxu1 %vm3440_vm2, %v3430_v54  ;;  %v4591_v12 = vunpack.i.h.bf16 %v7918_v3  ;;  %v4590_v37 = vunpack.i.l.bf16 %v7918_v3  ;;  %v4621_v13 = vunpack.i.h.bf16 %v7943_v45  ;;  %v4620_v9 = vunpack.i.l.bf16 %v7943_v45 }
 0x36e   : > { %v3460_v4 = vsel %vm3440_vm2, %v3422_v61, 0  ;;  %v3133_v16 = vsel %vm1369_vm4, %v9317_v56, %v4556_v51  ;;  %v3132_v36 = vsel %vm1369_vm4, %v9318_v40, %v4555_v10  ;;  %v4806_v11 = vunpack.i.h.bf16 %v8179_v60 }
 0x36f   : > { %v4954_v41 = vpop.permute.xlu1 %4953  ;;  %3712 = vmatpush3.bf16.xpose.msra.mxu1 %v3460_v4  ;;  %v4949_v28 = vpop.permute.xlu0 %4948  ;;  %v4805_v26 = vunpack.i.l.bf16 %v8179_v60  ;;  %v3164_v57 = vsel %vm1435_vm7, %v3132_v36, %v4560_v44  ;;  %v3165_v3 = vsel %vm1435_vm7, %v3133_v16, %v4561_v53  ;;  %v4946_v34 = vunpack.i.h.bf16 %v4944_v2  ;;  %v9319_v16 = vld [vmem:[#allocation91_spill] sm:$0xff] }
 0x370   : > { %v4945_v43 = vunpack.i.l.bf16 %v4944_v2  ;;  %v3196_v27 = vsel %vm1501_vm9, %v3164_v57, %v4590_v37  ;;  %v3197_v45 = vsel %vm1501_vm9, %v3165_v3, %v4591_v12  ;;  %v4956_v5 = vunpack.i.h.bf16 %v4954_v41 }
 0x371   : > { %v4955_v52 = vunpack.i.l.bf16 %v4954_v41  ;;  %v3228_v21 = vsel %vm1567_vm11, %v3196_v27, %v4620_v9  ;;  %v3229_v38 = vsel %vm1567_vm11, %v3197_v45, %v4621_v13  ;;  %v3244_v25 = vsel %vm1567_vm11, %v8122_v30, %v4805_v26  ;;  %v9321_v45 = vld [vmem:[#allocation38_spill] sm:$0xff] }
 0x372   : > { %v3245_v42 = vsel %vm1567_vm11, %v8125_v55, %v4806_v11  ;;  %v3277_v50 = vsel %vm3252_vm13, %v3244_v25, %v4945_v43  ;;  %v4941_v6 = vunpack.i.h.bf16 %v4939_v33  ;;  %v4940_v14 = vunpack.i.l.bf16 %v4939_v33  ;;  %v9320_v43 = vld [vmem:[#allocation39_spill] sm:$0xff] }
 0x373   : > { %v4964_v48 = vpop.permute.xlu1 %4963  ;;  %v4959_v60 = vpop.permute.xlu0 %4958  ;;  %v3278_v20 = vsel %vm3252_vm13, %v3245_v42, %v4946_v34  ;;  %v3310_v47 = vsel %vm3285_vm14, %v3277_v50, %v4955_v52  ;;  %v4951_v15 = vunpack.i.h.bf16 %v4949_v28  ;;  %v4950_v54 = vunpack.i.l.bf16 %v4949_v28 }
 0x374   : > { %v4966_v49 = vunpack.i.h.bf16 %v4964_v48  ;;  %v4965_v32 = vunpack.i.l.bf16 %v4964_v48  ;;  %v3311_v35 = vsel %vm3285_vm14, %v3278_v20, %v4956_v5  ;;  %v4961_v0 = vunpack.i.h.bf16 %v4959_v60  ;;  %v9323_v20 = vld [vmem:[#allocation90_spill] sm:$0xff] }
 0x375   : > { %v4960_v8 = vunpack.i.l.bf16 %v4959_v60  ;;  %v3261_v1 = vsel %vm3252_vm13, %v3228_v21, %v4940_v14  ;;  %v3262_v33 = vsel %vm3252_vm13, %v3229_v38, %v4941_v6  ;;  %v4571_v13 = vunpack.i.h.bf16 %v7901_v19  ;;  %v9322_v38 = vld [vmem:[#allocation88_spill] sm:$0xff] }
 0x376   : > { %v3343_v30 = vsel %vm3318_vm15, %v3310_v47, %v4965_v32  ;;  %v3344_v31 = vsel %vm3318_vm15, %v3311_v35, %v4966_v49  ;;  %v3294_v10 = vsel %vm3285_vm14, %v3261_v1, %v4950_v54  ;;  %v3295_v53 = vsel %vm3285_vm14, %v3262_v33, %v4951_v15 }
 0x377   : > { %v4974_v59 = vpop.permute.xlu1 %4973  ;;  %v4969_v23 = vpop.permute.xlu0 %4968  ;;  %v3327_v4 = vsel %vm3318_vm15, %v3294_v10, %v4960_v8  ;;  %v3328_v12 = vsel %vm3318_vm15, %v3295_v53, %v4961_v0  ;;  %v4570_v9 = vunpack.i.l.bf16 %v7901_v19  ;;  %v4576_v40 = vunpack.i.h.bf16 %v9319_v16 }
 0x378   : > { %v4976_v62 = vunpack.i.h.bf16 %v4974_v59  ;;  %v4975_v29 = vunpack.i.l.bf16 %v4974_v59  ;;  %v4971_v41 = vunpack.i.h.bf16 %v4969_v23  ;;  %v4970_v39 = vunpack.i.l.bf16 %v4969_v23 }
 0x379   : > { %v4575_v36 = vunpack.i.l.bf16 %v9319_v16  ;;  %v3131_v27 = vsel %vm1369_vm4, %v9320_v43, %v4571_v13  ;;  %v3130_v19 = vsel %vm1369_vm4, %v9321_v45, %v4570_v9  ;;  %v4546_v49 = vunpack.i.h.bf16 %v9322_v38 }
 0x37a   : > { %v3376_v17 = vsel %vm3351_vm0, %v3343_v30, %v4975_v29  ;;  %v3377_v22 = vsel %vm3351_vm0, %v3344_v31, %v4976_v62  ;;  %v3360_v28 = vsel %vm3351_vm0, %v3327_v4, %v4970_v39  ;;  %v3361_v56 = vsel %vm3351_vm0, %v3328_v12, %v4971_v41 }
 0x37b   : > { %v4984_v2 = vpop.permute.xlu1 %4983  ;;  %v4979_v44 = vpop.permute.xlu0 %4978  ;;  %v3162_v52 = vsel %vm1435_vm7, %v3130_v19, %v4575_v36  ;;  %v3163_v59 = vsel %vm1435_vm7, %v3131_v27, %v4576_v40  ;;  %v4545_v32 = vunpack.i.l.bf16 %v9322_v38  ;;  %v4566_v50 = vunpack.i.h.bf16 %v9323_v20 }
 0x37c   : > { %v4986_v55 = vunpack.i.h.bf16 %v4984_v2  ;;  %v4985_v46 = vunpack.i.l.bf16 %v4984_v2  ;;  %v4981_v37 = vunpack.i.h.bf16 %v4979_v44  ;;  %v4980_v48 = vunpack.i.l.bf16 %v4979_v44 }
 0x37d   : > { %v3194_v25 = vsel %vm1501_vm9, %v3162_v52, %v4545_v32  ;;  %v3195_v42 = vsel %vm1501_vm9, %v3163_v59, %v4546_v49  ;;  %v4565_v6 = vunpack.i.l.bf16 %v9323_v20  ;;  %v9324_v59 = vld [vmem:[#allocation83_spill] sm:$0xff]  ;;  %v9325_v32 = vld [vmem:[#allocation85_spill] sm:$0xff] }
 0x37e   : > { %v3409_v58 = vsel %vm3384_vm1, %v3376_v17, %v4985_v46  ;;  %v3410_v18 = vsel %vm3384_vm1, %v3377_v22, %v4986_v55  ;;  %v3393_v26 = vsel %vm3384_vm1, %v3360_v28, %v4980_v48  ;;  %v3394_v57 = vsel %vm3384_vm1, %v3361_v56, %v4981_v37 }
 0x37f   : > { %v3429_v61 = vpack.c.bf16 %v3410_v18, %v3409_v58  ;;  %v4994_v51 = vpop.permute.xlu1 %4993  ;;  %v4989_v3 = vpop.permute.xlu0 %4988  ;;  %v3421_v34 = vpack.c.bf16 %v3394_v57, %v3393_v26  ;;  %v3226_v30 = vsel %vm1567_vm11, %v3194_v25, %v4565_v6  ;;  %v3227_v31 = vsel %vm1567_vm11, %v3195_v42, %v4566_v50  ;;  %v9327_v6 = vld [vmem:[#allocation33_spill] sm:$0xff] }
 0x380   : > { %v4996_v62 = vunpack.i.h.bf16 %v4994_v51  ;;  %v4995_v29 = vunpack.i.l.bf16 %v4994_v51  ;;  %v4991_v22 = vunpack.i.h.bf16 %v4989_v3  ;;  %v4990_v0 = vunpack.i.l.bf16 %v4989_v3 }
 0x381   : > { %3767 = vmatprep.subr.msk.bf16.mxu1 %vm3440_vm2, %v3429_v61  ;;  %v3457_v5 = vsel %vm3440_vm2, %v3421_v34, 0  ;;  %v4515_v38 = vunpack.i.l.bf16 %v9324_v59  ;;  %v4520_v25 = vunpack.i.l.bf16 %v9325_v32 }
 0x382   : > { %3714 = vmatpush3.bf16.xpose.msra.mxu1 %v3457_v5  ;;  %v3275_v23 = vsel %vm3252_vm13, %v8044_v7, %v4995_v29  ;;  %v3276_v17 = vsel %vm3252_vm13, %v8047_v63, %v4996_v62  ;;  %v3259_v13 = vsel %vm3252_vm13, %v3226_v30, %v4990_v0  ;;  %v3260_v9 = vsel %vm3252_vm13, %v3227_v31, %v4991_v22  ;;  %v9326_v62 = vld [vmem:[#allocation89_spill] sm:$0xff]  ;;  %v9330_v30 = vld [vmem:[#allocation84_spill] sm:$0xff] }
 0x383   : > { %v5004_v11 = vpop.permute.xlu1 %5003  ;;  %v4999_v60 = vpop.permute.xlu0 %4998  ;;  %v4551_v29 = vunpack.i.h.bf16 %v9326_v62  ;;  %v4550_v20 = vunpack.i.l.bf16 %v9326_v62  ;;  %v4531_v31 = vunpack.i.h.bf16 %v9330_v30 }
 0x384   : > { %v5006_v14 = vunpack.i.h.bf16 %v5004_v11  ;;  %v5005_v47 = vunpack.i.l.bf16 %v5004_v11  ;;  %v5001_v18 = vunpack.i.h.bf16 %v4999_v60  ;;  %v5000_v41 = vunpack.i.l.bf16 %v4999_v60 }
 0x385   : > { %v4521_v60 = vunpack.i.h.bf16 %v9325_v32 }
 0x386   : > { %v3308_v8 = vsel %vm3285_vm14, %v3275_v23, %v5005_v47  ;;  %v3309_v58 = vsel %vm3285_vm14, %v3276_v17, %v5006_v14  ;;  %v3292_v16 = vsel %vm3285_vm14, %v3259_v13, %v5000_v41  ;;  %v3293_v40 = vsel %vm3285_vm14, %v3260_v9, %v5001_v18  ;;  %v9328_v47 = vld [vmem:[#allocation93_spill] sm:$0xff] }
 0x387   : > { %v5014_v21 = vpop.permute.xlu1 %5013  ;;  %v5009_v2 = vpop.permute.xlu0 %5008 }
 0x388   : > { %v5016_v15 = vunpack.i.h.bf16 %v5014_v21  ;;  %v5015_v54 = vunpack.i.l.bf16 %v5014_v21  ;;  %v5011_v53 = vunpack.i.h.bf16 %v5009_v2  ;;  %v5010_v44 = vunpack.i.l.bf16 %v5009_v2 }
 0x389   : > { %v4516_v21 = vunpack.i.h.bf16 %v9324_v59 }
 0x38a   : > { %v3341_v1 = vsel %vm3318_vm15, %v3308_v8, %v5015_v54  ;;  %v3342_v33 = vsel %vm3318_vm15, %v3309_v58, %v5016_v15  ;;  %v3325_v11 = vsel %vm3318_vm15, %v3292_v16, %v5010_v44  ;;  %v3326_v26 = vsel %vm3318_vm15, %v3293_v40, %v5011_v53  ;;  %v9329_v54 = vld [vmem:[#allocation32_spill] sm:$0xff]  ;;  %v9332_v53 = vld [vmem:[#allocation101_spill] sm:$0xff] }
 0x38b   : > { %v5024_v35 = vpop.permute.xlu1 %5023  ;;  %v5019_v10 = vpop.permute.xlu0 %5018  ;;  %v3129_v14 = vsel %vm1369_vm4, %v9327_v6, %v4516_v21  ;;  %v4580_v15 = vunpack.i.l.bf16 %v9328_v47  ;;  %v3128_v2 = vsel %vm1369_vm4, %v9329_v54, %v4515_v38 }
 0x38c   : > { %v5026_v55 = vunpack.i.h.bf16 %v5024_v35  ;;  %v5025_v46 = vunpack.i.l.bf16 %v5024_v35  ;;  %v5021_v37 = vunpack.i.h.bf16 %v5019_v10  ;;  %v5020_v48 = vunpack.i.l.bf16 %v5019_v10 }
 0x38d   : > { %v4581_v35 = vunpack.i.h.bf16 %v9328_v47  ;;  %v3160_v23 = vsel %vm1435_vm7, %v3128_v2, %v4520_v25  ;;  %v3161_v17 = vsel %vm1435_vm7, %v3129_v14, %v4521_v60  ;;  %v9334_v14 = vld [vmem:[#allocation98_spill] sm:$0xff]  ;;  %v9335_v2 = vld [vmem:[#allocation100_spill] sm:$0xff] }
 0x38e   : > { %v3374_v7 = vsel %vm3351_vm0, %v3341_v1, %v5025_v46  ;;  %v3375_v63 = vsel %vm3351_vm0, %v3342_v33, %v5026_v55  ;;  %v3358_v34 = vsel %vm3351_vm0, %v3325_v11, %v5020_v48  ;;  %v3359_v43 = vsel %vm3351_vm0, %v3326_v26, %v5021_v37 }
 0x38f   : > { %v5034_v39 = vpop.permute.xlu1 %5033  ;;  %v5029_v36 = vpop.permute.xlu0 %5028  ;;  %v3193_v58 = vsel %vm1501_vm9, %v3161_v17, %v4551_v29  ;;  %v3192_v18 = vsel %vm1501_vm9, %v3160_v23, %v4550_v20  ;;  %v4706_v47 = vunpack.i.h.bf16 %v9334_v14 }
 0x390   : > { %v5036_v61 = vunpack.i.h.bf16 %v5034_v39  ;;  %v5035_v51 = vunpack.i.l.bf16 %v5034_v39  ;;  %v5031_v57 = vunpack.i.h.bf16 %v5029_v36  ;;  %v5030_v3 = vunpack.i.l.bf16 %v5029_v36 }
 0x391   : > { %v3224_v33 = vsel %vm1567_vm11, %v3192_v18, %v4580_v15 }
 0x392   : > { %v3407_v4 = vsel %vm3384_vm1, %v3374_v7, %v5035_v51  ;;  %v3408_v12 = vsel %vm3384_vm1, %v3375_v63, %v5036_v61  ;;  %v3391_v45 = vsel %vm3384_vm1, %v3358_v34, %v5030_v3  ;;  %v3392_v19 = vsel %vm3384_vm1, %v3359_v43, %v5031_v57  ;;  %v9331_v7 = vld [vmem:[#allocation102_spill] sm:$0xff] }
 0x393   : > { %v3428_v28 = vpack.c.bf16 %v3408_v12, %v3407_v4  ;;  %v5044_v56 = vpop.permute.xlu1 %5043  ;;  %v5039_v5 = vpop.permute.xlu0 %5038  ;;  %v3420_v52 = vpack.c.bf16 %v3392_v19, %v3391_v45  ;;  %v3225_v61 = vsel %vm1567_vm11, %v3193_v58, %v4581_v35  ;;  %v4705_v35 = vunpack.i.l.bf16 %v9334_v14 }
 0x394   : > { %v5046_v55 = vunpack.i.h.bf16 %v5044_v56  ;;  %v5045_v46 = vunpack.i.l.bf16 %v5044_v56  ;;  %v5041_v4 = vunpack.i.h.bf16 %v5039_v5  ;;  %v5040_v12 = vunpack.i.l.bf16 %v5039_v5 }
 0x395   : > { %3768 = vmatprep.subr.msk.bf16.mxu1 %vm3440_vm2, %v3428_v28  ;;  %v3454_v49 = vsel %vm3440_vm2, %v3420_v52, 0  ;;  %v4530_v5 = vunpack.i.l.bf16 %v9330_v30 }
 0x396   : > { %3716 = vmatpush3.bf16.xpose.msra.mxu1 %v3454_v49  ;;  %v3274_v63 = vsel %vm3252_vm13, %v9331_v7, %v5046_v55  ;;  %v3273_v44 = vsel %vm3252_vm13, %v9332_v53, %v5045_v46  ;;  %v3257_v52 = vsel %vm3252_vm13, %v3224_v33, %v5040_v12  ;;  %v3258_v59 = vsel %vm3252_vm13, %v3225_v61, %v5041_v4  ;;  %v9333_v49 = vld [vmem:[#allocation86_spill] sm:$0xff]  ;;  %v9338_v61 = vld [vmem:[#allocation68_spill] sm:$0xff] }
 0x397   : > { %v5054_v27 = vpop.permute.xlu1 %5053  ;;  %v5049_v50 = vpop.permute.xlu0 %5048  ;;  %v4536_v32 = vunpack.i.h.bf16 %v9333_v49  ;;  %v4535_v60 = vunpack.i.l.bf16 %v9333_v49  ;;  %v4711_v55 = vunpack.i.h.bf16 %v9335_v2  ;;  %v4710_v46 = vunpack.i.l.bf16 %v9335_v2  ;;  %v9340_v53 = vld [vmem:[#allocation80_spill] sm:$0xff] }
 0x398   : > { %v5056_v22 = vunpack.i.h.bf16 %v5054_v27  ;;  %v5055_v0 = vunpack.i.l.bf16 %v5054_v27  ;;  %v5051_v13 = vunpack.i.h.bf16 %v5049_v50  ;;  %v5050_v9 = vunpack.i.l.bf16 %v5049_v50 }
 0x399   : > { %v4505_v4 = vunpack.i.l.bf16 %v9340_v53 }
 0x39a   : > { %v3306_v37 = vsel %vm3285_vm14, %v3273_v44, %v5055_v0  ;;  %v3307_v48 = vsel %vm3285_vm14, %v3274_v63, %v5056_v22  ;;  %v3290_v25 = vsel %vm3285_vm14, %v3257_v52, %v5050_v9  ;;  %v9336_v0 = vld [vmem:[#allocation34_spill] sm:$0xff]  ;;  %v4506_v44 = vunpack.i.h.bf16 %v9340_v53 }
 0x39b   : > { %v5064_v42 = vpop.permute.xlu1 %5063  ;;  %v5059_v1 = vpop.permute.xlu0 %5058 }
 0x39c   : > { %v5066_v41 = vunpack.i.h.bf16 %v5064_v42  ;;  %v5065_v39 = vunpack.i.l.bf16 %v5064_v42  ;;  %v5061_v3 = vunpack.i.h.bf16 %v5059_v1  ;;  %v5060_v34 = vunpack.i.l.bf16 %v5059_v1 }
 0x39d   : > { %v3291_v42 = vsel %vm3285_vm14, %v3258_v59, %v5051_v13  ;;  %v9342_v13 = vld [vmem:[#allocation96_spill] sm:$0xff] }
 0x39e   : > { %v3339_v56 = vsel %vm3318_vm15, %v3306_v37, %v5065_v39  ;;  %v3340_v16 = vsel %vm3318_vm15, %v3307_v48, %v5066_v41  ;;  %v3323_v29 = vsel %vm3318_vm15, %v3290_v25, %v5060_v34  ;;  %v3324_v20 = vsel %vm3318_vm15, %v3291_v42, %v5061_v3  ;;  %v9337_v41 = vld [vmem:[#allocation36_spill] sm:$0xff]  ;;  %v9341_v37 = vld [vmem:[#allocation77_spill] sm:$0xff] }
 0x39f   : > { %v5074_v8 = vpop.permute.xlu1 %5073  ;;  %v5069_v11 = vpop.permute.xlu0 %5068  ;;  %v3127_v39 = vsel %vm1369_vm4, %v9337_v41, %v4531_v31  ;;  %v4471_v48 = vunpack.i.h.bf16 %v9341_v37  ;;  %v4676_v9 = vunpack.i.h.bf16 %v9342_v13 }
 0x3a0   : > { %v5076_v51 = vunpack.i.h.bf16 %v5074_v8  ;;  %v5075_v10 = vunpack.i.l.bf16 %v5074_v8  ;;  %v5071_v45 = vunpack.i.h.bf16 %v5069_v11  ;;  %v5070_v19 = vunpack.i.l.bf16 %v5069_v11 }
 0x3a1   : > { %v3126_v8 = vsel %vm1369_vm4, %v9336_v0, %v4530_v5  ;;  %v3159_v33 = vsel %vm1435_vm7, %v3127_v39, %v4536_v32 }
 0x3a2   : > { %v3372_v26 = vsel %vm3351_vm0, %v3339_v56, %v5075_v10  ;;  %v3373_v57 = vsel %vm3351_vm0, %v3340_v16, %v5076_v51  ;;  %v3356_v15 = vsel %vm3351_vm0, %v3323_v29, %v5070_v19  ;;  %v3357_v54 = vsel %vm3351_vm0, %v3324_v20, %v5071_v45  ;;  %v9339_v10 = vld [vmem:[#allocation67_spill] sm:$0xff]  ;;  %v9343_v16 = vld [vmem:[#allocation82_spill] sm:$0xff] }
 0x3a3   : > { %v5084_v28 = vpop.permute.xlu1 %5083  ;;  %v5079_v62 = vpop.permute.xlu0 %5078  ;;  %v3158_v1 = vsel %vm1435_vm7, %v3126_v8, %v4535_v60  ;;  %v3143_v51 = vsel %vm1369_vm4, %v9338_v61, %v4706_v47  ;;  %v3142_v7 = vsel %vm1369_vm4, %v9339_v10, %v4705_v35 }
 0x3a4   : > { %v5086_v40 = vunpack.i.h.bf16 %v5084_v28  ;;  %v5085_v36 = vunpack.i.l.bf16 %v5084_v28  ;;  %v5081_v50 = vunpack.i.h.bf16 %v5079_v62  ;;  %v5080_v6 = vunpack.i.l.bf16 %v5079_v62 }
 0x3a5   : > { %v3174_v30 = vsel %vm1435_vm7, %v3142_v7, %v4710_v46  ;;  %v3175_v31 = vsel %vm1435_vm7, %v3143_v51, %v4711_v55  ;;  %v4675_v28 = vunpack.i.l.bf16 %v9342_v13  ;;  %v3190_v11 = vsel %vm1501_vm9, %v3158_v1, %v4505_v4 }
 0x3a6   : > { %v3405_v43 = vsel %vm3384_vm1, %v3372_v26, %v5085_v36  ;;  %v3406_v27 = vsel %vm3384_vm1, %v3373_v57, %v5086_v40  ;;  %v3389_v17 = vsel %vm3384_vm1, %v3356_v15, %v5080_v6  ;;  %v3390_v22 = vsel %vm3384_vm1, %v3357_v54, %v5081_v50 }
 0x3a7   : > { %v3427_v21 = vpack.c.bf16 %v3406_v27, %v3405_v43  ;;  %v8520_v38 = vpop.permute.xlu1 %5093  ;;  %v8539_v58 = vpop.permute.xlu0 %5088  ;;  %v3419_v18 = vpack.c.bf16 %v3390_v22, %v3389_v17  ;;  %v4526_v40 = vunpack.i.h.bf16 %v9343_v16  ;;  %v4525_v36 = vunpack.i.l.bf16 %v9343_v16  ;;  %v9344_v27 = vld [vmem:[#allocation97_spill] sm:$0xff]  ;;  %v9346_v16 = vld [vmem:[#allocation78_spill] sm:$0xff] }
 0x3a8   : > { %v3191_v26 = vsel %vm1501_vm9, %v3159_v33, %v4506_v44  ;;  %v3206_v57 = vsel %vm1501_vm9, %v3174_v30, %v4675_v28  ;;  %v3207_v3 = vsel %vm1501_vm9, %v3175_v31, %v4676_v9  ;;  %v5096_v34 = vunpack.i.h.bf16 %v8520_v38  ;;  %v9345_v9 = vld [vmem:[#allocation11_spill] sm:$0xff] }
 0x3a9   : > { %3769 = vmatprep.subr.msk.bf16.mxu1 %vm3440_vm2, %v3427_v21  ;;  %v3451_v63 = vsel %vm3440_vm2, %v3419_v18, 0  ;;  %v5095_v43 = vunpack.i.l.bf16 %v8520_v38  ;;  %v4701_v45 = vunpack.i.h.bf16 %v9344_v27  ;;  %v4700_v19 = vunpack.i.l.bf16 %v9344_v27 }
 0x3aa   : > { %3718 = vmatpush3.bf16.xpose.msra.mxu1 %v3451_v63  ;;  %v3222_v21 = vsel %vm1567_vm11, %v3190_v11, %v4525_v36  ;;  %v3223_v49 = vsel %vm1567_vm11, %v3191_v26, %v4526_v40  ;;  %v5091_v6 = vunpack.i.h.bf16 %v8539_v58  ;;  %v5090_v14 = vunpack.i.l.bf16 %v8539_v58 }
 0x3ab   : > { %v5104_v23 = vpop.permute.xlu1 %5103  ;;  %v5099_v56 = vpop.permute.xlu0 %5098  ;;  %v3238_v42 = vsel %vm1567_vm11, %v3206_v57, %v4700_v19  ;;  %v3239_v62 = vsel %vm1567_vm11, %v3207_v3, %v4701_v45  ;;  %v4470_v63 = vunpack.i.l.bf16 %v9341_v37  ;;  %v3125_v28 = vsel %vm1369_vm4, %v9345_v9, %v4471_v48  ;;  %v9347_v3 = vld [vmem:[#allocation49_spill] sm:$0xff] }
 0x3ac   : > { %v5106_v5 = vunpack.i.h.bf16 %v5104_v23  ;;  %v5105_v52 = vunpack.i.l.bf16 %v5104_v23  ;;  %v3271_v20 = vsel %vm3252_vm13, %v3238_v42, %v5095_v43  ;;  %v3272_v50 = vsel %vm3252_vm13, %v3239_v62, %v5096_v34  ;;  %v9348_v43 = vld [vmem:[#allocation81_spill] sm:$0xff]  ;;  %v9351_v62 = vld [vmem:[#allocation95_spill] sm:$0xff] }
 0x3ad   : > { %v5101_v15 = vunpack.i.h.bf16 %v5099_v56  ;;  %v5100_v54 = vunpack.i.l.bf16 %v5099_v56  ;;  %v3255_v61 = vsel %vm3252_vm13, %v3222_v21, %v5090_v14  ;;  %v3256_v51 = vsel %vm3252_vm13, %v3223_v49, %v5091_v6  ;;  %v9350_v21 = vld [vmem:[#allocation94_spill] sm:$0xff]  ;;  %v9352_v14 = vld [vmem:[#allocation99_spill] sm:$0xff] }
 0x3ae   : > { %v3304_v47 = vsel %vm3285_vm14, %v3271_v20, %v5105_v52  ;;  %v3305_v35 = vsel %vm3285_vm14, %v3272_v50, %v5106_v5  ;;  %v4476_v40 = vunpack.i.h.bf16 %v9346_v16  ;;  %v4475_v36 = vunpack.i.l.bf16 %v9346_v16  ;;  %v9349_v5 = vld [vmem:[#allocation87_spill] sm:$0xff] }
 0x3af   : > { %v5114_v12 = vpop.permute.xlu1 %5113  ;;  %v3288_v53 = vsel %vm3285_vm14, %v3255_v61, %v5100_v54  ;;  %v3289_v44 = vsel %vm3285_vm14, %v3256_v51, %v5101_v15  ;;  %v3124_v34 = vsel %vm1369_vm4, %v9347_v3, %v4470_v63  ;;  %v4511_v27 = vunpack.i.h.bf16 %v9348_v43 }
 0x3b0   : > { %v5116_v32 = vunpack.i.h.bf16 %v5114_v12  ;;  %v5115_v60 = vunpack.i.l.bf16 %v5114_v12  ;;  %v5109_v25 = vpop.permute.xlu0 %5108  ;;  %v4510_v48 = vunpack.i.l.bf16 %v9348_v43  ;;  %v4541_v52 = vunpack.i.h.bf16 %v9349_v5 }
 0x3b1   : > { %v5111_v18 = vunpack.i.h.bf16 %v5109_v25  ;;  %v5110_v58 = vunpack.i.l.bf16 %v5109_v25  ;;  %v4636_v49 = vunpack.i.h.bf16 %v9350_v21  ;;  %v3156_v25 = vsel %vm1435_vm7, %v3124_v34, %v4475_v36 }
 0x3b2   : > { %v3337_v55 = vsel %vm3318_vm15, %v3304_v47, %v5115_v60  ;;  %v3338_v46 = vsel %vm3318_vm15, %v3305_v35, %v5116_v32  ;;  %v4635_v32 = vunpack.i.l.bf16 %v9350_v21  ;;  %v3157_v42 = vsel %vm1435_vm7, %v3125_v28, %v4476_v40 }
 0x3b3   : > { %v5124_v59 = vpop.permute.xlu1 %5123  ;;  %v3321_v30 = vsel %vm3318_vm15, %v3288_v53, %v5110_v58  ;;  %v3322_v31 = vsel %vm3318_vm15, %v3289_v44, %v5111_v18  ;;  %v3189_v50 = vsel %vm1501_vm9, %v3157_v42, %v4511_v27  ;;  %v3188_v6 = vsel %vm1501_vm9, %v3156_v25, %v4510_v48 }
 0x3b4   : > { %v5126_v29 = vunpack.i.h.bf16 %v5124_v59  ;;  %v5125_v38 = vunpack.i.l.bf16 %v5124_v59  ;;  %v5119_v22 = vpop.permute.xlu0 %5118  ;;  %v4540_v59 = vunpack.i.l.bf16 %v9349_v5  ;;  %v4681_v47 = vunpack.i.h.bf16 %v9352_v14 }
 0x3b5   : > { %v5121_v1 = vunpack.i.h.bf16 %v5119_v22  ;;  %v5120_v33 = vunpack.i.l.bf16 %v5119_v22  ;;  %v4680_v35 = vunpack.i.l.bf16 %v9352_v14  ;;  %v3221_v54 = vsel %vm1567_vm11, %v3189_v50, %v4541_v52 }
 0x3b6   : > { %v3370_v0 = vsel %vm3351_vm0, %v3337_v55, %v5125_v38  ;;  %v3371_v8 = vsel %vm3351_vm0, %v3338_v46, %v5126_v29  ;;  %v4641_v29 = vunpack.i.h.bf16 %v9351_v62  ;;  %v4640_v38 = vunpack.i.l.bf16 %v9351_v62  ;;  %v9353_v55 = vld [vmem:[#allocation15_spill] sm:$0xff] }
 0x3b7   : > { %v5134_v2 = vpop.permute.xlu1 %5133  ;;  %v3354_v56 = vsel %vm3351_vm0, %v3321_v30, %v5120_v33  ;;  %v3355_v37 = vsel %vm3351_vm0, %v3322_v31, %v5121_v1  ;;  %v4716_v46 = vunpack.i.h.bf16 %v9353_v55 }
 0x3b8   : > { %v5136_v23 = vunpack.i.h.bf16 %v5134_v2  ;;  %v5135_v17 = vunpack.i.l.bf16 %v5134_v2  ;;  %v5129_v4 = vpop.permute.xlu0 %5128  ;;  %v3220_v2 = vsel %vm1567_vm11, %v3188_v6, %v4540_v59 }
 0x3b9   : > { %v5131_v12 = vunpack.i.h.bf16 %v5129_v4  ;;  %v5130_v13 = vunpack.i.l.bf16 %v5129_v4 }
 0x3ba   : > { %v3403_v41 = vsel %vm3384_vm1, %v3370_v0, %v5135_v17  ;;  %v3404_v39 = vsel %vm3384_vm1, %v3371_v8, %v5136_v23  ;;  %v4715_v23 = vunpack.i.l.bf16 %v9353_v55  ;;  %v9354_v17 = vld [vmem:[#allocation64_spill] sm:$0xff]  ;;  %v9355_v0 = vld [vmem:[#allocation65_spill] sm:$0xff] }
 0x3bb   : > { %v3426_v10 = vpack.c.bf16 %v3404_v39, %v3403_v41  ;;  %v8587_v7 = vpop.permute.xlu1 %5143  ;;  %v3387_v26 = vsel %vm3384_vm1, %v3354_v56, %v5130_v13  ;;  %v3388_v57 = vsel %vm3384_vm1, %v3355_v37, %v5131_v12  ;;  %v3141_v22 = vsel %vm1369_vm4, %v9354_v17, %v4636_v49 }
 0x3bc   : > { %v8607_v45 = vpop.permute.xlu0 %5138  ;;  %v3418_v19 = vpack.c.bf16 %v3388_v57, %v3387_v26  ;;  %v3140_v8 = vsel %vm1369_vm4, %v9355_v0, %v4635_v32  ;;  %v5146_v18 = vunpack.i.h.bf16 %v8587_v7  ;;  %v5145_v58 = vunpack.i.l.bf16 %v8587_v7 }
 0x3bd   : > { %3770 = vmatprep.subr.msk.bf16.mxu1 %vm3440_vm2, %v3426_v10  ;;  %v3172_v41 = vsel %vm1435_vm7, %v3140_v8, %v4640_v38  ;;  %v3173_v39 = vsel %vm1435_vm7, %v3141_v22, %v4641_v29  ;;  %v5141_v9 = vunpack.i.h.bf16 %v8607_v45  ;;  %v5140_v28 = vunpack.i.l.bf16 %v8607_v45 }
 0x3be   : > { %v3448_v60 = vsel %vm3440_vm2, %v3418_v19, 0  ;;  %v3204_v51 = vsel %vm1501_vm9, %v3172_v41, %v4680_v35  ;;  %v3205_v10 = vsel %vm1501_vm9, %v3173_v39, %v4681_v47 }
 0x3bf   : > { %v5154_v11 = vpop.permute.xlu1 %5153  ;;  %3720 = vmatpush3.bf16.xpose.msra.mxu1 %v3448_v60  ;;  %v3236_v4 = vsel %vm1567_vm11, %v3204_v51, %v4715_v23  ;;  %v3237_v30 = vsel %vm1567_vm11, %v3205_v10, %v4716_v46  ;;  %v3253_v21 = vsel %vm3252_vm13, %v3220_v2, %v5140_v28  ;;  %v3254_v49 = vsel %vm3252_vm13, %v3221_v54, %v5141_v9 }
 0x3c0   : > { %v5156_v1 = vunpack.i.h.bf16 %v5154_v11  ;;  %v5155_v33 = vunpack.i.l.bf16 %v5154_v11  ;;  %v3270_v12 = vsel %vm3252_vm13, %v3237_v30, %v5146_v18  ;;  %v3269_v13 = vsel %vm3252_vm13, %v3236_v4, %v5145_v58 }
 0x3c1   : > { %v5149_v15 = vpop.permute.xlu0 %5148 }
 0x3c2   : > { %v3302_v56 = vsel %vm3285_vm14, %v3269_v13, %v5155_v33  ;;  %v3303_v37 = vsel %vm3285_vm14, %v3270_v12, %v5156_v1  ;;  %v5151_v16 = vunpack.i.h.bf16 %v5149_v15  ;;  %v5150_v40 = vunpack.i.l.bf16 %v5149_v15 }
 0x3c3   : > { %v5164_v20 = vpop.permute.xlu1 %5163 }
 0x3c4   : > { %v5166_v63 = vunpack.i.h.bf16 %v5164_v20  ;;  %v5165_v53 = vunpack.i.l.bf16 %v5164_v20  ;;  %v3286_v60 = vsel %vm3285_vm14, %v3253_v21, %v5150_v40  ;;  %v3287_v25 = vsel %vm3285_vm14, %v3254_v49, %v5151_v16 }
 0x3c5   : > { %v5159_v44 = vpop.permute.xlu0 %5158 }
 0x3c6   : > { %v3335_v11 = vsel %vm3318_vm15, %v3302_v56, %v5165_v53  ;;  %v3336_v26 = vsel %vm3318_vm15, %v3303_v37, %v5166_v63  ;;  %v5161_v48 = vunpack.i.h.bf16 %v5159_v44  ;;  %v5160_v45 = vunpack.i.l.bf16 %v5159_v44 }
 0x3c7   : > { %v5174_v61 = vpop.permute.xlu1 %5173 }
 0x3c8   : > { %v5176_v31 = vunpack.i.h.bf16 %v5174_v61  ;;  %v5175_v7 = vunpack.i.l.bf16 %v5174_v61  ;;  %v3319_v62 = vsel %vm3318_vm15, %v3286_v60, %v5160_v45  ;;  %v3320_v29 = vsel %vm3318_vm15, %v3287_v25, %v5161_v48 }
 0x3c9   : > { %v5169_v34 = vpop.permute.xlu0 %5168 }
 0x3ca   : > { %v3368_v43 = vsel %vm3351_vm0, %v3335_v11, %v5175_v7  ;;  %v3369_v27 = vsel %vm3351_vm0, %v3336_v26, %v5176_v31  ;;  %v5171_v52 = vunpack.i.h.bf16 %v5169_v34  ;;  %v5170_v59 = vunpack.i.l.bf16 %v5169_v34 }
 0x3cb   : > { %v5184_v36 = vpop.permute.xlu1 %5183 }
 0x3cc   : > { %v5186_v57 = vunpack.i.h.bf16 %v5184_v36  ;;  %v5185_v3 = vunpack.i.l.bf16 %v5184_v36  ;;  %v3352_v50 = vsel %vm3351_vm0, %v3319_v62, %v5170_v59  ;;  %v3353_v6 = vsel %vm3351_vm0, %v3320_v29, %v5171_v52 }
 0x3cd   : > { %v5179_v42 = vpop.permute.xlu0 %5178 }
 0x3ce   : > { %v3401_v19 = vsel %vm3384_vm1, %v3368_v43, %v5185_v3  ;;  %v3402_v5 = vsel %vm3384_vm1, %v3369_v27, %v5186_v57  ;;  %v5181_v38 = vunpack.i.h.bf16 %v5179_v42  ;;  %v5180_v20 = vunpack.i.l.bf16 %v5179_v42 }
 0x3cf   : > { %v3425_v32 = vpack.c.bf16 %v3402_v5, %v3401_v19 }
 0x3d0   : > { %v3385_v14 = vsel %vm3384_vm1, %v3352_v50, %v5180_v20  ;;  %v3386_v47 = vsel %vm3384_vm1, %v3353_v6, %v5181_v38 }
 0x3d1   : > { %3771 = vmatprep.subr.msk.bf16.mxu1 %vm3440_vm2, %v3425_v32  ;;  %v3417_v35 = vpack.c.bf16 %v3386_v47, %v3385_v14 }
 0x3d3   : > { %v3445_v15 = vsel %vm3440_vm2, %v3417_v35, 0 }
 0x3d4   : > { %3722 = vmatpush3.bf16.xpose.msra.mxu1 %v3445_v15 }
 0x3da   : > { %v3438_v54 = vpop.permute.xlu0 %3437 }
 0x3db   : > { %3724 = vmatmul.mubr.msk.bf16.vlgmr.msra.gmra.mxu1 %vm3440_vm2, %v8311_v24 }
 0x49b   : > { %v3526_v2 = vpop.f32.mrf.mxu1 }
 0x49c   : > { %v3527_v55 = vadd.f32 %v3526_v2, %v3438_v54 }
 0x49d   : > { %v3528_v46 = vpop.f32.mrf.mxu1 }
 0x49e   : > { %v3533_v23 = vmax.f32 %v3527_v55, 0.0  ;;  %v3529_v17 = vadd.f32 %v3528_v46, %v3438_v54 }
 0x49f   : > { %v3530_v22 = vpop.f32.mrf.mxu1 }
 0x4a0   : > { %3535 = vst [vmem:[%s217_s6] sm:$0xff] %v3533_v23  ;;  %v3534_v0 = vmax.f32 %v3529_v17, 0.0 }
 0x4a1   : > { %v3531_v24 = vpop.f32.mrf.mxu1 }
 0x4a2   : > { %3536 = vst [vmem:[%s217_s6 + $0x8] sm:$0xff] %v3534_v0 }
 0x4a3   : > { %5204 = shalt.err (!%p5201_p3)
}
 0x4a4   : > { %s5205_s11 = scalar_lea.hbm %s8669_s10, 256  ;;  %s5209_s23 = scalar_lea.hbm %s8709_s5, 512 }
 0x4a5   : > { %p5206_p4 = scmp.ne.s32.totalorder %s8669_s10, %s5205_s11  ;;  %p5210_p9 = scmp.lt.s32.totalorder %s8669_s10, %s8709_s5 }
 0x4a6   : > { %p5211_p10 = scmp.lt.s32.totalorder %s5209_s23, %s5205_s11 }
 0x4a7   : > { %p5207_p7 = pnand %p5206_p4, %p5337_p5 }
 0x4a8   : > { %p5212_p11 = por %p5211_p10, %p5210_p9 }
 0x4a9   : > { %p5208_p8 = pneg %p5207_p7 }
 0x4ab   : > { %p5213_p12 = pnand %p5212_p11, %p5208_p8 }
 0x4ad   : > { %5216 = shalt.err (!%p5213_p12)
}
 0x4ae   : > { %3773 = dma.vmem_to_hbm [thread:$0]  (%p5337_p5), %s3553_s7, 256, %s8669_s10, %s3538_s12  }
 0x4af PF: > { %p3779_p13 = scmp.ge.s32.totalorder %s5251_s21, 2  ;;  %s3564_s30 = sand.u32 1, %s5239_s18  }
 0x4b0   : > { %s3565_s6 = scalar_lea.sflag [#allocation3], %s3564_s30 }
 0x4b1   : > { %p3776_p0 = pnand %p3779_p13, %p5341_p6 }
 0x4b3   : > { %p3777_p1 = pneg %p3776_p0 }
 0x4b5   : > { %5234 = dma.done.wait (%p3777_p1), %s3565_s6, 256  }
 0x4b6   : > { %5236 = vsyncadd (%p3777_p1), %s3565_s6, 4294967040  ;;  %p15_p2 = scmp.ge.s32.totalorder %s5324_s24, 4   ;;  %s9356_s18 = smov %s5243_s19 }
 0x4b7   : > { %s9357_s19 = smov %s5247_s20  ;;  %s9358_s20 = smov %s5335_s27 }
 0x4b8   : > { %s9359_s21 = smov %s5324_s24  ;;  %17 = sbr.rel (!%p15_p2) target bundleno = 3 (0x3), region = 75 }
 0x4bd   :  { %3570 = vsyncpa [#allocation3], 1 }
 0x4be   :  { %3572 = vsyncpa [#allocation3 + $0x1], 1 }

</bundles_post_ra>
